<compile_context>
chip_gen: v6e
topology: v6e:2x2x1
jax: 0.10.0
libtpu: 0.0.40
codegen_flags: <defaults>
</compile_context>

<pallas_src>
import jax
import jax.numpy as jnp
import numpy as np
from jax import lax
from jax.experimental import pallas as pl
from jax.experimental.pallas import tpu as pltpu

EPS = 1e-5
NEG_SLOPE = 0.2
_PREC = lax.Precision.HIGHEST  # exact-f32 MXU passes


def _residual_kernel(xp_ref, mask_ref, sd_ref, su_ref,
                     m1_ref, m2_ref, m3_ref,
                     t1_ref, t2_ref, t3_ref,
                     out_ref):
    # xp_ref : (1, Hp, W*C)   one image; H padded by one zero row top/bottom,
    #                         lanes = (w, c) flattened with c fastest.
    # mask   : (Hp, 1)        1 on interior rows, 0 on the two H-pad rows.
    # sd/su  : (Hp, Hp)       row shift-down / shift-up matrices.
    # mK_ref : (3, W*Cin, W*Cout)  banded conv matrices (BN scale folded), one per dy.
    # tK_ref : (1, W*Cout)    folded BN shift, tiled over w.
    # out_ref: (1, Hp, W*C)
    x = xp_ref[0]
    mask = mask_ref[...]
    sd = sd_ref[...]
    su = su_ref[...]

    def stage(a, m_ref, t_ref):
        # 3x3 conv (+ BN scale) as three MXU matmuls, one per kernel row dy.
        c0 = jnp.dot(a, m_ref[0], preferred_element_type=jnp.float32, precision=_PREC)
        c1 = jnp.dot(a, m_ref[1], preferred_element_type=jnp.float32, precision=_PREC)
        c2 = jnp.dot(a, m_ref[2], preferred_element_type=jnp.float32, precision=_PREC)
        # y[r] = c0[r-1] + c1[r] + c2[r+1]  (row shifts via tiny MXU matmuls).
        y = (jnp.dot(sd, c0, preferred_element_type=jnp.float32, precision=_PREC)
             + c1
             + jnp.dot(su, c2, preferred_element_type=jnp.float32, precision=_PREC))
        y = y + t_ref[...]                        # folded BN shift
        y = jnp.where(y > 0, y, NEG_SLOPE * y)    # LeakyReLU(0.2)
        return y * mask                           # keep H-pad rows exactly zero

    y = stage(x, m1_ref, t1_ref)   # conv1: C    -> C
    y = stage(y, m2_ref, t2_ref)   # conv2: C    -> C//2
    y = stage(y, m3_ref, t3_ref)   # conv3: C//2 -> C
    out_ref[0] = x + y             # residual add (pad rows stay zero)


def _band_matrices(w_oihw, scale, W):
    """Fold a 3x3 conv (stride 1, pad 1, no bias) + per-out-channel BN scale into
    three banded matrices M[dy] of shape (W*Cin, W*Cout) such that
        (conv(x)[h, w, co]) * scale[co] == sum_dy (A[h+dy-1] @ M[dy])[w*Cout + co]
    where A[r, w*Cin + ci] is the row-padded, lane-flattened activation."""
    w = jnp.transpose(w_oihw, (2, 3, 1, 0)) * scale           # (3, 3, Cin, Cout) HWIO
    w_in = np.arange(W)[:, None]
    w_out = np.arange(W)[None, :]
    kx = w_in - w_out + 1                                     # tap column per (w_in, w_out)
    valid = ((kx >= 0) & (kx <= 2)).astype(np.float32)        # band == zero-padding in W
    m = w[:, np.clip(kx, 0, 2)] * valid[None, :, :, None, None]   # (3, W, W, Cin, Cout)
    m = jnp.transpose(m, (0, 1, 3, 2, 4))                     # (3, W, Cin, W, Cout)
    Cin, Cout = w.shape[2], w.shape[3]
    return m.reshape(3, W * Cin, W * Cout)


def residual_forward_pallas(x_nchw, params):
    """x_nchw: (N, C, H, W) float32. Returns (N, C, H, W)."""
    N, C, H, W = x_nchw.shape
    C2 = C // 2
    Hp = H + 2
    L0, L2 = W * C, W * C2

    # Fold eval-mode BN: scale goes into the conv matrices, shift applied after.
    def fold(g, b, m, v):
        s = g / jnp.sqrt(v + EPS)
        return s, b - m * s

    s1, t1 = fold(params["g1"], params["b1"], params["m1"], params["v1"])
    s2, t2 = fold(params["g2"], params["b2"], params["m2"], params["v2"])
    s3, t3 = fold(params["g3"], params["b3"], params["m3"], params["v3"])

    m1 = _band_matrices(params["w1"], s1, W)            # (3, W*C,  W*C)
    m2 = _band_matrices(params["w2"], s2, W)            # (3, W*C,  W*C2)
    m3 = _band_matrices(params["w3"], s3, W)            # (3, W*C2, W*C)
    t1r = jnp.tile(t1, W).reshape(1, L0)
    t2r = jnp.tile(t2, W).reshape(1, L2)
    t3r = jnp.tile(t3, W).reshape(1, L0)

    # NCHW -> (N, Hp, W*C): NHWC, pad H by one zero row each side, fold (W, C) on lanes.
    x = jnp.transpose(x_nchw, (0, 2, 3, 1)).astype(jnp.float32)
    xp = jnp.pad(x, ((0, 0), (1, 1), (0, 0), (0, 0))).reshape(N, Hp, L0)

    # Row-pad mask and row-shift matrices (tiny, built host-side once).
    r = np.arange(Hp)
    mask = ((r > 0) & (r < Hp - 1)).astype(np.float32).reshape(Hp, 1)
    sd = (r[:, None] == r[None, :] + 1).astype(np.float32)   # (Sd @ c)[r] = c[r-1]
    su = (r[:, None] == r[None, :] - 1).astype(np.float32)   # (Su @ c)[r] = c[r+1]
    mask, sd, su = jnp.asarray(mask), jnp.asarray(sd), jnp.asarray(su)

    def const_spec(shape):
        return pl.BlockSpec(shape, lambda n: (0,) * len(shape))

    out = pl.pallas_call(
        _residual_kernel,
        grid=(N,),
        in_specs=[
            pl.BlockSpec((1, Hp, L0), lambda n: (n, 0, 0)),   # xp: one image per step
            const_spec((Hp, 1)),                              # row mask
            const_spec((Hp, Hp)), const_spec((Hp, Hp)),       # shift matrices
            const_spec((3, L0, L0)),                          # m1
            const_spec((3, L0, L2)),                          # m2
            const_spec((3, L2, L0)),                          # m3
            const_spec((1, L0)), const_spec((1, L2)), const_spec((1, L0)),
        ],
        out_specs=pl.BlockSpec((1, Hp, L0), lambda n: (n, 0, 0)),
        out_shape=jax.ShapeDtypeStruct((N, Hp, L0), jnp.float32),
        compiler_params=pltpu.CompilerParams(
            dimension_semantics=("parallel",)),
    )(xp, mask, sd, su, m1, m2, m3, t1r, t2r, t3r)

    # (N, Hp, W*C) -> strip H pad rows -> NHWC -> NCHW.
    out = out.reshape(N, Hp, W, C)[:, 1:H + 1]
    return jnp.transpose(out, (0, 3, 1, 2))


def residual_forward_ref(x_nchw, params):
    """Pure-JAX reference (lax.conv) for correctness checking."""
    def conv(x, w):
        return lax.conv_general_dilated(
            x, w, window_strides=(1, 1), padding=((1, 1), (1, 1)),
            dimension_numbers=("NCHW", "OIHW", "NCHW"))

    def bn(x, g, b, m, v):
        g, b, m, v = (a[None, :, None, None] for a in (g, b, m, v))
        return (x - m) / jnp.sqrt(v + EPS) * g + b

    def lrelu(x):
        return jnp.where(x > 0, x, NEG_SLOPE * x)

    y = lrelu(bn(conv(x_nchw, params["w1"]),
                 params["g1"], params["b1"], params["m1"], params["v1"]))
    y = lrelu(bn(conv(y, params["w2"]),
                 params["g2"], params["b2"], params["m2"], params["v2"]))
    y = lrelu(bn(conv(y, params["w3"]),
                 params["g3"], params["b3"], params["m3"], params["v3"]))
    return x_nchw + y


def make_params(chan, key):
    ks = jax.random.split(key, 15)
    c2 = chan // 2
    p = {
        # conv weights, PyTorch OIHW layout, no bias
        "w1": 0.2 * jax.random.normal(ks[0], (chan, chan, 3, 3), jnp.float32),
        "w2": 0.2 * jax.random.normal(ks[1], (c2, chan, 3, 3), jnp.float32),
        "w3": 0.2 * jax.random.normal(ks[2], (chan, c2, 3, 3), jnp.float32),
    }
    # BatchNorm affine + running stats (eval mode), deterministic non-trivial values
    for i, (c, base) in enumerate([(chan, 3), (c2, 7), (chan, 11)], start=1):
        p[f"g{i}"] = 1.0 + 0.1 * jax.random.normal(ks[base], (c,), jnp.float32)
        p[f"b{i}"] = 0.1 * jax.random.normal(ks[base + 1], (c,), jnp.float32)
        p[f"m{i}"] = 0.1 * jax.random.normal(ks[base + 2], (c,), jnp.float32)
        p[f"v{i}"] = 1.0 + 0.2 * jax.random.uniform(ks[base + 3], (c,), jnp.float32)
    return p


if __name__ == "__main__":
    key = jax.random.PRNGKey(0)
    k_x, k_p = jax.random.split(key)

    chan = 4
    x = jax.random.normal(k_x, (2, chan, 16, 16), jnp.float32)  # NCHW like PyTorch
    params = make_params(chan, k_p)

    out = jax.block_until_ready(residual_forward_pallas(x, params))
    ref = jax.block_until_ready(residual_forward_ref(x, params))

    np.testing.assert_allclose(np.asarray(out), np.asarray(ref),
                               rtol=1e-3, atol=1e-3)
    assert out.shape == x.shape and out.dtype == x.dtype
    print("KERNEL_OK")
</pallas_src>

<mosaic_0001>
module attributes {stable_mosaic.version = 11 : i64} {
  func.func @_residual_kernel(%arg0: i32, %arg1: memref<1x18x64xf32, #tpu.memory_space<vmem>>, %arg2: memref<18x1xf32, #tpu.memory_space<vmem>>, %arg3: memref<18x18xf32, #tpu.memory_space<vmem>>, %arg4: memref<18x18xf32, #tpu.memory_space<vmem>>, %arg5: memref<3x64x64xf32, #tpu.memory_space<vmem>>, %arg6: memref<3x64x32xf32, #tpu.memory_space<vmem>>, %arg7: memref<3x32x64xf32, #tpu.memory_space<vmem>>, %arg8: memref<1x64xf32, #tpu.memory_space<vmem>>, %arg9: memref<1x32xf32, #tpu.memory_space<vmem>>, %arg10: memref<1x64xf32, #tpu.memory_space<vmem>>, %arg11: memref<1x18x64xf32, #tpu.memory_space<vmem>>) attributes {dimension_semantics = [#tpu.dimension_semantics<parallel>], iteration_bounds = array<i64: 2>, scalar_prefetch = 0 : i64, scratch_operands = 0 : i64, tpu.core_type = #tpu.core_type<tc>, window_params = [{transform_indices = @transform_0, window_bounds = array<i64: 1, 18, 64>}, {pipeline_mode = #tpu.pipeline_mode<synchronous>, transform_indices = @transform_1, window_bounds = array<i64: 18, 1>}, {pipeline_mode = #tpu.pipeline_mode<synchronous>, transform_indices = @transform_2, window_bounds = array<i64: 18, 18>}, {pipeline_mode = #tpu.pipeline_mode<synchronous>, transform_indices = @transform_3, window_bounds = array<i64: 18, 18>}, {pipeline_mode = #tpu.pipeline_mode<synchronous>, transform_indices = @transform_4, window_bounds = array<i64: 3, 64, 64>}, {pipeline_mode = #tpu.pipeline_mode<synchronous>, transform_indices = @transform_5, window_bounds = array<i64: 3, 64, 32>}, {pipeline_mode = #tpu.pipeline_mode<synchronous>, transform_indices = @transform_6, window_bounds = array<i64: 3, 32, 64>}, {pipeline_mode = #tpu.pipeline_mode<synchronous>, transform_indices = @transform_7, window_bounds = array<i64: 1, 64>}, {pipeline_mode = #tpu.pipeline_mode<synchronous>, transform_indices = @transform_8, window_bounds = array<i64: 1, 32>}, {pipeline_mode = #tpu.pipeline_mode<synchronous>, transform_indices = @transform_9, window_bounds = array<i64: 1, 64>}, {transform_indices = @transform_10, window_bounds = array<i64: 1, 18, 64>}]} {
    %c0 = arith.constant 0 : index
    %c0_0 = arith.constant 0 : index
    %c0_1 = arith.constant 0 : index
    %0 = vector.load %arg1[%c0, %c0_0, %c0_1] : memref<1x18x64xf32, #tpu.memory_space<vmem>>, vector<1x18x64xf32>
    %1 = vector.shape_cast %0 : vector<1x18x64xf32> to vector<18x64xf32>
    %c0_2 = arith.constant 0 : index
    %c0_3 = arith.constant 0 : index
    %2 = vector.load %arg2[%c0_2, %c0_3] : memref<18x1xf32, #tpu.memory_space<vmem>>, vector<18x1xf32>
    %c0_4 = arith.constant 0 : index
    %c0_5 = arith.constant 0 : index
    %3 = vector.load %arg3[%c0_4, %c0_5] : memref<18x18xf32, #tpu.memory_space<vmem>>, vector<18x18xf32>
    %c0_6 = arith.constant 0 : index
    %c0_7 = arith.constant 0 : index
    %4 = vector.load %arg4[%c0_6, %c0_7] : memref<18x18xf32, #tpu.memory_space<vmem>>, vector<18x18xf32>
    %c0_8 = arith.constant 0 : index
    %c0_9 = arith.constant 0 : index
    %c0_10 = arith.constant 0 : index
    %5 = vector.load %arg5[%c0_8, %c0_9, %c0_10] : memref<3x64x64xf32, #tpu.memory_space<vmem>>, vector<1x64x64xf32>
    %6 = vector.shape_cast %5 : vector<1x64x64xf32> to vector<64x64xf32>
    %cst = arith.constant dense<0.000000e+00> : vector<18x64xf32>
    %7 = tpu.matmul %1, %6, %cst {dimension_numbers = #tpu.dot_dimension_numbers<[1], [0], [0], [1], [0, 0, 1, 1], [], []>, precision = #tpu.contract_precision<fp32>} : vector<18x64xf32>, vector<64x64xf32>, vector<18x64xf32> -> vector<18x64xf32>
    %c1 = arith.constant 1 : index
    %c0_11 = arith.constant 0 : index
    %c0_12 = arith.constant 0 : index
    %8 = vector.load %arg5[%c1, %c0_11, %c0_12] : memref<3x64x64xf32, #tpu.memory_space<vmem>>, vector<1x64x64xf32>
    %9 = vector.shape_cast %8 : vector<1x64x64xf32> to vector<64x64xf32>
    %cst_13 = arith.constant dense<0.000000e+00> : vector<18x64xf32>
    %10 = tpu.matmul %1, %9, %cst_13 {dimension_numbers = #tpu.dot_dimension_numbers<[1], [0], [0], [1], [0, 0, 1, 1], [], []>, precision = #tpu.contract_precision<fp32>} : vector<18x64xf32>, vector<64x64xf32>, vector<18x64xf32> -> vector<18x64xf32>
    %c2 = arith.constant 2 : index
    %c0_14 = arith.constant 0 : index
    %c0_15 = arith.constant 0 : index
    %11 = vector.load %arg5[%c2, %c0_14, %c0_15] : memref<3x64x64xf32, #tpu.memory_space<vmem>>, vector<1x64x64xf32>
    %12 = vector.shape_cast %11 : vector<1x64x64xf32> to vector<64x64xf32>
    %cst_16 = arith.constant dense<0.000000e+00> : vector<18x64xf32>
    %13 = tpu.matmul %1, %12, %cst_16 {dimension_numbers = #tpu.dot_dimension_numbers<[1], [0], [0], [1], [0, 0, 1, 1], [], []>, precision = #tpu.contract_precision<fp32>} : vector<18x64xf32>, vector<64x64xf32>, vector<18x64xf32> -> vector<18x64xf32>
    %cst_17 = arith.constant dense<0.000000e+00> : vector<18x64xf32>
    %14 = tpu.matmul %3, %7, %cst_17 {dimension_numbers = #tpu.dot_dimension_numbers<[1], [0], [0], [1], [0, 0, 1, 1], [], []>, precision = #tpu.contract_precision<fp32>} : vector<18x18xf32>, vector<18x64xf32>, vector<18x64xf32> -> vector<18x64xf32>
    %15 = arith.addf %14, %10 : vector<18x64xf32>
    %cst_18 = arith.constant dense<0.000000e+00> : vector<18x64xf32>
    %16 = tpu.matmul %4, %13, %cst_18 {dimension_numbers = #tpu.dot_dimension_numbers<[1], [0], [0], [1], [0, 0, 1, 1], [], []>, precision = #tpu.contract_precision<fp32>} : vector<18x18xf32>, vector<18x64xf32>, vector<18x64xf32> -> vector<18x64xf32>
    %17 = arith.addf %15, %16 : vector<18x64xf32>
    %c0_19 = arith.constant 0 : index
    %c0_20 = arith.constant 0 : index
    %18 = vector.load %arg8[%c0_19, %c0_20] : memref<1x64xf32, #tpu.memory_space<vmem>>, vector<1x64xf32>
    %19 = vector.broadcast %18 : vector<1x64xf32> to vector<18x64xf32>
    %20 = arith.addf %17, %19 : vector<18x64xf32>
    %cst_21 = arith.constant 0.000000e+00 : f32
    %21 = vector.broadcast %cst_21 : f32 to vector<18x64xf32>
    %22 = arith.cmpf ogt, %20, %21 : vector<18x64xf32>
    %cst_22 = arith.constant 2.000000e-01 : f32
    %23 = vector.broadcast %cst_22 : f32 to vector<18x64xf32>
    %24 = arith.mulf %23, %20 : vector<18x64xf32>
    %25 = arith.select %22, %20, %24 : vector<18x64xi1>, vector<18x64xf32>
    %26 = vector.broadcast %2 : vector<18x1xf32> to vector<18x64xf32>
    %27 = arith.mulf %25, %26 : vector<18x64xf32>
    %c0_23 = arith.constant 0 : index
    %c0_24 = arith.constant 0 : index
    %c0_25 = arith.constant 0 : index
    %28 = vector.load %arg6[%c0_23, %c0_24, %c0_25] : memref<3x64x32xf32, #tpu.memory_space<vmem>>, vector<1x64x32xf32>
    %29 = vector.shape_cast %28 : vector<1x64x32xf32> to vector<64x32xf32>
    %cst_26 = arith.constant dense<0.000000e+00> : vector<18x32xf32>
    %30 = tpu.matmul %27, %29, %cst_26 {dimension_numbers = #tpu.dot_dimension_numbers<[1], [0], [0], [1], [0, 0, 1, 1], [], []>, precision = #tpu.contract_precision<fp32>} : vector<18x64xf32>, vector<64x32xf32>, vector<18x32xf32> -> vector<18x32xf32>
    %c1_27 = arith.constant 1 : index
    %c0_28 = arith.constant 0 : index
    %c0_29 = arith.constant 0 : index
    %31 = vector.load %arg6[%c1_27, %c0_28, %c0_29] : memref<3x64x32xf32, #tpu.memory_space<vmem>>, vector<1x64x32xf32>
    %32 = vector.shape_cast %31 : vector<1x64x32xf32> to vector<64x32xf32>
    %cst_30 = arith.constant dense<0.000000e+00> : vector<18x32xf32>
    %33 = tpu.matmul %27, %32, %cst_30 {dimension_numbers = #tpu.dot_dimension_numbers<[1], [0], [0], [1], [0, 0, 1, 1], [], []>, precision = #tpu.contract_precision<fp32>} : vector<18x64xf32>, vector<64x32xf32>, vector<18x32xf32> -> vector<18x32xf32>
    %c2_31 = arith.constant 2 : index
    %c0_32 = arith.constant 0 : index
    %c0_33 = arith.constant 0 : index
    %34 = vector.load %arg6[%c2_31, %c0_32, %c0_33] : memref<3x64x32xf32, #tpu.memory_space<vmem>>, vector<1x64x32xf32>
    %35 = vector.shape_cast %34 : vector<1x64x32xf32> to vector<64x32xf32>
    %cst_34 = arith.constant dense<0.000000e+00> : vector<18x32xf32>
    %36 = tpu.matmul %27, %35, %cst_34 {dimension_numbers = #tpu.dot_dimension_numbers<[1], [0], [0], [1], [0, 0, 1, 1], [], []>, precision = #tpu.contract_precision<fp32>} : vector<18x64xf32>, vector<64x32xf32>, vector<18x32xf32> -> vector<18x32xf32>
    %cst_35 = arith.constant dense<0.000000e+00> : vector<18x32xf32>
    %37 = tpu.matmul %3, %30, %cst_35 {dimension_numbers = #tpu.dot_dimension_numbers<[1], [0], [0], [1], [0, 0, 1, 1], [], []>, precision = #tpu.contract_precision<fp32>} : vector<18x18xf32>, vector<18x32xf32>, vector<18x32xf32> -> vector<18x32xf32>
    %38 = arith.addf %37, %33 : vector<18x32xf32>
    %cst_36 = arith.constant dense<0.000000e+00> : vector<18x32xf32>
    %39 = tpu.matmul %4, %36, %cst_36 {dimension_numbers = #tpu.dot_dimension_numbers<[1], [0], [0], [1], [0, 0, 1, 1], [], []>, precision = #tpu.contract_precision<fp32>} : vector<18x18xf32>, vector<18x32xf32>, vector<18x32xf32> -> vector<18x32xf32>
    %40 = arith.addf %38, %39 : vector<18x32xf32>
    %c0_37 = arith.constant 0 : index
    %c0_38 = arith.constant 0 : index
    %41 = vector.load %arg9[%c0_37, %c0_38] : memref<1x32xf32, #tpu.memory_space<vmem>>, vector<1x32xf32>
    %42 = vector.broadcast %41 : vector<1x32xf32> to vector<18x32xf32>
    %43 = arith.addf %40, %42 : vector<18x32xf32>
    %cst_39 = arith.constant 0.000000e+00 : f32
    %44 = vector.broadcast %cst_39 : f32 to vector<18x32xf32>
    %45 = arith.cmpf ogt, %43, %44 : vector<18x32xf32>
    %cst_40 = arith.constant 2.000000e-01 : f32
    %46 = vector.broadcast %cst_40 : f32 to vector<18x32xf32>
    %47 = arith.mulf %46, %43 : vector<18x32xf32>
    %48 = arith.select %45, %43, %47 : vector<18x32xi1>, vector<18x32xf32>
    %49 = vector.broadcast %2 : vector<18x1xf32> to vector<18x32xf32>
    %50 = arith.mulf %48, %49 : vector<18x32xf32>
    %c0_41 = arith.constant 0 : index
    %c0_42 = arith.constant 0 : index
    %c0_43 = arith.constant 0 : index
    %51 = vector.load %arg7[%c0_41, %c0_42, %c0_43] : memref<3x32x64xf32, #tpu.memory_space<vmem>>, vector<1x32x64xf32>
    %52 = vector.shape_cast %51 : vector<1x32x64xf32> to vector<32x64xf32>
    %cst_44 = arith.constant dense<0.000000e+00> : vector<18x64xf32>
    %53 = tpu.matmul %50, %52, %cst_44 {dimension_numbers = #tpu.dot_dimension_numbers<[1], [0], [0], [1], [0, 0, 1, 1], [], []>, precision = #tpu.contract_precision<fp32>} : vector<18x32xf32>, vector<32x64xf32>, vector<18x64xf32> -> vector<18x64xf32>
    %c1_45 = arith.constant 1 : index
    %c0_46 = arith.constant 0 : index
    %c0_47 = arith.constant 0 : index
    %54 = vector.load %arg7[%c1_45, %c0_46, %c0_47] : memref<3x32x64xf32, #tpu.memory_space<vmem>>, vector<1x32x64xf32>
    %55 = vector.shape_cast %54 : vector<1x32x64xf32> to vector<32x64xf32>
    %cst_48 = arith.constant dense<0.000000e+00> : vector<18x64xf32>
    %56 = tpu.matmul %50, %55, %cst_48 {dimension_numbers = #tpu.dot_dimension_numbers<[1], [0], [0], [1], [0, 0, 1, 1], [], []>, precision = #tpu.contract_precision<fp32>} : vector<18x32xf32>, vector<32x64xf32>, vector<18x64xf32> -> vector<18x64xf32>
    %c2_49 = arith.constant 2 : index
    %c0_50 = arith.constant 0 : index
    %c0_51 = arith.constant 0 : index
    %57 = vector.load %arg7[%c2_49, %c0_50, %c0_51] : memref<3x32x64xf32, #tpu.memory_space<vmem>>, vector<1x32x64xf32>
    %58 = vector.shape_cast %57 : vector<1x32x64xf32> to vector<32x64xf32>
    %cst_52 = arith.constant dense<0.000000e+00> : vector<18x64xf32>
    %59 = tpu.matmul %50, %58, %cst_52 {dimension_numbers = #tpu.dot_dimension_numbers<[1], [0], [0], [1], [0, 0, 1, 1], [], []>, precision = #tpu.contract_precision<fp32>} : vector<18x32xf32>, vector<32x64xf32>, vector<18x64xf32> -> vector<18x64xf32>
    %cst_53 = arith.constant dense<0.000000e+00> : vector<18x64xf32>
    %60 = tpu.matmul %3, %53, %cst_53 {dimension_numbers = #tpu.dot_dimension_numbers<[1], [0], [0], [1], [0, 0, 1, 1], [], []>, precision = #tpu.contract_precision<fp32>} : vector<18x18xf32>, vector<18x64xf32>, vector<18x64xf32> -> vector<18x64xf32>
    %61 = arith.addf %60, %56 : vector<18x64xf32>
    %cst_54 = arith.constant dense<0.000000e+00> : vector<18x64xf32>
    %62 = tpu.matmul %4, %59, %cst_54 {dimension_numbers = #tpu.dot_dimension_numbers<[1], [0], [0], [1], [0, 0, 1, 1], [], []>, precision = #tpu.contract_precision<fp32>} : vector<18x18xf32>, vector<18x64xf32>, vector<18x64xf32> -> vector<18x64xf32>
    %63 = arith.addf %61, %62 : vector<18x64xf32>
    %c0_55 = arith.constant 0 : index
    %c0_56 = arith.constant 0 : index
    %64 = vector.load %arg10[%c0_55, %c0_56] : memref<1x64xf32, #tpu.memory_space<vmem>>, vector<1x64xf32>
    %65 = vector.broadcast %64 : vector<1x64xf32> to vector<18x64xf32>
    %66 = arith.addf %63, %65 : vector<18x64xf32>
    %cst_57 = arith.constant 0.000000e+00 : f32
    %67 = vector.broadcast %cst_57 : f32 to vector<18x64xf32>
    %68 = arith.cmpf ogt, %66, %67 : vector<18x64xf32>
    %cst_58 = arith.constant 2.000000e-01 : f32
    %69 = vector.broadcast %cst_58 : f32 to vector<18x64xf32>
    %70 = arith.mulf %69, %66 : vector<18x64xf32>
    %71 = arith.select %68, %66, %70 : vector<18x64xi1>, vector<18x64xf32>
    %72 = vector.broadcast %2 : vector<18x1xf32> to vector<18x64xf32>
    %73 = arith.mulf %71, %72 : vector<18x64xf32>
    %74 = arith.addf %1, %73 : vector<18x64xf32>
    %c0_59 = arith.constant 0 : index
    %c0_60 = arith.constant 0 : index
    %c0_61 = arith.constant 0 : index
    %75 = vector.load %arg11[%c0_59, %c0_60, %c0_61] : memref<1x18x64xf32, #tpu.memory_space<vmem>>, vector<1x18x64xf32>
    %76 = vector.shape_cast %75 : vector<1x18x64xf32> to vector<18x64xf32>
    %77 = vector.shape_cast %74 : vector<18x64xf32> to vector<1x18x64xf32>
    tpu.vector_store %arg11[%c0_59, %c0_60, %c0_61], %77 {strides = array<i32>} : memref<1x18x64xf32, #tpu.memory_space<vmem>>, vector<1x18x64xf32>,
    return
  }
  func.func @transform_0(%arg0: i32) -> (i32, i32, i32) {
    %c0_i32 = arith.constant 0 : i32
    %c0_i32_0 = arith.constant 0 : i32
    %c0_i32_1 = arith.constant 0 : i32
    return %arg0, %c0_i32, %c0_i32_0 : i32, i32, i32
  }
  func.func @transform_1(%arg0: i32) -> (i32, i32) {
    %c0_i32 = arith.constant 0 : i32
    %c0_i32_0 = arith.constant 0 : i32
    %c0_i32_1 = arith.constant 0 : i32
    return %c0_i32, %c0_i32_0 : i32, i32
  }
  func.func @transform_2(%arg0: i32) -> (i32, i32) {
    %c0_i32 = arith.constant 0 : i32
    %c0_i32_0 = arith.constant 0 : i32
    %c0_i32_1 = arith.constant 0 : i32
    return %c0_i32, %c0_i32_0 : i32, i32
  }
  func.func @transform_3(%arg0: i32) -> (i32, i32) {
    %c0_i32 = arith.constant 0 : i32
    %c0_i32_0 = arith.constant 0 : i32
    %c0_i32_1 = arith.constant 0 : i32
    return %c0_i32, %c0_i32_0 : i32, i32
  }
  func.func @transform_4(%arg0: i32) -> (i32, i32, i32) {
    %c0_i32 = arith.constant 0 : i32
    %c0_i32_0 = arith.constant 0 : i32
    %c0_i32_1 = arith.constant 0 : i32
    %c0_i32_2 = arith.constant 0 : i32
    return %c0_i32, %c0_i32_0, %c0_i32_1 : i32, i32, i32
  }
  func.func @transform_5(%arg0: i32) -> (i32, i32, i32) {
    %c0_i32 = arith.constant 0 : i32
    %c0_i32_0 = arith.constant 0 : i32
    %c0_i32_1 = arith.constant 0 : i32
    %c0_i32_2 = arith.constant 0 : i32
    return %c0_i32, %c0_i32_0, %c0_i32_1 : i32, i32, i32
  }
  func.func @transform_6(%arg0: i32) -> (i32, i32, i32) {
    %c0_i32 = arith.constant 0 : i32
    %c0_i32_0 = arith.constant 0 : i32
    %c0_i32_1 = arith.constant 0 : i32
    %c0_i32_2 = arith.constant 0 : i32
    return %c0_i32, %c0_i32_0, %c0_i32_1 : i32, i32, i32
  }
  func.func @transform_7(%arg0: i32) -> (i32, i32) {
    %c0_i32 = arith.constant 0 : i32
    %c0_i32_0 = arith.constant 0 : i32
    %c0_i32_1 = arith.constant 0 : i32
    return %c0_i32, %c0_i32_0 : i32, i32
  }
  func.func @transform_8(%arg0: i32) -> (i32, i32) {
    %c0_i32 = arith.constant 0 : i32
    %c0_i32_0 = arith.constant 0 : i32
    %c0_i32_1 = arith.constant 0 : i32
    return %c0_i32, %c0_i32_0 : i32, i32
  }
  func.func @transform_9(%arg0: i32) -> (i32, i32) {
    %c0_i32 = arith.constant 0 : i32
    %c0_i32_0 = arith.constant 0 : i32
    %c0_i32_1 = arith.constant 0 : i32
    return %c0_i32, %c0_i32_0 : i32, i32
  }
  func.func @transform_10(%arg0: i32) -> (i32, i32, i32) {
    %c0_i32 = arith.constant 0 : i32
    %c0_i32_0 = arith.constant 0 : i32
    %c0_i32_1 = arith.constant 0 : i32
    return %arg0, %c0_i32, %c0_i32_0 : i32, i32, i32
  }
}

</mosaic_0001>

<bundles_post_ra>
// kernel: tpu_custom_call.1
= control target key start
LH: loop header
LB: loop body
LE: loop exit
PB: predicated region body
PF: predicated region fallthrough
CT: control target
= control target key end

     0   :  { %15 = vsyncpa [#allocation3], 0  ;;  %s15091_s0 = inlined_call_operand.vmem [shape: f32[2,18,64], index: 0, kind: input, shape index: {}]   ;;  %s15092_s1 = inlined_call_operand.vmem [shape: f32[18,1], index: 1, kind: input, shape index: {}]   ;;  %s15093_s2 = inlined_call_operand.hbm [shape: f32[18,18], index: 2, kind: input, shape index: {}]   ;;  %s15094_s3 = inlined_call_operand.hbm [shape: f32[18,18], index: 3, kind: input, shape index: {}]   ;;  %s15095_s4 = inlined_call_operand.vmem [shape: f32[3,64,64], index: 4, kind: input, shape index: {}]   ;;  %s15096_s5 = inlined_call_operand.vmem [shape: f32[3,64,32], index: 5, kind: input, shape index: {}]   ;;  %s15097_s6 = inlined_call_operand.vmem [shape: f32[3,32,64], index: 6, kind: input, shape index: {}]   ;;  %s15098_s7 = inlined_call_operand.vmem [shape: f32[1,64], index: 7, kind: input, shape index: {}]   ;;  %s15099_s8 = inlined_call_operand.vmem [shape: f32[1,32], index: 8, kind: input, shape index: {}]   ;;  %s15100_s9 = inlined_call_operand.vmem [shape: f32[1,64], index: 9, kind: input, shape index: {}]   ;;  %s15101_s10 = inlined_call_operand.vmem [shape: f32[2,18,64], index: 10, kind: output, shape index: {}]  }
   0x1   :  { %16 = vsyncpa [#allocation5], 0  ;;  %s12218_s13 = smov 0  }
   0x2 LB: > { %s12224_s14 = sadd.s32 4294967295, %s12154_s13   ;;  %p9510_p0 = scmp.ge.s32.totalorder %s12154_s13, 1  ;;  %s12154_s13 = sphi %s12218_s13, %s22_s13  }
   0x3   : > { %p268_p1 = scmp.lt.s32.totalorder %s12154_s13, 3  ;;  %s12156_s15 = smov [#allocation2]  }
   0x4   : > { %s283_s16 = sshll.u32 %s12156_s15, 4  ;;  %p12064_p3 = scmp.eq.s32.totalorder %s12224_s14, 0  ;;  %s284_s16 = int_to_ptr.vmem [resolvable:$true] %s283_s16 }
   0x5   : > { %p12228_p2 = pnand %p9510_p0, %p268_p1  ;;  %s12157_s18 = smov [#allocation4]  }
   0x6   : > { %s296_s19 = sshll.u32 %s12157_s18, 4  ;;  %s12099_s21 = scalar_lea.vmem %s284_s16, 384  ;;  %s297_s19 = int_to_ptr.vmem [resolvable:$true] %s296_s19 }
   0x7   : > { %p12057_p4 = pneg %p12228_p2  ;;  %p12100_p7 = scmp.ne.s32.totalorder %s284_s16, %s12099_s21 }
   0x8   : > { %p12107_p10 = scmp.lt.s32.totalorder %s284_s16, %s284_s16  ;;  %p12108_p11 = scmp.lt.s32.totalorder %s12099_s21, %s12099_s21 }
   0x9   : > { %p12237_p5 = pnand %p12064_p3, %p12057_p4 }
   0xa   : > { %p12109_p12 = por %p12108_p11, %p12107_p10 }
   0xb   : > { %p12090_p6 = pneg %p12237_p5 }
   0xd   : > { %p12102_p8 = pnand %p12100_p7, %p12090_p6 }
   0xf   : > { %p12103_p9 = pneg %p12102_p8 }
  0x11   : > { %p12110_p13 = pnand %p12109_p12, %p12103_p9 }
  0x13   : > { %12113 = shalt.err (!%p12110_p13)
}
  0x14   : > { %s12158_s22 = smov 128   ;;  %s12159_s23 = smov 8  }
  0x15   : > { %12060 = dma.hbm_to_vmem [thread:$0]  (!%p12237_p5), %s15093_s2, 384, %s284_s16, [#allocation3], %s12158_s22, %s12158_s22, %s12159_s23  }
  0x16   : > { %s12125_s26 = scalar_lea.vmem %s297_s19, 384  ;;  %p12133_p7 = scmp.lt.s32.totalorder %s297_s19, %s297_s19 }
  0x17   : > { %p12126_p0 = scmp.ne.s32.totalorder %s297_s19, %s12125_s26  ;;  %p12134_p8 = scmp.lt.s32.totalorder %s12125_s26, %s12125_s26 }
  0x19   : > { %p12128_p1 = pnand %p12126_p0, %p12090_p6  ;;  %p12135_p10 = por %p12134_p8, %p12133_p7 }
  0x1b   : > { %p12129_p4 = pneg %p12128_p1 }
  0x1d   : > { %p12136_p9 = pnand %p12135_p10, %p12129_p4 }
  0x1f   : > { %12139 = shalt.err (!%p12136_p9)
}
  0x20   : > { %12063 = dma.hbm_to_vmem [thread:$0]  (!%p12237_p5), %s15094_s3, 384, %s297_s19, [#allocation5], %s12158_s22, %s12158_s22, %s12159_s23  }
  0x21   : > { %338 = sbr.rel (%p12228_p2) target bundleno = 1905 (0x771), region = 60 }
  0x26   : > { %12145 = dma.done.wait (%p12064_p3), [#allocation3], 384  }
  0x27   : > { %12147 = vsyncadd (%p12064_p3), [#allocation3], 4294966912 }
  0x28   : > { %12149 = dma.done.wait (%p12064_p3), [#allocation5], 384  }
  0x29   : > { %12151 = vsyncadd (%p12064_p3), [#allocation5], 4294966912  ;;  %p380_p6 = scmp.lt.s32.totalorder %s12224_s14, 1  ;;  %v15110_v0 = vmov 0.0   ;;  %vm12161_vm0 = vmmov 0   ;;  %v409_v1 = vld [vmem:[%s15095_s4 + $0x38] sm:$0xff] }
  0x2a   : > { %10302 = vmatprep.subr.mxu0 %v15110_v0  ;;  %10327 = vmatprep.subr.mxu1 %v15110_v0  ;;  %v408_v2 = vld [vmem:[%s15095_s4 + $0x30] sm:$0xff]  ;;  %v407_v3 = vld [vmem:[%s15095_s4 + $0x28] sm:$0xff]  ;;  %vm410_vm1 = vcmask 523264   ;;  %v12296_v4 = vand.u32 4294901760, %v409_v1  ;;  %v406_v7 = vld [vmem:[%s15095_s4 + $0x20] sm:$0xff]  ;;  %vm2307_vm2 = vcmask 146432  }
  0x2b   : > { %10318 = vmatprep.mubr.msk.f32.mxu0 %vm12161_vm0, %v15110_v0  ;;  %s15177_s14 = smov (!%p380_p6, %s12224_s14), 1  ;;  %10343 = vmatprep.mubr.msk.f32.mxu1 %vm12161_vm0, %v15110_v0  ;;  %v12298_v5 = vand.u32 4294901760, %v408_v2  ;;  %v12300_v6 = vand.u32 4294901760, %v407_v3  ;;  %v405_v8 = vld [vmem:[%s15095_s4 + $0x18] sm:$0xff]  ;;  %v404_v9 = vld [vmem:[%s15095_s4 + $0x10] sm:$0xff]  ;;  %v12311_v10 = vand.u32 4294901760, %v406_v7 }
  0x2c   : > { %s12048_s29 = smul.u32 24, %s15177_s14  ;;  %v12313_v11 = vand.u32 4294901760, %v405_v8  ;;  %v12315_v12 = vand.u32 4294901760, %v404_v9  ;;  %v403_v13 = vld [vmem:[%s15095_s4 + $0x8] sm:$0xff]  ;;  %v402_v14 = vld [vmem:[%s15095_s4] sm:$0xff]  ;;  %10303 = vmatpush3.msra.mxu0 %v12296_v4  ;;  %v12326_v16 = vsub.f32 %v409_v1, %v12296_v4  ;;  %vm2317_vm3 = vcmask 1041408  }
  0x2d   : > { %v12329_v17 = vsub.f32 %v408_v2, %v12298_v5  ;;  %v12331_v18 = vand.u32 4294901760, %v403_v13  ;;  %v12334_v19 = vsub.f32 %v407_v3, %v12300_v6  ;;  %10304 = vmatprep.subr.mxu0 %v15110_v0  ;;  %v12337_v20 = vand.u32 4294901760, %v402_v14 }
  0x2e   : > { %s12285_s12 = scalar_lea.vmem %s15091_s0, %s12048_s29  ;;  %v12340_v21 = vsub.f32 %v406_v7, %v12311_v10  ;;  %v12344_v23 = vsub.f32 %v405_v8, %v12313_v11  ;;  %10305 = vmatpush3.msra.mxu0 %v12298_v5  ;;  %v542_v24 = vand.u32 4294901760, %v12326_v16  ;;  %v12356_v30 = vsub.f32 %v404_v9, %v12315_v12  ;;  %s389_s21 = scalar_lea.vmem %s15101_s10, %s12048_s29 }
  0x2f   : > { %v390_v15 = vld [vmem:[%s12285_s12] sm:$0xff]  ;;  %v549_v25 = vand.u32 4294901760, %v12329_v17  ;;  %v556_v26 = vand.u32 4294901760, %v12334_v19  ;;  %10306 = vmatprep.subr.mxu0 %v15110_v0  ;;  %v12359_v31 = vsub.f32 %v403_v13, %v12331_v18  ;;  %v391_v37 = vld [vmem:[%s12285_s12 + $0x8] sm:$0xff]  ;;  %v392_v38 = vld [vmem:[%s12285_s12 + $0x10] sm:$0x3]  ;;  %v12394_v47 = vsub.f32 %v402_v14, %v12337_v20 }
  0x30   : > { %v412_v22 = vsel %vm410_vm1, %v390_v15, 0  ;;  %v563_v28 = vand.u32 4294901760, %v12340_v21  ;;  %v570_v29 = vand.u32 4294901760, %v12344_v23  ;;  %10307 = vmatpush3.msra.mxu0 %v12300_v6  ;;  %v543_v32 = vsub.f32 %v12326_v16, %v542_v24  ;;  %v9526_v13 = vld [vmem:[%s15095_s4 + $0x78] sm:$0xff]  ;;  %v9525_v15 = vld [vmem:[%s15095_s4 + $0x70] sm:$0xff] }
  0x31   : > { %v12350_v27 = vand.u32 4294901760, %v412_v22  ;;  %v550_v33 = vsub.f32 %v12329_v17, %v549_v25  ;;  %v557_v34 = vsub.f32 %v12334_v19, %v556_v26  ;;  %10308 = vmatprep.subr.mxu0 %v15110_v0  ;;  %v577_v42 = vand.u32 4294901760, %v12356_v30 }
  0x32   : > { %v564_v36 = vsub.f32 %v12340_v21, %v563_v28  ;;  %10309 = vmatpush3.msra.mxu0 %v12311_v10  ;;  %v544_v39 = vand.u32 4294901760, %v543_v32  ;;  %v571_v44 = vsub.f32 %v12344_v23, %v570_v29  ;;  %v584_v45 = vand.u32 4294901760, %v12359_v31 }
  0x33   : > { %v12372_v35 = vsub.f32 %v412_v22, %v12350_v27  ;;  %v551_v40 = vand.u32 4294901760, %v550_v33  ;;  %10310 = vmatprep.subr.mxu0 %v15110_v0  ;;  %v558_v43 = vand.u32 4294901760, %v557_v34  ;;  %v415_v48 = vsel %vm410_vm1, %v391_v37, 0  ;;  %v9522_v22 = vld [vmem:[%s15095_s4 + $0x58] sm:$0xff] }
  0x34   : > { %10311 = vmatpush3.msra.mxu0 %v12313_v11  ;;  %10328 = vmatpush3.msra.mxu1 %v544_v39  ;;  %v418_v49 = vsel %vm410_vm1, %v392_v38, 0  ;;  %v12400_v50 = vand.u32 4294901760, %v415_v48  ;;  %v565_v52 = vand.u32 4294901760, %v564_v36  ;;  %v578_v53 = vsub.f32 %v12356_v30, %v577_v42 }
  0x35   : > { %v12382_v41 = vand.u32 4294901760, %v12372_v35  ;;  %10312 = vmatprep.subr.mxu0 %v15110_v0  ;;  %10329 = vmatprep.subr.mxu1 %v15110_v0  ;;  %v12402_v51 = vand.u32 4294901760, %v418_v49  ;;  %v591_v54 = vand.u32 4294901760, %v12394_v47  ;;  %v572_v57 = vand.u32 4294901760, %v571_v44 }
  0x36   : > { %10313 = vmatpush3.msra.mxu0 %v12315_v12  ;;  %10330 = vmatpush3.msra.mxu1 %v551_v40  ;;  %v12412_v55 = vsub.f32 %v415_v48, %v12400_v50  ;;  %v585_v58 = vsub.f32 %v12359_v31, %v584_v45  ;;  %v579_v61 = vand.u32 4294901760, %v578_v53  ;;  %v12531_v14 = vand.u32 4294901760, %v9526_v13 }
  0x37   : > { %v496_v46 = vsub.f32 %v12372_v35, %v12382_v41  ;;  %10314 = vmatprep.subr.mxu0 %v15110_v0  ;;  %10331 = vmatprep.subr.mxu1 %v15110_v0  ;;  %v12426_v60 = vsub.f32 %v418_v49, %v12402_v51  ;;  %v592_v62 = vsub.f32 %v12394_v47, %v591_v54  ;;  %vm6544_vm8 = vcmask 261120  }
  0x38   : > { %10315 = vmatpush3.msra.mxu0 %v12331_v18  ;;  %10332 = vmatpush3.msra.mxu1 %v558_v43  ;;  %v12423_v59 = vand.u32 4294901760, %v12412_v55  ;;  %v586_v63 = vand.u32 4294901760, %v585_v58  ;;  %vm9429_vm14 = vcmask 517120  }
  0x39   : > { %v12415_v56 = vand.u32 4294901760, %v496_v46  ;;  %10316 = vmatprep.subr.mxu0 %v15110_v0  ;;  %10333 = vmatprep.subr.mxu1 %v15110_v0  ;;  %v12440_v2 = vand.u32 4294901760, %v12426_v60  ;;  %v593_v3 = vand.u32 4294901760, %v592_v62 }
  0x3a   : > { %10317 = vmatpush3.msra.mxu0 %v12337_v20  ;;  %10334 = vmatpush3.msra.mxu1 %v565_v52  ;;  %v506_v1 = vsub.f32 %v12412_v55, %v12423_v59 }
  0x3b   : > { %10335 = vmatprep.subr.mxu1 %v15110_v0  ;;  %10352 = vmatprep.subr.mxu0 %v15110_v0  ;;  %v516_v8 = vsub.f32 %v12426_v60, %v12440_v2 }
  0x3c   : > { %10319 = vmatmul.mubr.f32.vlgmr.msra.gmra.mxu0 %v12415_v56  ;;  %10336 = vmatpush3.msra.mxu1 %v572_v57  ;;  %v12446_v7 = vand.u32 4294901760, %v506_v1  ;;  %v9534_v1 = vld [vmem:[%s15095_s4 + $0xb8] sm:$0xff] }
  0x3d   : > { %10353 = vmatpush3.msra.mxu0 %v12326_v16  ;;  %10337 = vmatprep.subr.mxu1 %v15110_v0  ;;  %v12460_v9 = vand.u32 4294901760, %v516_v8  ;;  %v12546_v16 = vand.u32 4294901760, %v9525_v15  ;;  %v9533_v8 = vld [vmem:[%s15095_s4 + $0xb0] sm:$0xff] }
  0x3e   : > { %10354 = vmatprep.subr.mxu0 %v15110_v0  ;;  %10338 = vmatpush3.msra.mxu1 %v579_v61 }
  0x3f   : > { %10355 = vmatpush3.msra.mxu0 %v12329_v17  ;;  %10339 = vmatprep.subr.mxu1 %v15110_v0 }
  0x40   : > { %10356 = vmatprep.subr.mxu0 %v15110_v0  ;;  %10340 = vmatpush3.msra.mxu1 %v586_v63 }
  0x41   : > { %10357 = vmatpush3.msra.mxu0 %v12334_v19  ;;  %10341 = vmatprep.subr.mxu1 %v15110_v0  ;;  %v12568_v19 = vsub.f32 %v9525_v15, %v12546_v16 }
  0x42   : > { %10358 = vmatprep.subr.mxu0 %v15110_v0  ;;  %10321 = vmatprep.mubr.msk.f32.mxu0 %vm12161_vm0, %v15110_v0 }
  0x43   : > { %10342 = vmatpush3.msra.mxu1 %v593_v3  ;;  %10359 = vmatpush3.msra.mxu0 %v12340_v21  ;;  %v12777_v3 = vand.u32 4294901760, %v9534_v1 }
  0x44   : > { %10322 = vmatmul.mubr.f32.gmra.mxu0 %v12446_v7  ;;  %10344 = vmatmul.mubr.f32.vlgmr.msra.gmra.mxu1 %v12350_v27 }
  0x45   : > { %10360 = vmatprep.subr.mxu0 %v15110_v0  ;;  %10377 = vmatprep.subr.mxu1 %v15110_v0  ;;  %v12797_v15 = vsub.f32 %v9534_v1, %v12777_v3 }
  0x46   : > { %10361 = vmatpush3.msra.mxu0 %v12344_v23  ;;  %10378 = vmatpush3.msra.mxu1 %v12296_v4 }
  0x47   : > { %10362 = vmatprep.subr.mxu0 %v15110_v0  ;;  %10379 = vmatprep.subr.mxu1 %v15110_v0 }
  0x48   : > { %10324 = vmatprep.mubr.msk.f32.mxu0 %vm12161_vm0, %v15110_v0  ;;  %10363 = vmatpush3.msra.mxu0 %v12356_v30 }
  0x49   : > { %10380 = vmatpush3.msra.mxu1 %v12298_v5  ;;  %10325 = vmatmul.mubr.f32.gmra.mxu0 %v12460_v9 }
  0x4a   : > { %10364 = vmatprep.subr.mxu0 %v15110_v0  ;;  %10381 = vmatprep.subr.mxu1 %v15110_v0 }
  0x4b   : > { %10365 = vmatpush3.msra.mxu0 %v12359_v31  ;;  %10382 = vmatpush3.msra.mxu1 %v12300_v6  ;;  %v9519_v31 = vld [vmem:[%s15095_s4 + $0x40] sm:$0xff] }
  0x4c   : > { %10346 = vmatprep.mubr.msk.f32.mxu1 %vm12161_vm0, %v15110_v0  ;;  %10366 = vmatprep.subr.mxu0 %v15110_v0  ;;  %v12638_v39 = vand.u32 4294901760, %v9519_v31 }
  0x4d   : > { %10383 = vmatprep.subr.mxu1 %v15110_v0  ;;  %10347 = vmatmul.mubr.f32.gmra.mxu1 %v12400_v50 }
  0x4e   : > { %10367 = vmatpush3.msra.mxu0 %v12394_v47  ;;  %10368 = vmatprep.mubr.msk.f32.mxu0 %vm12161_vm0, %v15110_v0 }
  0x4f   : > { %10384 = vmatpush3.msra.mxu1 %v12311_v10  ;;  %10369 = vmatmul.mubr.f32.vlgmr.msra.gmra.mxu0 %v12372_v35 }
  0x50   : > { %10385 = vmatprep.subr.mxu1 %v15110_v0  ;;  %10402 = vmatprep.subr.mxu0 %v15110_v0 }
  0x51   : > { %10386 = vmatpush3.msra.mxu1 %v12313_v11  ;;  %10403 = vmatpush3.msra.mxu0 %v542_v24  ;;  %v9521_v24 = vld [vmem:[%s15095_s4 + $0x50] sm:$0xff] }
  0x52   : > { %10349 = vmatprep.mubr.msk.f32.mxu1 %vm12161_vm0, %v15110_v0  ;;  %10387 = vmatprep.subr.mxu1 %v15110_v0 }
  0x53   : > { %10404 = vmatprep.subr.mxu0 %v15110_v0  ;;  %10350 = vmatmul.mubr.f32.gmra.mxu1 %v12402_v51 }
  0x54   : > { %10371 = vmatprep.mubr.msk.f32.mxu0 %vm12161_vm0, %v15110_v0  ;;  %10388 = vmatpush3.msra.mxu1 %v12315_v12 }
  0x55   : > { %10405 = vmatpush3.msra.mxu0 %v549_v25  ;;  %10389 = vmatprep.subr.mxu1 %v15110_v0  ;;  %v12591_v25 = vand.u32 4294901760, %v9522_v22 }
  0x56   : > { %10372 = vmatmul.mubr.f32.gmra.mxu0 %v12412_v55  ;;  %10406 = vmatprep.subr.mxu0 %v15110_v0 }
  0x57   : > { %10390 = vmatpush3.msra.mxu1 %v12331_v18  ;;  %10407 = vmatpush3.msra.mxu0 %v556_v26  ;;  %v12618_v32 = vsub.f32 %v9522_v22, %v12591_v25  ;;  %v9529_v22 = vld [vmem:[%s15095_s4 + $0x90] sm:$0xff] }
  0x58   : > { %10391 = vmatprep.subr.mxu1 %v15110_v0  ;;  %10408 = vmatprep.subr.mxu0 %v15110_v0 }
  0x59   : > { %10374 = vmatprep.mubr.msk.f32.mxu0 %vm12161_vm0, %v15110_v0  ;;  %10392 = vmatpush3.msra.mxu1 %v12337_v20 }
  0x5a   : > { %10393 = vmatprep.mubr.msk.f32.mxu1 %vm12161_vm0, %v15110_v0  ;;  %10409 = vmatpush3.msra.mxu0 %v563_v28 }
  0x5b   : > { %10375 = vmatmul.mubr.f32.gmra.mxu0 %v12426_v60  ;;  %10394 = vmatmul.mubr.f32.vlgmr.msra.gmra.mxu1 %v12382_v41 }
  0x5c   : > { %10410 = vmatprep.subr.mxu0 %v15110_v0  ;;  %10427 = vmatprep.subr.mxu1 %v15110_v0 }
  0x5d   : > { %10411 = vmatpush3.msra.mxu0 %v570_v29  ;;  %10428 = vmatpush3.msra.mxu1 %v12296_v4  ;;  %v9524_v4 = vld [vmem:[%s15095_s4 + $0x68] sm:$0xff] }
  0x5e   : > { %10412 = vmatprep.subr.mxu0 %v15110_v0  ;;  %10429 = vmatprep.subr.mxu1 %v15110_v0  ;;  %v12557_v17 = vand.u32 4294901760, %v9524_v4  ;;  %v9520_v29 = vld [vmem:[%s15095_s4 + $0x48] sm:$0xff] }
  0x5f   : > { %10396 = vmatprep.mubr.msk.f32.mxu1 %vm12161_vm0, %v15110_v0  ;;  %10413 = vmatpush3.msra.mxu0 %v577_v42  ;;  %v12623_v34 = vand.u32 4294901760, %v9520_v29  ;;  %v1202_v42 = vand.u32 4294901760, %v12618_v32 }
  0x60   : > { %10430 = vmatpush3.msra.mxu1 %v12298_v5  ;;  %10414 = vmatprep.subr.mxu0 %v15110_v0  ;;  %v12551_v5 = vsub.f32 %v9526_v13, %v12531_v14  ;;  %v9532_v13 = vld [vmem:[%s15095_s4 + $0xa8] sm:$0xff] }
  0x61   : > { %10397 = vmatmul.mubr.f32.gmra.mxu1 %v12423_v59  ;;  %10431 = vmatprep.subr.mxu1 %v15110_v0  ;;  %v12645_v40 = vsub.f32 %v9520_v29, %v12623_v34  ;;  %v1203_v47 = vsub.f32 %v12618_v32, %v1202_v42  ;;  %v9527_v29 = vld [vmem:[%s15095_s4 + $0x80] sm:$0xff] }
  0x62   : > { %10415 = vmatpush3.msra.mxu0 %v584_v45  ;;  %10432 = vmatpush3.msra.mxu1 %v12300_v6  ;;  %v9523_v6 = vld [vmem:[%s15095_s4 + $0x60] sm:$0xff]  ;;  %v1174_v23 = vand.u32 4294901760, %v12551_v5  ;;  %v12655_v45 = vsub.f32 %v9519_v31, %v12638_v39 }
  0x63   : > { %10416 = vmatprep.subr.mxu0 %v15110_v0  ;;  %10433 = vmatprep.subr.mxu1 %v15110_v0  ;;  %v12572_v21 = vand.u32 4294901760, %v9523_v6  ;;  %v1216_v48 = vand.u32 4294901760, %v12645_v40 }
  0x64   : > { %10399 = vmatprep.mubr.msk.f32.mxu1 %vm12161_vm0, %v15110_v0  ;;  %10417 = vmatpush3.msra.mxu0 %v591_v54  ;;  %v1175_v28 = vsub.f32 %v12551_v5, %v1174_v23  ;;  %v1223_v53 = vand.u32 4294901760, %v12655_v45  ;;  %v1204_v54 = vand.u32 4294901760, %v1203_v47 }
  0x65   : > { %10418 = vmatprep.mubr.msk.f32.mxu0 %vm12161_vm0, %v15110_v0  ;;  %10434 = vmatpush3.msra.mxu1 %v12311_v10  ;;  %v12581_v10 = vsub.f32 %v9524_v4, %v12557_v17  ;;  %v12597_v26 = vsub.f32 %v9523_v6, %v12572_v21  ;;  %v1217_v57 = vsub.f32 %v12645_v40, %v1216_v48  ;;  %v12803_v4 = vand.u32 4294901760, %v9532_v13  ;;  %v9530_v6 = vld [vmem:[%s15095_s4 + $0x98] sm:$0xff] }
  0x66   : > { %10400 = vmatmul.mubr.f32.gmra.mxu1 %v12440_v2  ;;  %10419 = vmatmul.mubr.f32.vlgmr.msra.gmra.mxu0 %v12350_v27  ;;  %v1224_v61 = vsub.f32 %v12655_v45, %v1223_v53 }
  0x67   : > { %10435 = vmatprep.subr.mxu1 %v15110_v0  ;;  %10452 = vmatprep.subr.mxu0 %v15110_v0  ;;  %v1188_v30 = vand.u32 4294901760, %v12581_v10  ;;  %v1195_v36 = vand.u32 4294901760, %v12597_v26  ;;  %v1218_v62 = vand.u32 4294901760, %v1217_v57 }
  0x68   : > { %10436 = vmatpush3.msra.mxu1 %v12313_v11  ;;  %10453 = vmatpush3.msra.mxu0 %v12531_v14  ;;  %v1181_v11 = vand.u32 4294901760, %v12568_v19  ;;  %v1225_v63 = vand.u32 4294901760, %v1224_v61 }
  0x69   : > { %10437 = vmatprep.subr.mxu1 %v15110_v0  ;;  %10454 = vmatprep.subr.mxu0 %v15110_v0  ;;  %v1189_v38 = vsub.f32 %v12581_v10, %v1188_v30  ;;  %v1196_v43 = vsub.f32 %v12597_v26, %v1195_v36 }
  0x6a   : > { %10421 = vmatprep.mubr.msk.f32.mxu0 %vm12161_vm0, %v15110_v0  ;;  %10438 = vmatpush3.msra.mxu1 %v12315_v12  ;;  %v12607_v12 = vand.u32 4294901760, %v9521_v24  ;;  %v1182_v33 = vsub.f32 %v12568_v19, %v1181_v11 }
  0x6b   : > { %10455 = vmatpush3.msra.mxu0 %v12546_v16  ;;  %10439 = vmatprep.subr.mxu1 %v15110_v0  ;;  %v1190_v44 = vand.u32 4294901760, %v1189_v38  ;;  %v1197_v49 = vand.u32 4294901760, %v1196_v43 }
  0x6c   : > { %10422 = vmatmul.mubr.f32.gmra.mxu0 %v12400_v50  ;;  %10456 = vmatprep.subr.mxu0 %v15110_v0  ;;  %v12633_v37 = vsub.f32 %v9521_v24, %v12607_v12 }
  0x6d   : > { %10440 = vmatpush3.msra.mxu1 %v12331_v18  ;;  %10457 = vmatpush3.msra.mxu0 %v12557_v17  ;;  %v1176_v18 = vand.u32 4294901760, %v1175_v28 }
  0x6e   : > { %10441 = vmatprep.subr.mxu1 %v15110_v0  ;;  %10458 = vmatprep.subr.mxu0 %v15110_v0  ;;  %v1209_v46 = vand.u32 4294901760, %v12633_v37 }
  0x6f   : > { %10424 = vmatprep.mubr.msk.f32.mxu0 %vm12161_vm0, %v15110_v0  ;;  %10442 = vmatpush3.msra.mxu1 %v12337_v20  ;;  %v1183_v20 = vand.u32 4294901760, %v1182_v33 }
  0x70   : > { %10443 = vmatprep.mubr.msk.f32.mxu1 %vm12161_vm0, %v15110_v0  ;;  %10459 = vmatpush3.msra.mxu0 %v12572_v21  ;;  %v1210_v52 = vsub.f32 %v12633_v37, %v1209_v46 }
  0x71   : > { %10425 = vmatmul.mubr.f32.gmra.mxu0 %v12402_v51  ;;  %10444 = vmatmul.mubr.f32.vlgmr.msra.gmra.mxu1 %v12350_v27 }
  0x72   : > { %10460 = vmatprep.subr.mxu0 %v15110_v0  ;;  %10477 = vmatprep.subr.mxu1 %v15110_v0  ;;  %v1211_v58 = vand.u32 4294901760, %v1210_v52 }
  0x73   : > { %10461 = vmatpush3.msra.mxu0 %v12591_v25  ;;  %10478 = vmatpush3.msra.mxu1 %v1176_v18 }
  0x74   : > { %10462 = vmatprep.subr.mxu0 %v15110_v0  ;;  %10479 = vmatprep.subr.mxu1 %v15110_v0 }
  0x75   : > { %10446 = vmatprep.mubr.msk.f32.mxu1 %vm12161_vm0, %v15110_v0  ;;  %10463 = vmatpush3.msra.mxu0 %v12607_v12 }
  0x76   : > { %10480 = vmatpush3.msra.mxu1 %v1183_v20  ;;  %10464 = vmatprep.subr.mxu0 %v15110_v0 }
  0x77   : > { %10447 = vmatmul.mubr.f32.gmra.mxu1 %v12400_v50  ;;  %10481 = vmatprep.subr.mxu1 %v15110_v0 }
  0x78   : > { %10465 = vmatpush3.msra.mxu0 %v12623_v34  ;;  %10482 = vmatpush3.msra.mxu1 %v1190_v44 }
  0x79   : > { %10466 = vmatprep.subr.mxu0 %v15110_v0  ;;  %10483 = vmatprep.subr.mxu1 %v15110_v0 }
  0x7a   : > { %10449 = vmatprep.mubr.msk.f32.mxu1 %vm12161_vm0, %v15110_v0  ;;  %10467 = vmatpush3.msra.mxu0 %v12638_v39 }
  0x7b   : > { %10484 = vmatpush3.msra.mxu1 %v1197_v49  ;;  %10468 = vmatprep.mubr.msk.f32.mxu0 %vm12161_vm0, %v15110_v0 }
  0x7c   : > { %10450 = vmatmul.mubr.f32.gmra.mxu1 %v12402_v51  ;;  %10485 = vmatprep.subr.mxu1 %v15110_v0 }
  0x7d   : > { %10502 = vmatprep.subr.mxu0 %v15110_v0  ;;  %10469 = vmatmul.mubr.f32.vlgmr.msra.gmra.mxu0 %v12415_v56 }
  0x7e   : > { %10486 = vmatpush3.msra.mxu1 %v1204_v54  ;;  %10503 = vmatpush3.msra.mxu0 %v12551_v5 }
  0x7f   : > { %10487 = vmatprep.subr.mxu1 %v15110_v0  ;;  %10504 = vmatprep.subr.mxu0 %v15110_v0 }
  0x80   : > { %10488 = vmatpush3.msra.mxu1 %v1211_v58  ;;  %10505 = vmatpush3.msra.mxu0 %v12568_v19  ;;  %v1806_v19 = vand.u32 4294901760, %v12797_v15 }
  0x81   : > { %10489 = vmatprep.subr.mxu1 %v15110_v0  ;;  %10506 = vmatprep.subr.mxu0 %v15110_v0 }
  0x82   : > { %10490 = vmatpush3.msra.mxu1 %v1218_v62  ;;  %10507 = vmatpush3.msra.mxu0 %v12581_v10 }
  0x83   : > { %10491 = vmatprep.subr.mxu1 %v15110_v0  ;;  %10508 = vmatprep.subr.mxu0 %v15110_v0 }
  0x84   : > { %10471 = vmatprep.mubr.msk.f32.mxu0 %vm12161_vm0, %v15110_v0  ;;  %10492 = vmatpush3.msra.mxu1 %v1225_v63 }
  0x85   : > { %10493 = vmatprep.mubr.msk.f32.mxu1 %vm12161_vm0, %v15110_v0  ;;  %10509 = vmatpush3.msra.mxu0 %v12597_v26  ;;  %v12853_v26 = vand.u32 4294901760, %v9529_v22 }
  0x86   : > { %10472 = vmatmul.mubr.f32.gmra.mxu0 %v12446_v7  ;;  %10494 = vmatmul.mubr.f32.vlgmr.msra.gmra.mxu1 %v12350_v27 }
  0x87   : > { %10510 = vmatprep.subr.mxu0 %v15110_v0  ;;  %10527 = vmatprep.subr.mxu1 %v15110_v0 }
  0x88   : > { %10511 = vmatpush3.msra.mxu0 %v12618_v32  ;;  %10528 = vmatpush3.msra.mxu1 %v12531_v14 }
  0x89   : > { %10512 = vmatprep.subr.mxu0 %v15110_v0  ;;  %10529 = vmatprep.subr.mxu1 %v15110_v0 }
  0x8a   : > { %10474 = vmatprep.mubr.msk.f32.mxu0 %vm12161_vm0, %v15110_v0  ;;  %10513 = vmatpush3.msra.mxu0 %v12633_v37 }
  0x8b   : > { %10530 = vmatpush3.msra.mxu1 %v12546_v16  ;;  %10475 = vmatmul.mubr.f32.gmra.mxu0 %v12460_v9 }
  0x8c   : > { %10514 = vmatprep.subr.mxu0 %v15110_v0  ;;  %10531 = vmatprep.subr.mxu1 %v15110_v0 }
  0x8d   : > { %10515 = vmatpush3.msra.mxu0 %v12645_v40  ;;  %10532 = vmatpush3.msra.mxu1 %v12557_v17 }
  0x8e   : > { %10496 = vmatprep.mubr.msk.f32.mxu1 %vm12161_vm0, %v15110_v0  ;;  %10516 = vmatprep.subr.mxu0 %v15110_v0 }
  0x8f   : > { %10533 = vmatprep.subr.mxu1 %v15110_v0  ;;  %10497 = vmatmul.mubr.f32.gmra.mxu1 %v12400_v50 }
  0x90   : > { %10517 = vmatpush3.msra.mxu0 %v12655_v45  ;;  %10518 = vmatprep.mubr.msk.f32.mxu0 %vm12161_vm0, %v15110_v0 }
  0x91   : > { %10534 = vmatpush3.msra.mxu1 %v12572_v21  ;;  %10519 = vmatmul.mubr.f32.vlgmr.msra.gmra.mxu0 %v12372_v35 }
  0x92   : > { %10535 = vmatprep.subr.mxu1 %v15110_v0  ;;  %10552 = vmatprep.subr.mxu0 %v15110_v0 }
  0x93   : > { %10536 = vmatpush3.msra.mxu1 %v12591_v25  ;;  %10553 = vmatpush3.msra.mxu0 %v1174_v23  ;;  %v12837_v23 = vand.u32 4294901760, %v9530_v6 }
  0x94   : > { %10499 = vmatprep.mubr.msk.f32.mxu1 %vm12161_vm0, %v15110_v0  ;;  %10537 = vmatprep.subr.mxu1 %v15110_v0 }
  0x95   : > { %10554 = vmatprep.subr.mxu0 %v15110_v0  ;;  %10500 = vmatmul.mubr.f32.gmra.mxu1 %v12402_v51 }
  0x96   : > { %10521 = vmatprep.mubr.msk.f32.mxu0 %vm12161_vm0, %v15110_v0  ;;  %10538 = vmatpush3.msra.mxu1 %v12607_v12 }
  0x97   : > { %10555 = vmatpush3.msra.mxu0 %v1181_v11  ;;  %10539 = vmatprep.subr.mxu1 %v15110_v0  ;;  %v9528_v11 = vld [vmem:[%s15095_s4 + $0x88] sm:$0xff] }
  0x98   : > { %10522 = vmatmul.mubr.f32.gmra.mxu0 %v12412_v55  ;;  %10556 = vmatprep.subr.mxu0 %v15110_v0  ;;  %v12869_v31 = vand.u32 4294901760, %v9528_v11 }
  0x99   : > { %10540 = vmatpush3.msra.mxu1 %v12623_v34  ;;  %10557 = vmatpush3.msra.mxu0 %v1188_v30 }
  0x9a   : > { %10541 = vmatprep.subr.mxu1 %v15110_v0  ;;  %10558 = vmatprep.subr.mxu0 %v15110_v0  ;;  %v12891_v38 = vsub.f32 %v9528_v11, %v12869_v31 }
  0x9b   : > { %10524 = vmatprep.mubr.msk.f32.mxu0 %vm12161_vm0, %v15110_v0  ;;  %10542 = vmatpush3.msra.mxu1 %v12638_v39 }
  0x9c   : > { %10543 = vmatprep.mubr.msk.f32.mxu1 %vm12161_vm0, %v15110_v0  ;;  %10559 = vmatpush3.msra.mxu0 %v1195_v36  ;;  %v12884_v36 = vand.u32 4294901760, %v9527_v29  ;;  %v1848_v45 = vand.u32 4294901760, %v12891_v38 }
  0x9d   : > { %10525 = vmatmul.mubr.f32.gmra.mxu0 %v12426_v60  ;;  %10544 = vmatmul.mubr.f32.vlgmr.msra.gmra.mxu1 %v12382_v41 }
  0x9e   : > { %10560 = vmatprep.subr.mxu0 %v15110_v0  ;;  %10577 = vmatprep.subr.mxu1 %v15110_v0  ;;  %v1849_v52 = vsub.f32 %v12891_v38, %v1848_v45 }
  0x9f   : > { %10561 = vmatpush3.msra.mxu0 %v1202_v42  ;;  %10578 = vmatpush3.msra.mxu1 %v12531_v14  ;;  %v12792_v14 = vand.u32 4294901760, %v9533_v8  ;;  %v12901_v42 = vsub.f32 %v9527_v29, %v12884_v36 }
  0xa0   : > { %10562 = vmatprep.subr.mxu0 %v15110_v0  ;;  %10579 = vmatprep.subr.mxu1 %v15110_v0  ;;  %v1850_v57 = vand.u32 4294901760, %v1849_v52 }
  0xa1   : > { %10546 = vmatprep.mubr.msk.f32.mxu1 %vm12161_vm0, %v15110_v0  ;;  %10563 = vmatpush3.msra.mxu0 %v1209_v46  ;;  %v12814_v5 = vsub.f32 %v9533_v8, %v12792_v14 }
  0xa2   : > { %10580 = vmatpush3.msra.mxu1 %v12546_v16  ;;  %10564 = vmatprep.subr.mxu0 %v15110_v0  ;;  %v9531_v16 = vld [vmem:[%s15095_s4 + $0xa0] sm:$0xff] }
  0xa3   : > { %10547 = vmatmul.mubr.f32.gmra.mxu1 %v12423_v59  ;;  %10581 = vmatprep.subr.mxu1 %v15110_v0  ;;  %v1813_v10 = vand.u32 4294901760, %v12814_v5 }
  0xa4   : > { %10565 = vmatpush3.msra.mxu0 %v1216_v48  ;;  %10582 = vmatpush3.msra.mxu1 %v12557_v17  ;;  %v12818_v17 = vand.u32 4294901760, %v9531_v16  ;;  %v1855_v48 = vand.u32 4294901760, %v12901_v42 }
  0xa5   : > { %10566 = vmatprep.subr.mxu0 %v15110_v0  ;;  %10583 = vmatprep.subr.mxu1 %v15110_v0  ;;  %v1814_v30 = vsub.f32 %v12814_v5, %v1813_v10 }
  0xa6   : > { %10549 = vmatprep.mubr.msk.f32.mxu1 %vm12161_vm0, %v15110_v0  ;;  %10567 = vmatpush3.msra.mxu0 %v1223_v53  ;;  %v12843_v24 = vsub.f32 %v9531_v16, %v12818_v17  ;;  %v1856_v54 = vsub.f32 %v12901_v42, %v1855_v48 }
  0xa7   : > { %10568 = vmatprep.mubr.msk.f32.mxu0 %vm12161_vm0, %v15110_v0  ;;  %10584 = vmatpush3.msra.mxu1 %v12572_v21  ;;  %v12827_v21 = vsub.f32 %v9532_v13, %v12803_v4  ;;  %v1815_v37 = vand.u32 4294901760, %v1814_v30 }
  0xa8   : > { %10550 = vmatmul.mubr.f32.gmra.mxu1 %v12440_v2  ;;  %10569 = vmatmul.mubr.f32.vlgmr.msra.gmra.mxu0 %v12350_v27  ;;  %v1827_v33 = vand.u32 4294901760, %v12843_v24  ;;  %v1857_v58 = vand.u32 4294901760, %v1856_v54 }
  0xa9   : > { %10585 = vmatprep.subr.mxu1 %v15110_v0  ;;  %10602 = vmatprep.subr.mxu0 %v15110_v0  ;;  %v1820_v28 = vand.u32 4294901760, %v12827_v21 }
  0xaa   : > { %10586 = vmatpush3.msra.mxu1 %v12591_v25  ;;  %10603 = vmatpush3.msra.mxu0 %v12777_v3  ;;  %v1807_v25 = vsub.f32 %v12797_v15, %v1806_v19  ;;  %v1828_v20 = vsub.f32 %v12843_v24, %v1827_v33 }
  0xab   : > { %10587 = vmatprep.subr.mxu1 %v15110_v0  ;;  %10604 = vmatprep.subr.mxu0 %v15110_v0  ;;  %v1821_v18 = vsub.f32 %v12827_v21, %v1820_v28 }
  0xac   : > { %10571 = vmatprep.mubr.msk.f32.mxu0 %vm12161_vm0, %v15110_v0  ;;  %10588 = vmatpush3.msra.mxu1 %v12607_v12  ;;  %v12864_v12 = vsub.f32 %v9530_v6, %v12837_v23  ;;  %v1808_v32 = vand.u32 4294901760, %v1807_v25  ;;  %v1829_v46 = vand.u32 4294901760, %v1828_v20 }
  0xad   : > { %10605 = vmatpush3.msra.mxu0 %v12792_v14  ;;  %10589 = vmatprep.subr.mxu1 %v15110_v0  ;;  %v1822_v40 = vand.u32 4294901760, %v1821_v18 }
  0xae   : > { %10572 = vmatmul.mubr.f32.gmra.mxu0 %v12400_v50  ;;  %10606 = vmatprep.subr.mxu0 %v15110_v0 }
  0xaf   : > { %10590 = vmatpush3.msra.mxu1 %v12623_v34  ;;  %10607 = vmatpush3.msra.mxu0 %v12803_v4  ;;  %v12879_v34 = vsub.f32 %v9529_v22, %v12853_v26 }
  0xb0   : > { %10591 = vmatprep.subr.mxu1 %v15110_v0  ;;  %10608 = vmatprep.subr.mxu0 %v15110_v0 }
  0xb1   : > { %10574 = vmatprep.mubr.msk.f32.mxu0 %vm12161_vm0, %v15110_v0  ;;  %10592 = vmatpush3.msra.mxu1 %v12638_v39  ;;  %v1834_v39 = vand.u32 4294901760, %v12864_v12  ;;  %v1841_v43 = vand.u32 4294901760, %v12879_v34 }
  0xb2   : > { %10593 = vmatprep.mubr.msk.f32.mxu1 %vm12161_vm0, %v15110_v0  ;;  %10609 = vmatpush3.msra.mxu0 %v12818_v17 }
  0xb3   : > { %10575 = vmatmul.mubr.f32.gmra.mxu0 %v12402_v51  ;;  %10594 = vmatmul.mubr.f32.vlgmr.msra.gmra.mxu1 %v12350_v27  ;;  %v1835_v44 = vsub.f32 %v12864_v12, %v1834_v39  ;;  %v1842_v47 = vsub.f32 %v12879_v34, %v1841_v43 }
  0xb4   : > { %10610 = vmatprep.subr.mxu0 %v15110_v0  ;;  %10627 = vmatprep.subr.mxu1 %v15110_v0 }
  0xb5   : > { %10611 = vmatpush3.msra.mxu0 %v12837_v23  ;;  %10628 = vmatpush3.msra.mxu1 %v1808_v32  ;;  %v1836_v49 = vand.u32 4294901760, %v1835_v44  ;;  %v1843_v53 = vand.u32 4294901760, %v1842_v47 }
  0xb6   : > { %10612 = vmatprep.subr.mxu0 %v15110_v0  ;;  %10629 = vmatprep.subr.mxu1 %v15110_v0 }
  0xb7   : > { %10596 = vmatprep.mubr.msk.f32.mxu1 %vm12161_vm0, %v15110_v0  ;;  %10613 = vmatpush3.msra.mxu0 %v12853_v26 }
  0xb8   : > { %10630 = vmatpush3.msra.mxu1 %v1815_v37  ;;  %10614 = vmatprep.subr.mxu0 %v15110_v0 }
  0xb9   : > { %10597 = vmatmul.mubr.f32.gmra.mxu1 %v12400_v50  ;;  %10631 = vmatprep.subr.mxu1 %v15110_v0 }
  0xba   : > { %10615 = vmatpush3.msra.mxu0 %v12869_v31  ;;  %10632 = vmatpush3.msra.mxu1 %v1822_v40 }
  0xbb   : > { %10616 = vmatprep.subr.mxu0 %v15110_v0  ;;  %10633 = vmatprep.subr.mxu1 %v15110_v0 }
  0xbc   : > { %10599 = vmatprep.mubr.msk.f32.mxu1 %vm12161_vm0, %v15110_v0  ;;  %10617 = vmatpush3.msra.mxu0 %v12884_v36 }
  0xbd   : > { %10634 = vmatpush3.msra.mxu1 %v1829_v46  ;;  %10618 = vmatprep.mubr.msk.f32.mxu0 %vm12161_vm0, %v15110_v0 }
  0xbe   : > { %10600 = vmatmul.mubr.f32.gmra.mxu1 %v12402_v51  ;;  %10635 = vmatprep.subr.mxu1 %v15110_v0 }
  0xbf   : > { %10652 = vmatprep.subr.mxu0 %v15110_v0  ;;  %10619 = vmatmul.mubr.f32.vlgmr.msra.gmra.mxu0 %v12415_v56 }
  0xc0   : > { %10636 = vmatpush3.msra.mxu1 %v1836_v49  ;;  %10653 = vmatpush3.msra.mxu0 %v12797_v15 }
  0xc1   : > { %10637 = vmatprep.subr.mxu1 %v15110_v0  ;;  %10654 = vmatprep.subr.mxu0 %v15110_v0 }
  0xc2   : > { %10638 = vmatpush3.msra.mxu1 %v1843_v53  ;;  %10655 = vmatpush3.msra.mxu0 %v12814_v5 }
  0xc3   : > { %10639 = vmatprep.subr.mxu1 %v15110_v0  ;;  %10656 = vmatprep.subr.mxu0 %v15110_v0 }
  0xc4   : > { %10640 = vmatpush3.msra.mxu1 %v1850_v57  ;;  %10657 = vmatpush3.msra.mxu0 %v12827_v21  ;;  %v396_v21 = vld [vmem:[#allocation2] sm:$0xff] }
  0xc5   : > { %10641 = vmatprep.subr.mxu1 %v15110_v0  ;;  %10658 = vmatprep.subr.mxu0 %v15110_v0 }
  0xc6   : > { %10621 = vmatprep.mubr.msk.f32.mxu0 %vm12161_vm0, %v15110_v0  ;;  %10642 = vmatpush3.msra.mxu1 %v1857_v58 }
  0xc7   : > { %10643 = vmatprep.mubr.msk.f32.mxu1 %vm12161_vm0, %v15110_v0  ;;  %10659 = vmatpush3.msra.mxu0 %v12843_v24  ;;  %v2309_v24 = vsel %vm2307_vm2, %v396_v21, 0 }
  0xc8   : > { %10622 = vmatmul.mubr.f32.gmra.mxu0 %v12446_v7  ;;  %10644 = vmatmul.mubr.f32.vlgmr.msra.gmra.mxu1 %v12350_v27 }
  0xc9   : > { %10660 = vmatprep.subr.mxu0 %v15110_v0  ;;  %10677 = vmatprep.subr.mxu1 %v15110_v0 }
  0xca   : > { %10661 = vmatpush3.msra.mxu0 %v12864_v12  ;;  %10678 = vmatpush3.msra.mxu1 %v12777_v3 }
  0xcb   : > { %10662 = vmatprep.subr.mxu0 %v15110_v0  ;;  %10679 = vmatprep.subr.mxu1 %v15110_v0 }
  0xcc   : > { %10624 = vmatprep.mubr.msk.f32.mxu0 %vm12161_vm0, %v15110_v0  ;;  %10663 = vmatpush3.msra.mxu0 %v12879_v34 }
  0xcd   : > { %10680 = vmatpush3.msra.mxu1 %v12792_v14  ;;  %10625 = vmatmul.mubr.f32.gmra.mxu0 %v12460_v9 }
  0xce   : > { %10664 = vmatprep.subr.mxu0 %v15110_v0  ;;  %10681 = vmatprep.subr.mxu1 %v15110_v0 }
  0xcf   : > { %10665 = vmatpush3.msra.mxu0 %v12891_v38  ;;  %10682 = vmatpush3.msra.mxu1 %v12803_v4 }
  0xd0   : > { %10646 = vmatprep.mubr.msk.f32.mxu1 %vm12161_vm0, %v15110_v0  ;;  %10666 = vmatprep.subr.mxu0 %v15110_v0 }
  0xd1   : > { %10683 = vmatprep.subr.mxu1 %v15110_v0  ;;  %10647 = vmatmul.mubr.f32.gmra.mxu1 %v12400_v50 }
  0xd2   : > { %10667 = vmatpush3.msra.mxu0 %v12901_v42  ;;  %10668 = vmatprep.mubr.msk.f32.mxu0 %vm12161_vm0, %v15110_v0 }
  0xd3   : > { %10684 = vmatpush3.msra.mxu1 %v12818_v17  ;;  %10669 = vmatmul.mubr.f32.vlgmr.msra.gmra.mxu0 %v12372_v35 }
  0xd4   : > { %10685 = vmatprep.subr.mxu1 %v15110_v0  ;;  %10702 = vmatprep.subr.mxu0 %v15110_v0 }
  0xd5   : > { %10686 = vmatpush3.msra.mxu1 %v12837_v23  ;;  %10703 = vmatpush3.msra.mxu0 %v1806_v19 }
  0xd6   : > { %10649 = vmatprep.mubr.msk.f32.mxu1 %vm12161_vm0, %v15110_v0  ;;  %10687 = vmatprep.subr.mxu1 %v15110_v0 }
  0xd7   : > { %10704 = vmatprep.subr.mxu0 %v15110_v0  ;;  %10650 = vmatmul.mubr.f32.gmra.mxu1 %v12402_v51 }
  0xd8   : > { %10671 = vmatprep.mubr.msk.f32.mxu0 %vm12161_vm0, %v15110_v0  ;;  %10688 = vmatpush3.msra.mxu1 %v12853_v26 }
  0xd9   : > { %10705 = vmatpush3.msra.mxu0 %v1813_v10  ;;  %10689 = vmatprep.subr.mxu1 %v15110_v0 }
  0xda   : > { %10672 = vmatmul.mubr.f32.gmra.mxu0 %v12412_v55  ;;  %10706 = vmatprep.subr.mxu0 %v15110_v0 }
  0xdb   : > { %10690 = vmatpush3.msra.mxu1 %v12869_v31  ;;  %10707 = vmatpush3.msra.mxu0 %v1820_v28 }
  0xdc   : > { %10691 = vmatprep.subr.mxu1 %v15110_v0  ;;  %10708 = vmatprep.subr.mxu0 %v15110_v0 }
  0xdd   : > { %10674 = vmatprep.mubr.msk.f32.mxu0 %vm12161_vm0, %v15110_v0  ;;  %10692 = vmatpush3.msra.mxu1 %v12884_v36 }
  0xde   : > { %10693 = vmatprep.mubr.msk.f32.mxu1 %vm12161_vm0, %v15110_v0  ;;  %10709 = vmatpush3.msra.mxu0 %v1827_v33 }
  0xdf   : > { %10675 = vmatmul.mubr.f32.gmra.mxu0 %v12426_v60  ;;  %10694 = vmatmul.mubr.f32.vlgmr.msra.gmra.mxu1 %v12382_v41 }
  0xe0   : > { %10710 = vmatprep.subr.mxu0 %v15110_v0  ;;  %10727 = vmatprep.subr.mxu1 %v15110_v0 }
  0xe1   : > { %10711 = vmatpush3.msra.mxu0 %v1834_v39  ;;  %10728 = vmatpush3.msra.mxu1 %v12777_v3 }
  0xe2   : > { %10712 = vmatprep.subr.mxu0 %v15110_v0  ;;  %10729 = vmatprep.subr.mxu1 %v15110_v0 }
  0xe3   : > { %10696 = vmatprep.mubr.msk.f32.mxu1 %vm12161_vm0, %v15110_v0  ;;  %10713 = vmatpush3.msra.mxu0 %v1841_v43 }
  0xe4   : > { %10730 = vmatpush3.msra.mxu1 %v12792_v14  ;;  %10714 = vmatprep.subr.mxu0 %v15110_v0 }
  0xe5   : > { %10697 = vmatmul.mubr.f32.gmra.mxu1 %v12423_v59  ;;  %10731 = vmatprep.subr.mxu1 %v15110_v0 }
  0xe6   : > { %10715 = vmatpush3.msra.mxu0 %v1848_v45  ;;  %10732 = vmatpush3.msra.mxu1 %v12803_v4 }
  0xe7   : > { %10716 = vmatprep.subr.mxu0 %v15110_v0  ;;  %10733 = vmatprep.subr.mxu1 %v15110_v0 }
  0xe8   : > { %10699 = vmatprep.mubr.msk.f32.mxu1 %vm12161_vm0, %v15110_v0  ;;  %10717 = vmatpush3.msra.mxu0 %v1855_v48 }
  0xe9   : > { %10718 = vmatprep.mubr.msk.f32.mxu0 %vm12161_vm0, %v15110_v0  ;;  %10734 = vmatpush3.msra.mxu1 %v12818_v17 }
  0xea   : > { %10700 = vmatmul.mubr.f32.gmra.mxu1 %v12440_v2  ;;  %10719 = vmatmul.mubr.f32.vlgmr.msra.gmra.mxu0 %v12350_v27 }
  0xeb   : > { %10735 = vmatprep.subr.mxu1 %v15110_v0  ;;  %10721 = vmatprep.mubr.msk.f32.mxu0 %vm12161_vm0, %v15110_v0 }
  0xec   : > { %10736 = vmatpush3.msra.mxu1 %v12837_v23  ;;  %10743 = vmatprep.mubr.msk.f32.mxu1 %vm12161_vm0, %v15110_v0 }
  0xed   : > { %10737 = vmatprep.subr.mxu1 %v15110_v0  ;;  %10752 = vmatprep.subr.mxu0 %v15110_v0 }
  0xee   : > { %10738 = vmatpush3.msra.mxu1 %v12853_v26  ;;  %10722 = vmatmul.mubr.f32.gmra.mxu0 %v12400_v50  ;;  %v397_v26 = vld [vmem:[#allocation2 + $0x8] sm:$0xff] }
  0xef   : > { %10739 = vmatprep.subr.mxu1 %v15110_v0  ;;  %10724 = vmatprep.mubr.msk.f32.mxu0 %vm12161_vm0, %v15110_v0  ;;  %v2312_v34 = vsel %vm2307_vm2, %v397_v26, 0 }
  0xf0   : > { %10740 = vmatpush3.msra.mxu1 %v12869_v31  ;;  %v13068_v31 = vand.u32 4294901760, %v2309_v24  ;;  %v13074_v42 = vand.u32 4294901760, %v2312_v34 }
  0xf1   : > { %10741 = vmatprep.subr.mxu1 %v15110_v0 }
  0xf2   : > { %10742 = vmatpush3.msra.mxu1 %v12884_v36  ;;  %10725 = vmatmul.mubr.f32.gmra.mxu0 %v12402_v51  ;;  %v398_v36 = vld [vmem:[#allocation2 + $0x10] sm:$0x3]  ;;  %v13072_v40 = vsub.f32 %v2309_v24, %v13068_v31  ;;  %v13083_v53 = vsub.f32 %v2312_v34, %v13074_v42 }
  0xf3   : > { %10744 = vmatmul.mubr.f32.vlgmr.msra.gmra.mxu1 %v12350_v27  ;;  %10758 = vmatprep.mubr.msk.f32.mxu0 %vm12161_vm0, %v15110_v0  ;;  %v2315_v45 = vsel %vm2307_vm2, %v398_v36, 0 }
  0xf4   : > { %10746 = vmatprep.mubr.msk.f32.mxu1 %vm12161_vm0, %v15110_v0  ;;  %10767 = vmatprep.subr.mxu1 %v15110_v0  ;;  %v13080_v52 = vand.u32 4294901760, %v13072_v40  ;;  %v13085_v54 = vand.u32 4294901760, %v2315_v45 }
  0xf7   : > { %10747 = vmatmul.mubr.f32.gmra.mxu1 %v12400_v50 }
  0xf8   : > { %10749 = vmatprep.mubr.msk.f32.mxu1 %vm12161_vm0, %v15110_v0 }
  0xfb   : > { %10750 = vmatmul.mubr.f32.gmra.mxu1 %v12402_v51 }
  0xfc   : > { %v499_v35 = vpop.f32.mrf.mxu0  ;;  %10773 = vmatprep.mubr.msk.f32.mxu1 %vm12161_vm0, %v15110_v0 }
  0xfe   : > { %v10320_v27 = vpop.f32.mrf.mxu0 }
 0x104   : > { %v509_v41 = vpop.f32.mrf.mxu0  ;;  %v630_v55 = vpop.f32.mrf.mxu1 }
 0x105   : > { %v631_v23 = vadd.f32 %v630_v55, %v499_v35 }
 0x106   : > { %v10323_v56 = vpop.f32.mrf.mxu0  ;;  %v10345_v59 = vpop.f32.mrf.mxu1 }
 0x109   : > { %v519_v60 = vpop.f32.mrf.mxu0 }
 0x10b   : > { %v10326_v2 = vpop.f32.mrf.mxu0 }
 0x10c   : > { %v13096_v2 = vand.u32 4294901760, %v13083_v53 }
 0x10d   : > { %v636_v7 = vpop.f32.mrf.mxu1 }
 0x10e   : > { %v637_v10 = vadd.f32 %v636_v7, %v509_v41  ;;  %v13099_v7 = vsub.f32 %v2315_v45, %v13085_v54 }
 0x10f   : > { %v730_v9 = vpop.f32.mrf.mxu0  ;;  %v10348_v61 = vpop.f32.mrf.mxu1 }
 0x110   : > { %v731_v28 = vadd.f32 %v730_v9, %v631_v23 }
 0x111   : > { %v10370_v50 = vpop.f32.mrf.mxu0 }
 0x113   : > { %v642_v62 = vpop.f32.mrf.mxu1 }
 0x114   : > { %v643_v18 = vadd.f32 %v642_v62, %v519_v60  ;;  %v2392_v60 = vsub.f32 %v13072_v40, %v13080_v52 }
 0x115   : > { %v10351_v63 = vpop.f32.mrf.mxu1 }
 0x116   : > { %v737_v1 = vpop.f32.mrf.mxu0  ;;  %v13110_v63 = vand.u32 4294901760, %v2392_v60 }
 0x117   : > { %v738_v29 = vadd.f32 %v737_v1, %v637_v10  ;;  %v2402_v1 = vsub.f32 %v13083_v53, %v13096_v2 }
 0x118   : > { %v10373_v3 = vpop.f32.mrf.mxu0 }
 0x119   : > { %v13115_v3 = vand.u32 4294901760, %v13099_v7 }
 0x11b   : > { %v744_v51 = vpop.f32.mrf.mxu0  ;;  %v825_v8 = vpop.f32.mrf.mxu1 }
 0x11c   : > { %v826_v32 = vadd.f32 %v825_v8, %v731_v28  ;;  %v745_v39 = vadd.f32 %v744_v51, %v643_v18 }
 0x11d   : > { %v10395_v13 = vpop.f32.mrf.mxu1  ;;  %v10376_v14 = vpop.f32.mrf.mxu0 }
 0x121   : > { %v833_v15 = vpop.f32.mrf.mxu1 }
 0x122   : > { %v834_v33 = vadd.f32 %v833_v15, %v738_v29 }
 0x123   : > { %v10398_v4 = vpop.f32.mrf.mxu1 }
 0x126   : > { %v841_v16 = vpop.f32.mrf.mxu1  ;;  %v936_v5 = vpop.f32.mrf.mxu0 }
 0x127   : > { %v937_v37 = vadd.f32 %v936_v5, %v826_v32  ;;  %v842_v46 = vadd.f32 %v841_v16, %v745_v39  ;;  %v13126_v5 = vand.u32 4294901760, %v2402_v1 }
 0x128   : > { %v10420_v17 = vpop.f32.mrf.mxu0  ;;  %v10401_v6 = vpop.f32.mrf.mxu1 }
 0x129   : > { %v2412_v17 = vsub.f32 %v13099_v7, %v13115_v3 }
 0x12b   : > { %v13139_v24 = vand.u32 4294901760, %v2412_v17 }
 0x12c   : > { %v942_v19 = vpop.f32.mrf.mxu0 }
 0x12d   : > { %v943_v38 = vadd.f32 %v942_v19, %v834_v33 }
 0x12e   : > { %v10423_v22 = vpop.f32.mrf.mxu0 }
 0x131   : > { %v948_v25 = vpop.f32.mrf.mxu0  ;;  %v1027_v11 = vpop.f32.mrf.mxu1 }
 0x132   : > { %v1028_v43 = vadd.f32 %v1027_v11, %v937_v37  ;;  %v949_v49 = vadd.f32 %v948_v25, %v842_v46 }
 0x133   : > { %v10445_v12 = vpop.f32.mrf.mxu1  ;;  %v10426_v30 = vpop.f32.mrf.mxu0 }
 0x134   : > { %v13087_v57 = vand.u32 4294901760, %v1028_v43 }
 0x136   : > { %v13102_v9 = vsub.f32 %v1028_v43, %v13087_v57 }
 0x137   : > { %v1033_v20 = vpop.f32.mrf.mxu1 }
 0x138   : > { %v1034_v44 = vadd.f32 %v1033_v20, %v943_v38  ;;  %v2462_v51 = vand.u32 4294901760, %v13102_v9 }
 0x139   : > { %v10448_v47 = vpop.f32.mrf.mxu1 }
 0x13a   : > { %v13077_v48 = vand.u32 4294901760, %v1034_v44  ;;  %v2463_v6 = vsub.f32 %v13102_v9, %v2462_v51 }
 0x13c   : > { %v1039_v58 = vpop.f32.mrf.mxu1  ;;  %v13090_v41 = vsub.f32 %v1034_v44, %v13077_v48  ;;  %v2464_v25 = vand.u32 4294901760, %v2463_v6 }
 0x13d   : > { %v1040_v35 = vadd.f32 %v1039_v58, %v949_v49  ;;  %v1131_v27 = vpop.f32.mrf.mxu0 }
 0x13e   : > { %v10451_v55 = vpop.f32.mrf.mxu1  ;;  %v2455_v50 = vand.u32 4294901760, %v13090_v41 }
 0x13f   : > { %v2319_v56 = vsel %vm2317_vm3, %v1040_v35, 0  ;;  %v10470_v59 = vpop.f32.mrf.mxu0 }
 0x140   : > { %v13104_v61 = vand.u32 4294901760, %v2319_v56  ;;  %v2456_v13 = vsub.f32 %v13090_v41, %v2455_v50 }
 0x142   : > { %v2447_v62 = vsub.f32 %v2319_v56, %v13104_v61  ;;  %10753 = vmatpush3.msra.mxu0 %v13104_v61  ;;  %v2457_v23 = vand.u32 4294901760, %v2456_v13 }
 0x143   : > { %10754 = vmatprep.subr.mxu0 %v15110_v0 }
 0x144   : > { %v2448_v8 = vand.u32 4294901760, %v2447_v62  ;;  %10755 = vmatpush3.msra.mxu0 %v13077_v48 }
 0x145   : > { %10756 = vmatprep.subr.mxu0 %v15110_v0 }
 0x146   : > { %v1141_v14 = vpop.f32.mrf.mxu0  ;;  %v1262_v15 = vpop.f32.mrf.mxu1  ;;  %10757 = vmatpush3.msra.mxu0 %v13087_v57  ;;  %v2449_v4 = vsub.f32 %v2447_v62, %v2448_v8 }
 0x147   : > { %v1263_v16 = vadd.f32 %v1262_v15, %v1131_v27  ;;  %10759 = vmatmul.mubr.f32.vlgmr.msra.gmra.mxu0 %v13110_v63  ;;  %10782 = vmatprep.subr.mxu0 %v15110_v0 }
 0x148   : > { %v10473_v19 = vpop.f32.mrf.mxu0  ;;  %v10495_v21 = vpop.f32.mrf.mxu1  ;;  %10783 = vmatpush3.msra.mxu0 %v2447_v62  ;;  %10761 = vmatprep.mubr.msk.f32.mxu0 %vm12161_vm0, %v15110_v0  ;;  %v2450_v22 = vand.u32 4294901760, %v2449_v4 }
 0x149   : > { %10784 = vmatprep.subr.mxu0 %v15110_v0 }
 0x14a   : > { %10768 = vmatpush3.msra.mxu1 %v2450_v22  ;;  %10785 = vmatpush3.msra.mxu0 %v13090_v41 }
 0x14b   : > { %v1151_v10 = vpop.f32.mrf.mxu0  ;;  %10762 = vmatmul.mubr.f32.gmra.mxu0 %v13126_v5  ;;  %10769 = vmatprep.subr.mxu1 %v15110_v0 }
 0x14c   : > { %10786 = vmatprep.subr.mxu0 %v15110_v0  ;;  %10770 = vmatpush3.msra.mxu1 %v2457_v23 }
 0x14d   : > { %v10476_v11 = vpop.f32.mrf.mxu0  ;;  %10787 = vmatpush3.msra.mxu0 %v13102_v9  ;;  %10771 = vmatprep.subr.mxu1 %v15110_v0 }
 0x14e   : > { %10764 = vmatprep.mubr.msk.f32.mxu0 %vm12161_vm0, %v15110_v0  ;;  %10772 = vmatpush3.msra.mxu1 %v2464_v25  ;;  %v393_v11 = vld [vmem:[%s15092_s1] sm:$0xff] }
 0x14f   : > { %v1268_v26 = vpop.f32.mrf.mxu1  ;;  %10765 = vmatmul.mubr.f32.gmra.mxu0 %v13139_v24  ;;  %10774 = vmatmul.mubr.f32.vlgmr.msra.gmra.mxu1 %v13068_v31 }
 0x150   : > { %v1269_v28 = vadd.f32 %v1268_v26, %v1141_v14  ;;  %10797 = vmatprep.subr.mxu1 %v15110_v0  ;;  %10776 = vmatprep.mubr.msk.f32.mxu1 %vm12161_vm0, %v15110_v0 }
 0x151   : > { %v1362_v29 = vpop.f32.mrf.mxu0  ;;  %v10498_v12 = vpop.f32.mrf.mxu1  ;;  %10798 = vmatpush3.msra.mxu1 %v13104_v61  ;;  %10788 = vmatprep.mubr.msk.f32.mxu0 %vm12161_vm0, %v15110_v0 }
 0x152   : > { %v1363_v30 = vadd.f32 %v1362_v29, %v1263_v16  ;;  %10799 = vmatprep.subr.mxu1 %v15110_v0  ;;  %10812 = vmatprep.subr.mxu0 %v15110_v0 }
 0x153   : > { %v10520_v32 = vpop.f32.mrf.mxu0  ;;  %10800 = vmatpush3.msra.mxu1 %v13077_v48  ;;  %10789 = vmatmul.mubr.f32.vlgmr.msra.gmra.mxu0 %v13072_v40 }
 0x154   : > { %10777 = vmatmul.mubr.f32.gmra.mxu1 %v13074_v42  ;;  %10801 = vmatprep.subr.mxu1 %v15110_v0  ;;  %v394_v32 = vld [vmem:[%s15092_s1 + $0x8] sm:$0xff] }
 0x155   : > { %v1274_v33 = vpop.f32.mrf.mxu1  ;;  %10813 = vmatpush3.msra.mxu0 %v2448_v8  ;;  %10802 = vmatpush3.msra.mxu1 %v13087_v57 }
 0x156   : > { %v1275_v34 = vadd.f32 %v1274_v33, %v1151_v10  ;;  %10814 = vmatprep.subr.mxu0 %v15110_v0  ;;  %10779 = vmatprep.mubr.msk.f32.mxu1 %vm12161_vm0, %v15110_v0 }
 0x157   : > { %v10501_v18 = vpop.f32.mrf.mxu1  ;;  %10815 = vmatpush3.msra.mxu0 %v2455_v50  ;;  %10791 = vmatprep.mubr.msk.f32.mxu0 %vm12161_vm0, %v15110_v0 }
 0x158   : > { %v1369_v36 = vpop.f32.mrf.mxu0  ;;  %10816 = vmatprep.subr.mxu0 %v15110_v0  ;;  %10780 = vmatmul.mubr.f32.gmra.mxu1 %v13085_v54 }
 0x159   : > { %v1370_v37 = vadd.f32 %v1369_v36, %v1269_v28  ;;  %10792 = vmatmul.mubr.f32.gmra.mxu0 %v13083_v53  ;;  %10803 = vmatprep.mubr.msk.f32.mxu1 %vm12161_vm0, %v15110_v0  ;;  %v12162_v28 = vmov 0  }
 0x15a   : > { %v10523_v38 = vpop.f32.mrf.mxu0  ;;  %10817 = vmatpush3.msra.mxu0 %v2462_v51  ;;  %10794 = vmatprep.mubr.msk.f32.mxu0 %vm12161_vm0, %v15110_v0 }
 0x15b   : > { %10827 = vmatprep.subr.mxu1 %v15110_v0  ;;  %10842 = vmatprep.subr.mxu0 %v15110_v0 }
 0x15c   : > { %10804 = vmatmul.mubr.f32.vlgmr.msra.gmra.mxu1 %v13080_v52  ;;  %12083 = vset.pattern.permute.xlu0 %v12162_v28 }
 0x15d   : > { %v1376_v39 = vpop.f32.mrf.mxu0  ;;  %v1457_v20 = vpop.f32.mrf.mxu1  ;;  %10795 = vmatmul.mubr.f32.gmra.mxu0 %v13099_v7  ;;  %10828 = vmatpush3.msra.mxu1 %v13104_v61 }
 0x15e   : > { %v1377_v43 = vadd.f32 %v1376_v39, %v1275_v34  ;;  %v1458_v44 = vadd.f32 %v1457_v20, %v1363_v30  ;;  %10829 = vmatprep.subr.mxu1 %v15110_v0  ;;  %10806 = vmatprep.mubr.msk.f32.mxu1 %vm12161_vm0, %v15110_v0 }
 0x15f   : > { %v10545_v45 = vpop.f32.mrf.mxu1  ;;  %v10526_v46 = vpop.f32.mrf.mxu0  ;;  %10830 = vmatpush3.msra.mxu1 %v13077_v48  ;;  %10818 = vmatprep.mubr.msk.f32.mxu0 %vm12161_vm0, %v15110_v0 }
 0x160   : > { %10831 = vmatprep.subr.mxu1 %v15110_v0  ;;  %10807 = vmatmul.mubr.f32.gmra.mxu1 %v13096_v2 }
 0x161   : > { %10819 = vmatmul.mubr.f32.vlgmr.msra.gmra.mxu0 %v13068_v31  ;;  %10832 = vmatpush3.msra.mxu1 %v13087_v57 }
 0x162   : > { %10809 = vmatprep.mubr.msk.f32.mxu1 %vm12161_vm0, %v15110_v0  ;;  %10821 = vmatprep.mubr.msk.f32.mxu0 %vm12161_vm0, %v15110_v0 }
 0x163   : > { %v1465_v47 = vpop.f32.mrf.mxu1  ;;  %10857 = vmatprep.subr.mxu1 %v15110_v0  ;;  %12084 = vset.pattern.permute.xlu1 %v12162_v28 }
 0x164   : > { %v1466_v48 = vadd.f32 %v1465_v47, %v1370_v37  ;;  %10810 = vmatmul.mubr.f32.gmra.mxu1 %v13115_v3  ;;  %3473 = vperm.xlu0 %12083, %v393_v11   ;;  %v395_v37 = vld [vmem:[%s15092_s1 + $0x10] sm:$0x3] }
 0x165   : > { %v10548_v49 = vpop.f32.mrf.mxu1  ;;  %10822 = vmatmul.mubr.f32.gmra.mxu0 %v13074_v42  ;;  %10833 = vmatprep.mubr.msk.f32.mxu1 %vm12161_vm0, %v15110_v0 }
 0x166   : > { %10824 = vmatprep.mubr.msk.f32.mxu0 %vm12161_vm0, %v15110_v0  ;;  %3483 = vperm.xlu1 %12084, %v395_v37  }
 0x168   : > { %v1473_v57 = vpop.f32.mrf.mxu1  ;;  %v1568_v58 = vpop.f32.mrf.mxu0  ;;  %10834 = vmatmul.mubr.f32.vlgmr.msra.gmra.mxu1 %v13068_v31  ;;  %3478 = vperm.xlu0 %12083, %v394_v32  }
 0x169   : > { %v1474_v35 = vadd.f32 %v1473_v57, %v1377_v43  ;;  %v1569_v27 = vadd.f32 %v1568_v58, %v1458_v44  ;;  %10825 = vmatmul.mubr.f32.gmra.mxu0 %v13085_v54  ;;  %10836 = vmatprep.mubr.msk.f32.mxu1 %vm12161_vm0, %v15110_v0 }
 0x16a   : > { %v10570_v41 = vpop.f32.mrf.mxu0  ;;  %v10551_v55 = vpop.f32.mrf.mxu1  ;;  %10848 = vmatprep.mubr.msk.f32.mxu0 %vm12161_vm0, %v15110_v0 }
 0x16c   : > { %10837 = vmatmul.mubr.f32.gmra.mxu1 %v13074_v42 }
 0x16d   : > { %10839 = vmatprep.mubr.msk.f32.mxu1 %vm12161_vm0, %v15110_v0 }
 0x16e   : > { %v1574_v56 = vpop.f32.mrf.mxu0 }
 0x16f   : > { %v1575_v59 = vadd.f32 %v1574_v56, %v1466_v48  ;;  %v399_v48 = vld [vmem:[#allocation4] sm:$0xff]  ;;  %v400_v56 = vld [vmem:[#allocation4 + $0x8] sm:$0xff] }
 0x170   : > { %v10573_v60 = vpop.f32.mrf.mxu0  ;;  %10840 = vmatmul.mubr.f32.gmra.mxu1 %v13085_v54 }
 0x171   : > { %10863 = vmatprep.mubr.msk.f32.mxu1 %vm12161_vm0, %v15110_v0 }
 0x173   : > { %v1580_v9 = vpop.f32.mrf.mxu0  ;;  %v1659_v61 = vpop.f32.mrf.mxu1 }
 0x174   : > { %v1581_v50 = vadd.f32 %v1580_v9, %v1474_v35  ;;  %v13215_v62 = vadd.f32 %v1659_v61, %v1569_v27  ;;  %v2880_v35 = vsel %vm2307_vm2, %v399_v48, 0 }
 0x175   : > { %v10595_v1 = vpop.f32.mrf.mxu1  ;;  %v10576_v51 = vpop.f32.mrf.mxu0  ;;  %v13231_v60 = vand.u32 4294901760, %v2880_v35 }
 0x176   : > { %v2883_v51 = vsel %vm2307_vm2, %v400_v56, 0 }
 0x177   : > { %15138 = vst [vmem:[#allocation8_spill] sm:$0xff] %v13231_v60 }
 0x179   : > { %v1665_v8 = vpop.f32.mrf.mxu1 }
 0x17a   : > { %v13217_v13 = vadd.f32 %v1665_v8, %v1575_v59 }
 0x17b   : > { %v10598_v14 = vpop.f32.mrf.mxu1 }
 0x17e   : > { %v1671_v15 = vpop.f32.mrf.mxu1 }
 0x17f   : > { %v13219_v4 = vadd.f32 %v1671_v15, %v1581_v50  ;;  %v1763_v16 = vpop.f32.mrf.mxu0 }
 0x180   : > { %v10601_v17 = vpop.f32.mrf.mxu1 }
 0x181   : > { %v10620_v6 = vpop.f32.mrf.mxu0  ;;  %v401_v17 = vld [vmem:[#allocation4 + $0x10] sm:$0x3] }
 0x188   : > { %v1773_v19 = vpop.f32.mrf.mxu0  ;;  %v1894_v21 = vpop.f32.mrf.mxu1 }
 0x189   : > { %v1895_v27 = vadd.f32 %v1894_v21, %v1763_v16  ;;  %v13235_v16 = vsub.f32 %v2880_v35, %v13231_v60 }
 0x18a   : > { %v10623_v22 = vpop.f32.mrf.mxu0  ;;  %v10645_v23 = vpop.f32.mrf.mxu1 }
 0x18b   : > { %15139 = vst [vmem:[#allocation9_spill] sm:$0xff] %v13235_v16  ;;  %v13237_v23 = vand.u32 4294901760, %v2883_v51 }
 0x18d   : > { %v1783_v10 = vpop.f32.mrf.mxu0  ;;  %15140 = vst [vmem:[#allocation10_spill] sm:$0xff] %v13237_v23 }
 0x18f   : > { %v10626_v25 = vpop.f32.mrf.mxu0 }
 0x191   : > { %v1900_v26 = vpop.f32.mrf.mxu1 }
 0x192   : > { %v1901_v41 = vadd.f32 %v1900_v26, %v1773_v19  ;;  %v2886_v26 = vsel %vm2307_vm2, %v401_v17, 0 }
 0x193   : > { %v1994_v29 = vpop.f32.mrf.mxu0  ;;  %v10648_v12 = vpop.f32.mrf.mxu1 }
 0x194   : > { %v1995_v59 = vadd.f32 %v1994_v29, %v1895_v27 }
 0x195   : > { %v10670_v30 = vpop.f32.mrf.mxu0 }
 0x197   : > { %v1906_v33 = vpop.f32.mrf.mxu1 }
 0x198   : > { %v1907_v8 = vadd.f32 %v1906_v33, %v1783_v10  ;;  %v13241_v10 = vand.u32 4294901760, %v13235_v16  ;;  %v13246_v33 = vsub.f32 %v2883_v51, %v13237_v23 }
 0x199   : > { %v10651_v34 = vpop.f32.mrf.mxu1 }
 0x19a   : > { %v2001_v18 = vpop.f32.mrf.mxu0  ;;  %15141 = vst [vmem:[#allocation11_spill] sm:$0xff] %v13241_v10  ;;  %15142 = vst [vmem:[#allocation12_spill] sm:$0xff] %v13246_v33  ;;  %v13248_v34 = vand.u32 4294901760, %v2886_v26 }
 0x19b   : > { %v2002_v9 = vadd.f32 %v2001_v18, %v1901_v41 }
 0x19c   : > { %v10673_v36 = vpop.f32.mrf.mxu0  ;;  %15143 = vst [vmem:[#allocation13_spill] sm:$0xff] %v13248_v34 }
 0x19f   : > { %v2008_v38 = vpop.f32.mrf.mxu0  ;;  %v2089_v39 = vpop.f32.mrf.mxu1 }
 0x1a0   : > { %v2090_v50 = vadd.f32 %v2089_v39, %v1995_v59  ;;  %v2009_v19 = vadd.f32 %v2008_v38, %v1907_v8 }
 0x1a1   : > { %v10695_v20 = vpop.f32.mrf.mxu1  ;;  %v10676_v43 = vpop.f32.mrf.mxu0 }
 0x1a2   : > { %v2962_v43 = vsub.f32 %v13235_v16, %v13241_v10 }
 0x1a5   : > { %v2097_v44 = vpop.f32.mrf.mxu1 }
 0x1a6   : > { %v2098_v14 = vadd.f32 %v2097_v44, %v2002_v9  ;;  %v13257_v44 = vand.u32 4294901760, %v13246_v33 }
 0x1a7   : > { %v10698_v45 = vpop.f32.mrf.mxu1 }
 0x1a8   : > { %15144 = vst [vmem:[#allocation14_spill] sm:$0xff] %v13257_v44  ;;  %v13260_v45 = vsub.f32 %v2886_v26, %v13248_v34 }
 0x1aa   : > { %v2105_v46 = vpop.f32.mrf.mxu1  ;;  %v2200_v47 = vpop.f32.mrf.mxu0  ;;  %15145 = vst [vmem:[#allocation15_spill] sm:$0xff] %v13260_v45  ;;  %v13273_v35 = vand.u32 4294901760, %v13260_v45 }
 0x1ab   : > { %v2201_v6 = vadd.f32 %v2200_v47, %v2090_v50  ;;  %v2106_v28 = vadd.f32 %v2105_v46, %v2009_v19 }
 0x1ac   : > { %v10720_v49 = vpop.f32.mrf.mxu0  ;;  %v10701_v57 = vpop.f32.mrf.mxu1  ;;  %15146 = vst [vmem:[#allocation16_spill] sm:$0xff] %v13273_v35  ;;  %v2982_v9 = vsub.f32 %v13260_v45, %v13273_v35 }
 0x1ad   : > { %v13268_v57 = vand.u32 4294901760, %v2962_v43 }
 0x1ae   : > { %v2206_v58 = vpop.f32.mrf.mxu0  ;;  %v13289_v51 = vand.u32 4294901760, %v2982_v9 }
 0x1af   : > { %v2207_v21 = vadd.f32 %v2206_v58, %v2098_v14  ;;  %v2972_v58 = vsub.f32 %v13246_v33, %v13257_v44 }
 0x1b0   : > { %v10723_v55 = vpop.f32.mrf.mxu0 }
 0x1b1   : > { %v13280_v59 = vand.u32 4294901760, %v2972_v58 }
 0x1b2   : > { %v2212_v61 = vpop.f32.mrf.mxu0 }
 0x1b3   : > { %v2291_v1 = vpop.f32.mrf.mxu1  ;;  %v2213_v30 = vadd.f32 %v2212_v61, %v2106_v28 }
 0x1b4   : > { %v10726_v15 = vpop.f32.mrf.mxu0  ;;  %v2292_v25 = vadd.f32 %v2291_v1, %v2201_v6 }
 0x1b5   : > { %v10745_v22 = vpop.f32.mrf.mxu1 }
 0x1b6   : > { %v13250_v18 = vand.u32 4294901760, %v2292_v25 }
 0x1b7   : > { %v2297_v11 = vpop.f32.mrf.mxu1 }
 0x1b8   : > { %v2298_v29 = vadd.f32 %v2297_v11, %v2207_v21  ;;  %v3031_v46 = vsub.f32 %v2292_v25, %v13250_v18 }
 0x1b9   : > { %v10748_v12 = vpop.f32.mrf.mxu1 }
 0x1ba   : > { %v13243_v32 = vand.u32 4294901760, %v2298_v29  ;;  %v3032_v27 = vand.u32 4294901760, %v3031_v46 }
 0x1bb   : > { %v2303_v36 = vpop.f32.mrf.mxu1 }
 0x1bc   : > { %v2304_v37 = vadd.f32 %v2303_v36, %v2213_v30  ;;  %v3024_v38 = vsub.f32 %v2298_v29, %v13243_v32  ;;  %v3033_v61 = vsub.f32 %v3031_v46, %v3032_v27 }
 0x1bd   : > { %v10751_v39 = vpop.f32.mrf.mxu1 }
 0x1be   : > { %v2889_v20 = vsel %vm2317_vm3, %v2304_v37, 0  ;;  %v3025_v48 = vand.u32 4294901760, %v3024_v38  ;;  %v3034_v8 = vand.u32 4294901760, %v3033_v61 }
 0x1bf   : > { %v13263_v47 = vand.u32 4294901760, %v2889_v20 }
 0x1c0   : > { %v3026_v55 = vsub.f32 %v3024_v38, %v3025_v48 }
 0x1c1   : > { %v3017_v49 = vsub.f32 %v2889_v20, %v13263_v47  ;;  %10843 = vmatpush3.msra.mxu0 %v13263_v47 }
 0x1c2   : > { %10844 = vmatprep.subr.mxu0 %v15110_v0  ;;  %v3027_v1 = vand.u32 4294901760, %v3026_v55  ;;  %v3495_v55 = vld [vmem:[%s15096_s5 + $0x30] sm:$0xff] }
 0x1c3   : > { %v3018_v41 = vand.u32 4294901760, %v3017_v49  ;;  %10845 = vmatpush3.msra.mxu0 %v13243_v32  ;;  %v13374_v61 = vand.u32 4294901760, %v3495_v55 }
 0x1c4   : > { %10846 = vmatprep.subr.mxu0 %v15110_v0 }
 0x1c5   : > { %10847 = vmatpush3.msra.mxu0 %v13250_v18  ;;  %v3019_v56 = vsub.f32 %v3017_v49, %v3018_v41 }
 0x1c6   : > { %10849 = vmatmul.mubr.f32.vlgmr.msra.gmra.mxu0 %v13268_v57  ;;  %10872 = vmatprep.subr.mxu0 %v15110_v0 }
 0x1c7   : > { %10873 = vmatpush3.msra.mxu0 %v3017_v49  ;;  %10851 = vmatprep.mubr.msk.f32.mxu0 %vm12161_vm0, %v15110_v0  ;;  %v3020_v50 = vand.u32 4294901760, %v3019_v56 }
 0x1c8   : > { %10874 = vmatprep.subr.mxu0 %v15110_v0 }
 0x1c9   : > { %10858 = vmatpush3.msra.mxu1 %v3020_v50  ;;  %10875 = vmatpush3.msra.mxu0 %v3024_v38 }
 0x1ca   : > { %10852 = vmatmul.mubr.f32.gmra.mxu0 %v13280_v59  ;;  %10859 = vmatprep.subr.mxu1 %v15110_v0 }
 0x1cb   : > { %10876 = vmatprep.subr.mxu0 %v15110_v0  ;;  %10860 = vmatpush3.msra.mxu1 %v3027_v1 }
 0x1cc   : > { %10877 = vmatpush3.msra.mxu0 %v3031_v46  ;;  %10861 = vmatprep.subr.mxu1 %v15110_v0 }
 0x1cd   : > { %10854 = vmatprep.mubr.msk.f32.mxu0 %vm12161_vm0, %v15110_v0  ;;  %10862 = vmatpush3.msra.mxu1 %v3034_v8  ;;  %v3494_v8 = vld [vmem:[%s15096_s5 + $0x28] sm:$0xff] }
 0x1ce   : > { %10855 = vmatmul.mubr.f32.gmra.mxu0 %v13289_v51  ;;  %10864 = vmatmul.mubr.f32.vlgmr.msra.gmra.mxu1 %v13231_v60 }
 0x1cf   : > { %10887 = vmatprep.subr.mxu1 %v15110_v0  ;;  %10866 = vmatprep.mubr.msk.f32.mxu1 %vm12161_vm0, %v15110_v0 }
 0x1d0   : > { %10888 = vmatpush3.msra.mxu1 %v13263_v47  ;;  %10878 = vmatprep.mubr.msk.f32.mxu0 %vm12161_vm0, %v15110_v0 }
 0x1d1   : > { %10889 = vmatprep.subr.mxu1 %v15110_v0  ;;  %10902 = vmatprep.subr.mxu0 %v15110_v0 }
 0x1d2   : > { %10890 = vmatpush3.msra.mxu1 %v13243_v32  ;;  %10879 = vmatmul.mubr.f32.vlgmr.msra.gmra.mxu0 %v13235_v16 }
 0x1d3   : > { %10867 = vmatmul.mubr.f32.gmra.mxu1 %v13237_v23  ;;  %10891 = vmatprep.subr.mxu1 %v15110_v0 }
 0x1d4   : > { %10903 = vmatpush3.msra.mxu0 %v3018_v41  ;;  %10892 = vmatpush3.msra.mxu1 %v13250_v18 }
 0x1d5   : > { %10904 = vmatprep.subr.mxu0 %v15110_v0  ;;  %10869 = vmatprep.mubr.msk.f32.mxu1 %vm12161_vm0, %v15110_v0 }
 0x1d6   : > { %10905 = vmatpush3.msra.mxu0 %v3025_v48  ;;  %10881 = vmatprep.mubr.msk.f32.mxu0 %vm12161_vm0, %v15110_v0 }
 0x1d7   : > { %10906 = vmatprep.subr.mxu0 %v15110_v0  ;;  %10870 = vmatmul.mubr.f32.gmra.mxu1 %v13248_v34 }
 0x1d8   : > { %10882 = vmatmul.mubr.f32.gmra.mxu0 %v13246_v33  ;;  %10893 = vmatprep.mubr.msk.f32.mxu1 %vm12161_vm0, %v15110_v0 }
 0x1d9   : > { %10907 = vmatpush3.msra.mxu0 %v3032_v27  ;;  %10884 = vmatprep.mubr.msk.f32.mxu0 %vm12161_vm0, %v15110_v0 }
 0x1da   : > { %10917 = vmatprep.subr.mxu1 %v15110_v0  ;;  %10932 = vmatprep.subr.mxu0 %v15110_v0 }
 0x1db   : > { %10894 = vmatmul.mubr.f32.vlgmr.msra.gmra.mxu1 %v13241_v10 }
 0x1dc   : > { %10885 = vmatmul.mubr.f32.gmra.mxu0 %v13260_v45  ;;  %10918 = vmatpush3.msra.mxu1 %v13263_v47 }
 0x1dd   : > { %10919 = vmatprep.subr.mxu1 %v15110_v0  ;;  %10896 = vmatprep.mubr.msk.f32.mxu1 %vm12161_vm0, %v15110_v0 }
 0x1de   : > { %10920 = vmatpush3.msra.mxu1 %v13243_v32  ;;  %10908 = vmatprep.mubr.msk.f32.mxu0 %vm12161_vm0, %v15110_v0 }
 0x1df   : > { %10921 = vmatprep.subr.mxu1 %v15110_v0  ;;  %10897 = vmatmul.mubr.f32.gmra.mxu1 %v13257_v44 }
 0x1e0   : > { %10909 = vmatmul.mubr.f32.vlgmr.msra.gmra.mxu0 %v13231_v60  ;;  %10922 = vmatpush3.msra.mxu1 %v13250_v18 }
 0x1e1   : > { %10899 = vmatprep.mubr.msk.f32.mxu1 %vm12161_vm0, %v15110_v0  ;;  %10911 = vmatprep.mubr.msk.f32.mxu0 %vm12161_vm0, %v15110_v0 }
 0x1e2   : > { %10957 = vmatprep.subr.mxu1 %v15110_v0 }
 0x1e3   : > { %10900 = vmatmul.mubr.f32.gmra.mxu1 %v13273_v35 }
 0x1e4   : > { %10912 = vmatmul.mubr.f32.gmra.mxu0 %v13237_v23  ;;  %10923 = vmatprep.mubr.msk.f32.mxu1 %vm12161_vm0, %v15110_v0 }
 0x1e5   : > { %10914 = vmatprep.mubr.msk.f32.mxu0 %vm12161_vm0, %v15110_v0 }
 0x1e7   : > { %10924 = vmatmul.mubr.f32.vlgmr.msra.gmra.mxu1 %v13231_v60 }
 0x1e8   : > { %10915 = vmatmul.mubr.f32.gmra.mxu0 %v13248_v34  ;;  %10926 = vmatprep.mubr.msk.f32.mxu1 %vm12161_vm0, %v15110_v0 }
 0x1e9   : > { %10948 = vmatprep.mubr.msk.f32.mxu0 %vm12161_vm0, %v15110_v0 }
 0x1eb   : > { %10927 = vmatmul.mubr.f32.gmra.mxu1 %v13237_v23 }
 0x1ec   : > { %10929 = vmatprep.mubr.msk.f32.mxu1 %vm12161_vm0, %v15110_v0 }
 0x1ef   : > { %10930 = vmatmul.mubr.f32.gmra.mxu1 %v13248_v34 }
 0x1f0   : > { %10973 = vmatprep.mubr.msk.f32.mxu1 %vm12161_vm0, %v15110_v0 }
 0x207   : > { %v2395_v14 = vpop.f32.mrf.mxu0 }
 0x208   : > { %v2396_v15 = vadd.f32 %v2395_v14, %v13215_v62 }
 0x209   : > { %v10760_v17 = vpop.f32.mrf.mxu0 }
 0x20b   : > { %v2405_v6 = vpop.f32.mrf.mxu0 }
 0x20c   : > { %v2406_v22 = vadd.f32 %v2405_v6, %v13217_v13  ;;  %v13383_v6 = vsub.f32 %v3495_v55, %v13374_v61 }
 0x20d   : > { %v10763_v19 = vpop.f32.mrf.mxu0 }
 0x20f   : > { %v2415_v21 = vpop.f32.mrf.mxu0  ;;  %v2501_v25 = vpop.f32.mrf.mxu1 }
 0x210   : > { %v2416_v11 = vadd.f32 %v2415_v21, %v13219_v4  ;;  %v2502_v26 = vadd.f32 %v2501_v25, %v2396_v15  ;;  %v3496_v4 = vld [vmem:[%s15096_s5 + $0x38] sm:$0xff]  ;;  %v3493_v21 = vld [vmem:[%s15096_s5 + $0x20] sm:$0xff] }
 0x211   : > { %v10766_v28 = vpop.f32.mrf.mxu0  ;;  %v10775_v29 = vpop.f32.mrf.mxu1  ;;  %v13366_v27 = vand.u32 4294901760, %v3496_v4 }
 0x212   : > { %v13399_v29 = vand.u32 4294901760, %v3493_v21 }
 0x213   : > { %v2591_v12 = vpop.f32.mrf.mxu0  ;;  %v13372_v9 = vsub.f32 %v3496_v4, %v13366_v27  ;;  %10933 = vmatpush3.msra.mxu0 %v13366_v27 }
 0x214   : > { %v2507_v30 = vpop.f32.mrf.mxu1  ;;  %v2592_v32 = vadd.f32 %v2591_v12, %v2502_v26  ;;  %10934 = vmatprep.subr.mxu0 %v15110_v0  ;;  %v15108_v26 = vand.u32 4294901760, %v13383_v6 }
 0x215   : > { %v2508_v18 = vadd.f32 %v2507_v30, %v2406_v22  ;;  %v10790_v36 = vpop.f32.mrf.mxu0  ;;  %v15109_v17 = vand.u32 4294901760, %v13372_v9  ;;  %v13385_v22 = vand.u32 4294901760, %v3494_v8  ;;  %10935 = vmatpush3.msra.mxu0 %v13374_v61 }
 0x216   : > { %v10778_v37 = vpop.f32.mrf.mxu1  ;;  %10936 = vmatprep.subr.mxu0 %v15110_v0 }
 0x217   : > { %v13397_v28 = vsub.f32 %v3494_v8, %v13385_v22  ;;  %10937 = vmatpush3.msra.mxu0 %v13385_v22 }
 0x218   : > { %v2513_v38 = vpop.f32.mrf.mxu1  ;;  %10938 = vmatprep.subr.mxu0 %v15110_v0 }
 0x219   : > { %v2514_v62 = vadd.f32 %v2513_v38, %v2416_v11  ;;  %v2598_v39 = vpop.f32.mrf.mxu0  ;;  %v3629_v11 = vsub.f32 %v13372_v9, %v15109_v17  ;;  %v3636_v38 = vsub.f32 %v13383_v6, %v15108_v26  ;;  %10939 = vmatpush3.msra.mxu0 %v13399_v29 }
 0x21a   : > { %v2599_v20 = vadd.f32 %v2598_v39, %v2508_v18  ;;  %v10781_v43 = vpop.f32.mrf.mxu1  ;;  %10940 = vmatprep.subr.mxu0 %v15110_v0 }
 0x21b   : > { %v10793_v13 = vpop.f32.mrf.mxu0  ;;  %v3630_v37 = vand.u32 4294901760, %v3629_v11  ;;  %v3489_v11 = vld [vmem:[%s15096_s5] sm:$0xff] }
 0x21c   : > { %v2681_v46 = vpop.f32.mrf.mxu1  ;;  %v3491_v13 = vld [vmem:[%s15096_s5 + $0x10] sm:$0xff] }
 0x21d   : > { %v2605_v47 = vpop.f32.mrf.mxu0  ;;  %v2682_v48 = vadd.f32 %v2681_v46, %v2592_v32  ;;  %v3492_v32 = vld [vmem:[%s15096_s5 + $0x18] sm:$0xff]  ;;  %10958 = vmatpush3.msra.mxu1 %v3630_v37  ;;  %v13423_v4 = vand.u32 4294901760, %v3491_v13 }
 0x21e   : > { %v2606_v49 = vadd.f32 %v2605_v47, %v2514_v62  ;;  %v10805_v58 = vpop.f32.mrf.mxu1  ;;  %v15107_v62 = vand.u32 4294901760, %v13397_v28  ;;  %v13414_v43 = vand.u32 4294901760, %v3492_v32  ;;  %v3637_v47 = vand.u32 4294901760, %v3636_v38  ;;  %10959 = vmatprep.subr.mxu1 %v15110_v0 }
 0x21f   : > { %v10796_v41 = vpop.f32.mrf.mxu0 }
 0x220   : > { %v2689_v56 = vpop.f32.mrf.mxu1  ;;  %v13430_v55 = vsub.f32 %v3492_v32, %v13414_v43  ;;  %10941 = vmatpush3.msra.mxu0 %v13414_v43  ;;  %10960 = vmatpush3.msra.mxu1 %v3637_v47 }
 0x221   : > { %v2690_v50 = vadd.f32 %v2689_v56, %v2599_v20  ;;  %v2777_v1 = vpop.f32.mrf.mxu0  ;;  %v13412_v20 = vsub.f32 %v3493_v21, %v13399_v29  ;;  %v3490_v56 = vld [vmem:[%s15096_s5 + $0x8] sm:$0xff]  ;;  %10942 = vmatprep.subr.mxu0 %v15110_v0  ;;  %10961 = vmatprep.subr.mxu1 %v15110_v0 }
 0x222   : > { %v2778_v14 = vadd.f32 %v2777_v1, %v2682_v48  ;;  %v10808_v15 = vpop.f32.mrf.mxu1  ;;  %v3643_v48 = vsub.f32 %v13397_v28, %v15107_v62  ;;  %10943 = vmatpush3.msra.mxu0 %v13423_v4 }
 0x223   : > { %v10820_v19 = vpop.f32.mrf.mxu0  ;;  %v15106_v41 = vand.u32 4294901760, %v13412_v20  ;;  %v13439_v15 = vand.u32 4294901760, %v3490_v56  ;;  %10944 = vmatprep.subr.mxu0 %v15110_v0 }
 0x224   : > { %v2697_v25 = vpop.f32.mrf.mxu1  ;;  %v3644_v8 = vand.u32 4294901760, %v3643_v48 }
 0x225   : > { %v2698_v12 = vadd.f32 %v2697_v25, %v2606_v49  ;;  %v2783_v30 = vpop.f32.mrf.mxu0  ;;  %v3650_v21 = vsub.f32 %v13412_v20, %v15106_v41  ;;  %v15105_v25 = vand.u32 4294901760, %v13430_v55  ;;  %v13453_v32 = vsub.f32 %v3490_v56, %v13439_v15  ;;  %10945 = vmatpush3.msra.mxu0 %v13439_v15 }
 0x226   : > { %v2784_v18 = vadd.f32 %v2783_v30, %v2690_v50  ;;  %v10811_v36 = vpop.f32.mrf.mxu1  ;;  %10962 = vmatpush3.msra.mxu1 %v3644_v8  ;;  %10946 = vmatprep.subr.mxu0 %v15110_v0 }
 0x227   : > { %v10823_v39 = vpop.f32.mrf.mxu0  ;;  %v13455_v36 = vand.u32 4294901760, %v3489_v11  ;;  %10963 = vmatprep.subr.mxu1 %v15110_v0  ;;  %v3651_v38 = vand.u32 4294901760, %v3650_v21  ;;  %v15102_v47 = vand.u32 4294901760, %v13453_v32 }
 0x228   : > { %v2863_v46 = vpop.f32.mrf.mxu1  ;;  %v3657_v39 = vsub.f32 %v13430_v55, %v15105_v25 }
 0x229   : > { %v2789_v49 = vpop.f32.mrf.mxu0  ;;  %v13425_v58 = vadd.f32 %v2863_v46, %v2778_v14  ;;  %v13437_v14 = vsub.f32 %v3491_v13, %v13423_v4  ;;  %v13470_v48 = vsub.f32 %v3489_v11, %v13455_v36  ;;  %10964 = vmatpush3.msra.mxu1 %v3651_v38  ;;  %10947 = vmatpush3.msra.mxu0 %v13455_v36 }
 0x22a   : > { %v2790_v50 = vadd.f32 %v2789_v49, %v2698_v12  ;;  %v10835_v1 = vpop.f32.mrf.mxu1  ;;  %10965 = vmatprep.subr.mxu1 %v15110_v0  ;;  %10982 = vmatprep.subr.mxu0 %v15110_v0 }
 0x22b   : > { %v10826_v19 = vpop.f32.mrf.mxu0  ;;  %v15104_v30 = vand.u32 4294901760, %v13437_v14  ;;  %v3671_v1 = vsub.f32 %v13453_v32, %v15102_v47  ;;  %v15103_v8 = vand.u32 4294901760, %v13470_v48 }
 0x22c   : > { %v2869_v12 = vpop.f32.mrf.mxu1 }
 0x22d   : > { %v13458_v37 = vadd.f32 %v2869_v12, %v2784_v18  ;;  %v3664_v46 = vsub.f32 %v13437_v14, %v15104_v30  ;;  %v3658_v18 = vand.u32 4294901760, %v3657_v39  ;;  %v3672_v11 = vand.u32 4294901760, %v3671_v1 }
 0x22e   : > { %v10838_v13 = vpop.f32.mrf.mxu1  ;;  %v3678_v12 = vsub.f32 %v13470_v48, %v15103_v8 }
 0x22f   : > { %v3665_v56 = vand.u32 4294901760, %v3664_v46  ;;  %10966 = vmatpush3.msra.mxu1 %v3658_v18 }
 0x230   : > { %v2875_v49 = vpop.f32.mrf.mxu1  ;;  %10967 = vmatprep.subr.mxu1 %v15110_v0  ;;  %v3679_v38 = vand.u32 4294901760, %v3678_v12 }
 0x231   : > { %v13480_v19 = vadd.f32 %v2875_v49, %v2790_v50  ;;  %10968 = vmatpush3.msra.mxu1 %v3665_v56 }
 0x232   : > { %v10841_v21 = vpop.f32.mrf.mxu1  ;;  %10969 = vmatprep.subr.mxu1 %v15110_v0 }
 0x233   : > { %10970 = vmatpush3.msra.mxu1 %v3672_v11 }
 0x234   : > { %10971 = vmatprep.subr.mxu1 %v15110_v0 }
 0x235   : > { %10972 = vmatpush3.msra.mxu1 %v3679_v38 }
 0x236   : > { %11007 = vmatprep.subr.mxu1 %v15110_v0 }
 0x286   : > { %v2965_v50 = vpop.f32.mrf.mxu0 }
 0x288   : > { %v10850_v39 = vpop.f32.mrf.mxu0 }
 0x28a   : > { %v2975_v13 = vpop.f32.mrf.mxu0 }
 0x28c   : > { %v10853_v46 = vpop.f32.mrf.mxu0 }
 0x28e   : > { %v2985_v18 = vpop.f32.mrf.mxu0  ;;  %v3071_v49 = vpop.f32.mrf.mxu1 }
 0x28f   : > { %v3072_v39 = vadd.f32 %v3071_v49, %v2965_v50 }
 0x290   : > { %v10856_v1 = vpop.f32.mrf.mxu0  ;;  %v10865_v21 = vpop.f32.mrf.mxu1 }
 0x292   : > { %v3161_v47 = vpop.f32.mrf.mxu0 }
 0x293   : > { %v3077_v8 = vpop.f32.mrf.mxu1  ;;  %v3162_v44 = vadd.f32 %v3161_v47, %v3072_v39 }
 0x294   : > { %v10880_v56 = vpop.f32.mrf.mxu0  ;;  %v3078_v21 = vadd.f32 %v3077_v8, %v2975_v13 }
 0x295   : > { %v10868_v30 = vpop.f32.mrf.mxu1 }
 0x297   : > { %v3083_v25 = vpop.f32.mrf.mxu1 }
 0x298   : > { %v3168_v12 = vpop.f32.mrf.mxu0 }
 0x299   : > { %v10871_v11 = vpop.f32.mrf.mxu1  ;;  %v3169_v30 = vadd.f32 %v3168_v12, %v3078_v21 }
 0x29a   : > { %v10883_v41 = vpop.f32.mrf.mxu0 }
 0x29b   : > { %v3251_v62 = vpop.f32.mrf.mxu1  ;;  %v3084_v41 = vadd.f32 %v3083_v25, %v2985_v18  ;;  %v13494_v25 = vpop.permute.xlu0 %3473 }
 0x29c   : > { %v3175_v38 = vpop.f32.mrf.mxu0  ;;  %v3252_v10 = vadd.f32 %v3251_v62, %v3162_v44 }
 0x29d   : > { %v10895_v26 = vpop.f32.mrf.mxu1  ;;  %v3176_v47 = vadd.f32 %v3175_v38, %v3084_v41  ;;  %v13508_v41 = vpop.permute.xlu1 %3483 }
 0x29e   : > { %v10886_v17 = vpop.f32.mrf.mxu0 }
 0x29f   : > { %v3259_v0 = vpop.f32.mrf.mxu1  ;;  %v9535_v17 = vld [vmem:[%s15098_s7] ss:$0 sm:$0xff]  ;;  %v13501_v21 = vpop.permute.xlu0 %3478 }
 0x2a0   : > { %v3347_v35 = vpop.f32.mrf.mxu0  ;;  %v3260_v16 = vadd.f32 %v3259_v0, %v3169_v30 }
 0x2a1   : > { %v10898_v46 = vpop.f32.mrf.mxu1  ;;  %v3348_v34 = vadd.f32 %v3347_v35, %v3252_v10 }
 0x2a2   : > { %v10910_v45 = vpop.f32.mrf.mxu0 }
 0x2a3   : > { %v3267_v1 = vpop.f32.mrf.mxu1 }
 0x2a4   : > { %v3353_v33 = vpop.f32.mrf.mxu0  ;;  %v3268_v13 = vadd.f32 %v3267_v1, %v3176_v47 }
 0x2a5   : > { %v10901_v56 = vpop.f32.mrf.mxu1  ;;  %v3354_v45 = vadd.f32 %v3353_v33, %v3260_v16 }
 0x2a6   : > { %v10913_v23 = vpop.f32.mrf.mxu0 }
 0x2a7   : > { %v3433_v11 = vpop.f32.mrf.mxu1 }
 0x2a8   : > { %v3359_v60 = vpop.f32.mrf.mxu0  ;;  %v3434_v26 = vadd.f32 %v3433_v11, %v3348_v34 }
 0x2a9   : > { %v10925_v50 = vpop.f32.mrf.mxu1  ;;  %v3360_v35 = vadd.f32 %v3359_v60, %v3268_v13 }
 0x2aa   : > { %v3449_v8 = vadd.f32 %v3434_v26, %v13425_v58  ;;  %v10916_v44 = vpop.f32.mrf.mxu0  ;;  %v15147_v50 = vmov 0.0  }
 0x2ab   : > { %v3439_v62 = vpop.f32.mrf.mxu1 }
 0x2ac   : > { %v3459_v49 = vadd.f32 %v9535_v17, %v3449_v8  ;;  %v3440_v10 = vadd.f32 %v3439_v62, %v3354_v45 }
 0x2ad   : > { %v10928_v23 = vpop.f32.mrf.mxu1 }
 0x2ae   : > { %v3450_v0 = vadd.f32 %v3440_v10, %v13458_v37  ;;  %vm3462_vm4 = vcmp.gt.f32.partialorder %v3459_v49, 0.0  ;;  %v3465_v34 = vmul.f32 0.2, %v3459_v49 }
 0x2af   : > { %v3445_v18 = vpop.f32.mrf.mxu1 }
 0x2b0   : > { %v3460_v12 = vadd.f32 %v9535_v17, %v3450_v0  ;;  %v3468_v39 = vsel %vm3462_vm4, %v3459_v49, %v3465_v34  ;;  %v3446_v38 = vadd.f32 %v3445_v18, %v3360_v35 }
 0x2b1   : > { %v3486_v16 = vmul.f32 %v13494_v25, %v3468_v39  ;;  %v10931_v33 = vpop.f32.mrf.mxu1 }
 0x2b2   : > { %v3451_v58 = vadd.f32 %v3446_v38, %v13480_v19  ;;  %vm3463_vm5 = vcmp.gt.f32.partialorder %v3460_v12, 0.0  ;;  %v3466_v46 = vmul.f32 0.2, %v3460_v12  ;;  %v9543_v38 = vld [vmem:[%s15096_s5 + $0x78] sm:$0xff] }
 0x2b3   : > { %v3498_v1 = vsel %vm410_vm1, %v3486_v16, 0  ;;  %v9542_v16 = vld [vmem:[%s15096_s5 + $0x70] sm:$0xff] }
 0x2b4   : > { %v13499_v60 = vand.u32 4294901760, %v3498_v1  ;;  %v3461_v37 = vadd.f32 %v9535_v17, %v3451_v58  ;;  %v3469_v56 = vsel %vm3463_vm5, %v3460_v12, %v3466_v46  ;;  %v13604_v33 = vand.u32 4294901760, %v9542_v16  ;;  %v9541_v58 = vld [vmem:[%s15096_s5 + $0x68] sm:$0xff] }
 0x2b5   : > { %v3487_v30 = vmul.f32 %v13501_v21, %v3469_v56  ;;  %v13620_v46 = vand.u32 4294901760, %v9541_v58 }
 0x2b6   : > { %v13505_v11 = vsub.f32 %v3498_v1, %v13499_v60  ;;  %10974 = vmatmul.mubr.f32.vlgmr.msra.gmra.mxu1 %v13499_v60  ;;  %vm3464_vm6 = vcmp.gt.f32.partialorder %v3461_v37, 0.0  ;;  %v3467_v19 = vmul.f32 0.2, %v3461_v37  ;;  %v13628_v1 = vsub.f32 %v9542_v16, %v13604_v33 }
 0x2b7   : > { %v3501_v26 = vsel %vm410_vm1, %v3487_v30, 0  ;;  %11008 = vmatpush3.msra.mxu1 %v13366_v27  ;;  %10976 = vmatprep.mubr.msk.f32.mxu1 %vm12161_vm0, %v15147_v50 }
 0x2b8   : > { %v13515_v17 = vand.u32 4294901760, %v13505_v11  ;;  %v13517_v47 = vand.u32 4294901760, %v3501_v26  ;;  %11009 = vmatprep.subr.mxu1 %v15147_v50  ;;  %v3470_v45 = vsel %vm3464_vm6, %v3461_v37, %v3467_v19  ;;  %v15148_v37 = vand.u32 4294901760, %v13372_v9 }
 0x2b9   : > { %v3488_v8 = vmul.f32 %v13508_v41, %v3470_v45  ;;  %11010 = vmatpush3.msra.mxu1 %v13374_v61  ;;  %v13644_v19 = vsub.f32 %v9541_v58, %v13620_v46  ;;  %v15149_v45 = vand.u32 4294901760, %v13383_v6 }
 0x2ba   : > { %v13523_v44 = vsub.f32 %v3501_v26, %v13517_v47  ;;  %11011 = vmatprep.subr.mxu1 %v15147_v50  ;;  %10977 = vmatmul.mubr.f32.gmra.mxu1 %v13517_v47  ;;  %v3582_v62 = vsub.f32 %v13505_v11, %v13515_v17  ;;  %v9538_v26 = vld [vmem:[%s15096_s5 + $0x50] sm:$0xff] }
 0x2bb   : > { %v3504_v13 = vsel %vm410_vm1, %v3488_v8, 0  ;;  %11012 = vmatpush3.msra.mxu1 %v13385_v22  ;;  %10979 = vmatprep.mubr.msk.f32.mxu1 %vm12161_vm0, %v15147_v50 }
 0x2bc   : > { %v13533_v49 = vand.u32 4294901760, %v3504_v13  ;;  %11013 = vmatprep.subr.mxu1 %v15147_v50  ;;  %v13536_v10 = vand.u32 4294901760, %v3582_v62  ;;  %v13539_v23 = vand.u32 4294901760, %v13523_v44 }
 0x2bd   : > { %11014 = vmatpush3.msra.mxu1 %v13399_v29 }
 0x2be   : > { %v13543_v35 = vsub.f32 %v3504_v13, %v13533_v49  ;;  %11015 = vmatprep.subr.mxu1 %v15147_v50  ;;  %10949 = vmatmul.mubr.f32.vlgmr.msra.gmra.mxu0 %v13536_v10  ;;  %v3592_v0 = vsub.f32 %v13523_v44, %v13539_v23  ;;  %v13670_v13 = vand.u32 4294901760, %v9538_v26 }
 0x2bf   : > { %10980 = vmatmul.mubr.f32.gmra.mxu1 %v13533_v49  ;;  %10983 = vmatpush3.msra.mxu0 %v13372_v9  ;;  %v4267_v9 = vand.u32 4294901760, %v13628_v1 }
 0x2c0   : > { %11016 = vmatpush3.msra.mxu1 %v13414_v43  ;;  %10984 = vmatprep.subr.mxu0 %v15147_v50  ;;  %v13553_v34 = vand.u32 4294901760, %v3592_v0  ;;  %v13556_v18 = vand.u32 4294901760, %v13543_v35  ;;  %v9537_v0 = vld [vmem:[%s15096_s5 + $0x48] sm:$0xff] }
 0x2c1   : > { %11017 = vmatprep.subr.mxu1 %v15147_v50  ;;  %10985 = vmatpush3.msra.mxu0 %v13383_v6  ;;  %v15150_v6 = vand.u32 4294901760, %v13397_v28 }
 0x2c2   : > { %11018 = vmatpush3.msra.mxu1 %v13423_v4  ;;  %10951 = vmatprep.mubr.msk.f32.mxu0 %vm12161_vm0, %v15147_v50  ;;  %v3602_v12 = vsub.f32 %v13543_v35, %v13556_v18 }
 0x2c3   : > { %10986 = vmatprep.subr.mxu0 %v15147_v50  ;;  %11019 = vmatprep.subr.mxu1 %v15147_v50 }
 0x2c4   : > { %10952 = vmatmul.mubr.f32.gmra.mxu0 %v13553_v34  ;;  %11020 = vmatpush3.msra.mxu1 %v13439_v15  ;;  %v13573_v39 = vand.u32 4294901760, %v3602_v12  ;;  %v4268_v12 = vsub.f32 %v13628_v1, %v4267_v9 }
 0x2c5   : > { %10987 = vmatpush3.msra.mxu0 %v13397_v28  ;;  %11021 = vmatprep.subr.mxu1 %v15147_v50 }
 0x2c6   : > { %10988 = vmatprep.subr.mxu0 %v15147_v50  ;;  %11022 = vmatpush3.msra.mxu1 %v13455_v36 }
 0x2c7   : > { %10989 = vmatpush3.msra.mxu0 %v13412_v20  ;;  %11023 = vmatprep.mubr.msk.f32.mxu1 %vm12161_vm0, %v15147_v50 }
 0x2c8   : > { %10954 = vmatprep.mubr.msk.f32.mxu0 %vm12161_vm0, %v15147_v50  ;;  %10990 = vmatprep.subr.mxu0 %v15147_v50 }
 0x2c9   : > { %11024 = vmatmul.mubr.f32.vlgmr.msra.gmra.mxu1 %v13515_v17  ;;  %11057 = vmatprep.subr.mxu1 %v15147_v50 }
 0x2ca   : > { %10955 = vmatmul.mubr.f32.gmra.mxu0 %v13573_v39  ;;  %11058 = vmatpush3.msra.mxu1 %v13366_v27  ;;  %v13598_v27 = vand.u32 4294901760, %v9543_v38 }
 0x2cb   : > { %10991 = vmatpush3.msra.mxu0 %v13430_v55  ;;  %11059 = vmatprep.subr.mxu1 %v15147_v50 }
 0x2cc   : > { %10992 = vmatprep.subr.mxu0 %v15147_v50  ;;  %11026 = vmatprep.mubr.msk.f32.mxu1 %vm12161_vm0, %v15147_v50 }
 0x2cd   : > { %10993 = vmatpush3.msra.mxu0 %v13437_v14  ;;  %11060 = vmatpush3.msra.mxu1 %v13374_v61  ;;  %v13614_v61 = vsub.f32 %v9543_v38, %v13598_v27  ;;  %v9536_v38 = vld [vmem:[%s15096_s5 + $0x40] sm:$0xff] }
 0x2ce   : > { %10994 = vmatprep.subr.mxu0 %v15147_v50  ;;  %11027 = vmatmul.mubr.f32.gmra.mxu1 %v13539_v23 }
 0x2cf   : > { %11061 = vmatprep.subr.mxu1 %v15147_v50  ;;  %10995 = vmatpush3.msra.mxu0 %v13453_v32  ;;  %v4260_v56 = vand.u32 4294901760, %v13614_v61 }
 0x2d0   : > { %11062 = vmatpush3.msra.mxu1 %v13385_v22  ;;  %10996 = vmatprep.subr.mxu0 %v15147_v50  ;;  %v9540_v22 = vld [vmem:[%s15096_s5 + $0x60] sm:$0xff] }
 0x2d1   : > { %11063 = vmatprep.subr.mxu1 %v15147_v50  ;;  %10997 = vmatpush3.msra.mxu0 %v13470_v48  ;;  %v13636_v30 = vand.u32 4294901760, %v9540_v22  ;;  %v4261_v8 = vsub.f32 %v13614_v61, %v4260_v56 }
 0x2d2   : > { %10998 = vmatprep.mubr.msk.f32.mxu0 %vm12161_vm0, %v15147_v50  ;;  %11029 = vmatprep.mubr.msk.f32.mxu1 %vm12161_vm0, %v15147_v50 }
 0x2d3   : > { %11064 = vmatpush3.msra.mxu1 %v13399_v29  ;;  %10999 = vmatmul.mubr.f32.vlgmr.msra.gmra.mxu0 %v13505_v11  ;;  %v9539_v29 = vld [vmem:[%s15096_s5 + $0x58] sm:$0xff]  ;;  %v13664_v62 = vsub.f32 %v9540_v22, %v13636_v30  ;;  %v4262_v16 = vand.u32 4294901760, %v4261_v8  ;;  %v13693_v22 = vand.u32 4294901760, %v9537_v0 }
 0x2d4   : > { %11030 = vmatmul.mubr.f32.gmra.mxu1 %v13556_v18  ;;  %11032 = vmatprep.subr.mxu0 %v15147_v50 }
 0x2d5   : > { %11065 = vmatprep.subr.mxu1 %v15147_v50  ;;  %11033 = vmatpush3.msra.mxu0 %v15148_v37  ;;  %v4281_v58 = vand.u32 4294901760, %v13664_v62 }
 0x2d6   : > { %11066 = vmatpush3.msra.mxu1 %v13414_v43  ;;  %11034 = vmatprep.subr.mxu0 %v15147_v50  ;;  %v13656_v43 = vand.u32 4294901760, %v9539_v29 }
 0x2d7   : > { %11067 = vmatprep.subr.mxu1 %v15147_v50  ;;  %11001 = vmatprep.mubr.msk.f32.mxu0 %vm12161_vm0, %v15147_v50 }
 0x2d8   : > { %11035 = vmatpush3.msra.mxu0 %v15149_v45  ;;  %11068 = vmatpush3.msra.mxu1 %v13423_v4  ;;  %v4274_v4 = vand.u32 4294901760, %v13644_v19  ;;  %v13684_v28 = vsub.f32 %v9539_v29, %v13656_v43  ;;  %v13702_v29 = vsub.f32 %v9538_v26, %v13670_v13  ;;  %v15152_v45 = vand.u32 4294901760, %v13430_v55 }
 0x2d9   : > { %11002 = vmatmul.mubr.f32.gmra.mxu0 %v13523_v44  ;;  %11036 = vmatprep.subr.mxu0 %v15147_v50  ;;  %v4282_v26 = vsub.f32 %v13664_v62, %v4281_v58 }
 0x2da   : > { %11069 = vmatprep.subr.mxu1 %v15147_v50  ;;  %11037 = vmatpush3.msra.mxu0 %v15150_v6  ;;  %v4275_v37 = vsub.f32 %v13644_v19, %v4274_v4  ;;  %v4288_v8 = vand.u32 4294901760, %v13684_v28  ;;  %v13717_v6 = vsub.f32 %v9537_v0, %v13693_v22  ;;  %v4295_v55 = vand.u32 4294901760, %v13702_v29 }
 0x2db   : > { %11070 = vmatpush3.msra.mxu1 %v13439_v15  ;;  %11038 = vmatprep.subr.mxu0 %v15147_v50  ;;  %v15151_v15 = vand.u32 4294901760, %v13412_v20  ;;  %v4269_v20 = vand.u32 4294901760, %v4268_v12  ;;  %v15153_v12 = vand.u32 4294901760, %v13437_v14  ;;  %v15154_v14 = vand.u32 4294901760, %v13453_v32 }
 0x2dc   : > { %11071 = vmatprep.subr.mxu1 %v15147_v50  ;;  %11004 = vmatprep.mubr.msk.f32.mxu0 %vm12161_vm0, %v15147_v50  ;;  %v4289_v0 = vsub.f32 %v13684_v28, %v4288_v8 }
 0x2dd   : > { %11039 = vmatpush3.msra.mxu0 %v15151_v15  ;;  %11072 = vmatpush3.msra.mxu1 %v13455_v36  ;;  %v13706_v36 = vand.u32 4294901760, %v9536_v38  ;;  %v4276_v15 = vand.u32 4294901760, %v4275_v37  ;;  %v4283_v37 = vand.u32 4294901760, %v4282_v26 }
 0x2de   : > { %11073 = vmatprep.mubr.msk.f32.mxu1 %vm12161_vm0, %v15147_v50  ;;  %11005 = vmatmul.mubr.f32.gmra.mxu0 %v13543_v35  ;;  %v4290_v32 = vand.u32 4294901760, %v4289_v0 }
 0x2df   : > { %11040 = vmatprep.subr.mxu0 %v15147_v50  ;;  %11074 = vmatmul.mubr.f32.vlgmr.msra.gmra.mxu1 %v13499_v60 }
 0x2e0   : > { %11107 = vmatprep.subr.mxu1 %v15147_v50  ;;  %11041 = vmatpush3.msra.mxu0 %v15152_v45  ;;  %v4302_v45 = vand.u32 4294901760, %v13717_v6 }
 0x2e1   : > { %11108 = vmatpush3.msra.mxu1 %v4262_v16  ;;  %11042 = vmatprep.subr.mxu0 %v15147_v50  ;;  %v13726_v16 = vsub.f32 %v9536_v38, %v13706_v36  ;;  %v4296_v38 = vsub.f32 %v13702_v29, %v4295_v55 }
 0x2e2   : > { %11109 = vmatprep.subr.mxu1 %v15147_v50  ;;  %11043 = vmatpush3.msra.mxu0 %v15153_v12  ;;  %v4303_v26 = vsub.f32 %v13717_v6, %v4302_v45 }
 0x2e3   : > { %11076 = vmatprep.mubr.msk.f32.mxu1 %vm12161_vm0, %v15147_v50  ;;  %11110 = vmatpush3.msra.mxu1 %v4269_v20  ;;  %v15155_v20 = vand.u32 4294901760, %v13470_v48  ;;  %v4309_v12 = vand.u32 4294901760, %v13726_v16  ;;  %v4297_v48 = vand.u32 4294901760, %v4296_v38  ;;  %v9550_v38 = vld [vmem:[%s15096_s5 + $0xb0] sm:$0xff] }
 0x2e4   : > { %11044 = vmatprep.subr.mxu0 %v15147_v50  ;;  %11077 = vmatmul.mubr.f32.gmra.mxu1 %v13517_v47  ;;  %v4304_v0 = vand.u32 4294901760, %v4303_v26 }
 0x2e5   : > { %11111 = vmatprep.subr.mxu1 %v15147_v50  ;;  %11045 = vmatpush3.msra.mxu0 %v15154_v14 }
 0x2e6   : > { %11112 = vmatpush3.msra.mxu1 %v4276_v15  ;;  %11046 = vmatprep.subr.mxu0 %v15147_v50  ;;  %v4310_v15 = vsub.f32 %v13726_v16, %v4309_v12 }
 0x2e7   : > { %11113 = vmatprep.subr.mxu1 %v15147_v50  ;;  %11047 = vmatpush3.msra.mxu0 %v15155_v20 }
 0x2e8   : > { %11048 = vmatprep.mubr.msk.f32.mxu0 %vm12161_vm0, %v15147_v50  ;;  %11079 = vmatprep.mubr.msk.f32.mxu1 %vm12161_vm0, %v15147_v50  ;;  %v4311_v14 = vand.u32 4294901760, %v4310_v15 }
 0x2e9   : > { %11114 = vmatpush3.msra.mxu1 %v4283_v37  ;;  %11049 = vmatmul.mubr.f32.vlgmr.msra.gmra.mxu0 %v13499_v60  ;;  %v9551_v37 = vld [vmem:[%s15096_s5 + $0xb8] sm:$0xff] }
 0x2ea   : > { %11080 = vmatmul.mubr.f32.gmra.mxu1 %v13533_v49  ;;  %11082 = vmatprep.subr.mxu0 %v15147_v50  ;;  %v13844_v20 = vand.u32 4294901760, %v9551_v37 }
 0x2eb   : > { %11115 = vmatprep.subr.mxu1 %v15147_v50  ;;  %11083 = vmatpush3.msra.mxu0 %v13598_v27 }
 0x2ec   : > { %11116 = vmatpush3.msra.mxu1 %v4290_v32  ;;  %11084 = vmatprep.subr.mxu0 %v15147_v50  ;;  %v9549_v32 = vld [vmem:[%s15096_s5 + $0xa8] sm:$0xff] }
 0x2ed   : > { %11117 = vmatprep.subr.mxu1 %v15147_v50  ;;  %11051 = vmatprep.mubr.msk.f32.mxu0 %vm12161_vm0, %v15147_v50  ;;  %v13866_v26 = vand.u32 4294901760, %v9549_v32 }
 0x2ee   : > { %11085 = vmatpush3.msra.mxu0 %v13604_v33  ;;  %11118 = vmatpush3.msra.mxu1 %v4297_v48 }
 0x2ef   : > { %11052 = vmatmul.mubr.f32.gmra.mxu0 %v13517_v47  ;;  %11086 = vmatprep.subr.mxu0 %v15147_v50 }
 0x2f0   : > { %11119 = vmatprep.subr.mxu1 %v15147_v50  ;;  %11087 = vmatpush3.msra.mxu0 %v13620_v46 }
 0x2f1   : > { %11120 = vmatpush3.msra.mxu1 %v4304_v0  ;;  %11088 = vmatprep.subr.mxu0 %v15147_v50 }
 0x2f2   : > { %11121 = vmatprep.subr.mxu1 %v15147_v50  ;;  %11054 = vmatprep.mubr.msk.f32.mxu0 %vm12161_vm0, %v15147_v50 }
 0x2f3   : > { %11089 = vmatpush3.msra.mxu0 %v13636_v30  ;;  %11122 = vmatpush3.msra.mxu1 %v4311_v14  ;;  %v13890_v14 = vsub.f32 %v9549_v32, %v13866_v26 }
 0x2f4   : > { %11123 = vmatprep.mubr.msk.f32.mxu1 %vm12161_vm0, %v15147_v50  ;;  %11055 = vmatmul.mubr.f32.gmra.mxu0 %v13533_v49 }
 0x2f5   : > { %11090 = vmatprep.subr.mxu0 %v15147_v50  ;;  %11124 = vmatmul.mubr.f32.vlgmr.msra.gmra.mxu1 %v13499_v60 }
 0x2f6   : > { %11157 = vmatprep.subr.mxu1 %v15147_v50  ;;  %11091 = vmatpush3.msra.mxu0 %v13656_v43 }
 0x2f7   : > { %11158 = vmatpush3.msra.mxu1 %v13598_v27  ;;  %11092 = vmatprep.subr.mxu0 %v15147_v50 }
 0x2f8   : > { %11159 = vmatprep.subr.mxu1 %v15147_v50  ;;  %11093 = vmatpush3.msra.mxu0 %v13670_v13 }
 0x2f9   : > { %11126 = vmatprep.mubr.msk.f32.mxu1 %vm12161_vm0, %v15147_v50  ;;  %11160 = vmatpush3.msra.mxu1 %v13604_v33 }
 0x2fa   : > { %11094 = vmatprep.subr.mxu0 %v15147_v50  ;;  %11127 = vmatmul.mubr.f32.gmra.mxu1 %v13517_v47 }
 0x2fb   : > { %11161 = vmatprep.subr.mxu1 %v15147_v50  ;;  %11095 = vmatpush3.msra.mxu0 %v13693_v22 }
 0x2fc   : > { %11162 = vmatpush3.msra.mxu1 %v13620_v46  ;;  %11096 = vmatprep.subr.mxu0 %v15147_v50 }
 0x2fd   : > { %11163 = vmatprep.subr.mxu1 %v15147_v50  ;;  %11097 = vmatpush3.msra.mxu0 %v13706_v36 }
 0x2fe   : > { %11098 = vmatprep.mubr.msk.f32.mxu0 %vm12161_vm0, %v15147_v50  ;;  %11129 = vmatprep.mubr.msk.f32.mxu1 %vm12161_vm0, %v15147_v50 }
 0x2ff   : > { %11164 = vmatpush3.msra.mxu1 %v13636_v30  ;;  %11099 = vmatmul.mubr.f32.vlgmr.msra.gmra.mxu0 %v13536_v10 }
 0x300   : > { %11130 = vmatmul.mubr.f32.gmra.mxu1 %v13533_v49  ;;  %11132 = vmatprep.subr.mxu0 %v15147_v50 }
 0x301   : > { %11165 = vmatprep.subr.mxu1 %v15147_v50  ;;  %11133 = vmatpush3.msra.mxu0 %v13614_v61 }
 0x302   : > { %11166 = vmatpush3.msra.mxu1 %v13656_v43  ;;  %11134 = vmatprep.subr.mxu0 %v15147_v50 }
 0x303   : > { %11167 = vmatprep.subr.mxu1 %v15147_v50  ;;  %11101 = vmatprep.mubr.msk.f32.mxu0 %vm12161_vm0, %v15147_v50 }
 0x304   : > { %11135 = vmatpush3.msra.mxu0 %v13628_v1  ;;  %11168 = vmatpush3.msra.mxu1 %v13670_v13  ;;  %v4906_v1 = vand.u32 4294901760, %v13890_v14 }
 0x305   : > { %11102 = vmatmul.mubr.f32.gmra.mxu0 %v13553_v34  ;;  %11136 = vmatprep.subr.mxu0 %v15147_v50 }
 0x306   : > { %11169 = vmatprep.subr.mxu1 %v15147_v50  ;;  %11137 = vmatpush3.msra.mxu0 %v13644_v19 }
 0x307   : > { %11170 = vmatpush3.msra.mxu1 %v13693_v22  ;;  %11138 = vmatprep.subr.mxu0 %v15147_v50 }
 0x308   : > { %11171 = vmatprep.subr.mxu1 %v15147_v50  ;;  %11104 = vmatprep.mubr.msk.f32.mxu0 %vm12161_vm0, %v15147_v50 }
 0x309   : > { %11139 = vmatpush3.msra.mxu0 %v13664_v62  ;;  %11172 = vmatpush3.msra.mxu1 %v13706_v36 }
 0x30a   : > { %11173 = vmatprep.mubr.msk.f32.mxu1 %vm12161_vm0, %v15147_v50  ;;  %11105 = vmatmul.mubr.f32.gmra.mxu0 %v13573_v39 }
 0x30b   : > { %11140 = vmatprep.subr.mxu0 %v15147_v50  ;;  %11174 = vmatmul.mubr.f32.vlgmr.msra.gmra.mxu1 %v13515_v17 }
 0x30c   : > { %11207 = vmatprep.subr.mxu1 %v15147_v50  ;;  %11141 = vmatpush3.msra.mxu0 %v13684_v28 }
 0x30d   : > { %11208 = vmatpush3.msra.mxu1 %v13598_v27  ;;  %11142 = vmatprep.subr.mxu0 %v15147_v50  ;;  %v13850_v27 = vand.u32 4294901760, %v9550_v38 }
 0x30e   : > { %11209 = vmatprep.subr.mxu1 %v15147_v50  ;;  %11143 = vmatpush3.msra.mxu0 %v13702_v29 }
 0x30f   : > { %11176 = vmatprep.mubr.msk.f32.mxu1 %vm12161_vm0, %v15147_v50  ;;  %11210 = vmatpush3.msra.mxu1 %v13604_v33  ;;  %v13860_v33 = vsub.f32 %v9551_v37, %v13844_v20  ;;  %v13874_v48 = vsub.f32 %v9550_v38, %v13850_v27 }
 0x310   : > { %11144 = vmatprep.subr.mxu0 %v15147_v50  ;;  %11177 = vmatmul.mubr.f32.gmra.mxu1 %v13539_v23 }
 0x311   : > { %11211 = vmatprep.subr.mxu1 %v15147_v50  ;;  %11145 = vmatpush3.msra.mxu0 %v13717_v6  ;;  %v15131_v15 = vand.u32 4294901760, %v13860_v33  ;;  %v15130_v61 = vand.u32 4294901760, %v13874_v48 }
 0x312   : > { %11212 = vmatpush3.msra.mxu1 %v13620_v46  ;;  %11146 = vmatprep.subr.mxu0 %v15147_v50  ;;  %v9548_v46 = vld [vmem:[%s15096_s5 + $0xa0] sm:$0xff] }
 0x313   : > { %11213 = vmatprep.subr.mxu1 %v15147_v50  ;;  %11147 = vmatpush3.msra.mxu0 %v13726_v16  ;;  %v13882_v0 = vand.u32 4294901760, %v9548_v46  ;;  %v4893_v37 = vsub.f32 %v13860_v33, %v15131_v15  ;;  %v4900_v32 = vsub.f32 %v13874_v48, %v15130_v61 }
 0x314   : > { %11148 = vmatprep.mubr.msk.f32.mxu0 %vm12161_vm0, %v15147_v50  ;;  %11179 = vmatprep.mubr.msk.f32.mxu1 %vm12161_vm0, %v15147_v50 }
 0x315   : > { %11214 = vmatpush3.msra.mxu1 %v13636_v30  ;;  %11149 = vmatmul.mubr.f32.vlgmr.msra.gmra.mxu0 %v13505_v11  ;;  %v9547_v30 = vld [vmem:[%s15096_s5 + $0x98] sm:$0xff]  ;;  %v13910_v38 = vsub.f32 %v9548_v46, %v13882_v0  ;;  %v4901_v62 = vand.u32 4294901760, %v4900_v32 }
 0x316   : > { %11180 = vmatmul.mubr.f32.gmra.mxu1 %v13556_v18  ;;  %11182 = vmatprep.subr.mxu0 %v15147_v50 }
 0x317   : > { %11215 = vmatprep.subr.mxu1 %v15147_v50  ;;  %11183 = vmatpush3.msra.mxu0 %v4260_v56  ;;  %v9546_v56 = vld [vmem:[%s15096_s5 + $0x90] sm:$0xff]  ;;  %v4913_v46 = vand.u32 4294901760, %v13910_v38 }
 0x318   : > { %11216 = vmatpush3.msra.mxu1 %v13656_v43  ;;  %11184 = vmatprep.subr.mxu0 %v15147_v50  ;;  %v13902_v43 = vand.u32 4294901760, %v9547_v30 }
 0x319   : > { %11217 = vmatprep.subr.mxu1 %v15147_v50  ;;  %11151 = vmatprep.mubr.msk.f32.mxu0 %vm12161_vm0, %v15147_v50 }
 0x31a   : > { %11185 = vmatpush3.msra.mxu0 %v4267_v9  ;;  %11218 = vmatpush3.msra.mxu1 %v13670_v13  ;;  %v13916_v9 = vand.u32 4294901760, %v9546_v56  ;;  %v9545_v13 = vld [vmem:[%s15096_s5 + $0x88] sm:$0xff]  ;;  %v13930_v19 = vsub.f32 %v9547_v30, %v13902_v43  ;;  %v4907_v30 = vsub.f32 %v13890_v14, %v4906_v1 }
 0x31b   : > { %11152 = vmatmul.mubr.f32.gmra.mxu0 %v13523_v44  ;;  %11186 = vmatprep.subr.mxu0 %v15147_v50  ;;  %v13939_v61 = vand.u32 4294901760, %v9545_v13 }
 0x31c   : > { %11219 = vmatprep.subr.mxu1 %v15147_v50  ;;  %11187 = vmatpush3.msra.mxu0 %v4274_v4  ;;  %v9544_v4 = vld [vmem:[%s15096_s5 + $0x80] sm:$0xff]  ;;  %v13948_v15 = vsub.f32 %v9546_v56, %v13916_v9  ;;  %v4914_v56 = vsub.f32 %v13910_v38, %v4913_v46  ;;  %v4908_v32 = vand.u32 4294901760, %v4907_v30 }
 0x31d   : > { %11220 = vmatpush3.msra.mxu1 %v13693_v22  ;;  %11188 = vmatprep.subr.mxu0 %v15147_v50  ;;  %v4894_v22 = vand.u32 4294901760, %v4893_v37  ;;  %v13963_v37 = vsub.f32 %v9545_v13, %v13939_v61 }
 0x31e   : > { %11221 = vmatprep.subr.mxu1 %v15147_v50  ;;  %11154 = vmatprep.mubr.msk.f32.mxu0 %vm12161_vm0, %v15147_v50  ;;  %v4927_v28 = vand.u32 4294901760, %v13948_v15  ;;  %v4915_v29 = vand.u32 4294901760, %v4914_v56 }
 0x31f   : > { %11189 = vmatpush3.msra.mxu0 %v4281_v58  ;;  %11222 = vmatpush3.msra.mxu1 %v13706_v36  ;;  %v13952_v58 = vand.u32 4294901760, %v9544_v4  ;;  %v4920_v36 = vand.u32 4294901760, %v13930_v19 }
 0x320   : > { %11223 = vmatprep.mubr.msk.f32.mxu1 %vm12161_vm0, %v15147_v50  ;;  %11155 = vmatmul.mubr.f32.gmra.mxu0 %v13543_v35 }
 0x321   : > { %11190 = vmatprep.subr.mxu0 %v15147_v50  ;;  %11224 = vmatmul.mubr.f32.vlgmr.msra.gmra.mxu1 %v13499_v60  ;;  %v4921_v13 = vsub.f32 %v13930_v19, %v4920_v36 }
 0x322   : > { %11257 = vmatprep.subr.mxu1 %v15147_v50  ;;  %11191 = vmatpush3.msra.mxu0 %v4288_v8  ;;  %v13972_v8 = vsub.f32 %v9544_v4, %v13952_v58  ;;  %v4928_v4 = vsub.f32 %v13948_v15, %v4927_v28 }
 0x323   : > { %11258 = vmatpush3.msra.mxu1 %v4894_v22  ;;  %11192 = vmatprep.subr.mxu0 %v15147_v50  ;;  %v4922_v6 = vand.u32 4294901760, %v4921_v13 }
 0x324   : > { %11259 = vmatprep.subr.mxu1 %v15147_v50  ;;  %11193 = vmatpush3.msra.mxu0 %v4295_v55  ;;  %v4934_v55 = vand.u32 4294901760, %v13963_v37  ;;  %v4941_v22 = vand.u32 4294901760, %v13972_v8  ;;  %v4929_v16 = vand.u32 4294901760, %v4928_v4 }
 0x325   : > { %11226 = vmatprep.mubr.msk.f32.mxu1 %vm12161_vm0, %v15147_v50  ;;  %11260 = vmatpush3.msra.mxu1 %v4901_v62 }
 0x326   : > { %11194 = vmatprep.subr.mxu0 %v15147_v50  ;;  %11227 = vmatmul.mubr.f32.gmra.mxu1 %v13517_v47 }
 0x327   : > { %11261 = vmatprep.subr.mxu1 %v15147_v50  ;;  %11195 = vmatpush3.msra.mxu0 %v4302_v45  ;;  %v4935_v45 = vsub.f32 %v13963_v37, %v4934_v55 }
 0x328   : > { %11262 = vmatpush3.msra.mxu1 %v4908_v32  ;;  %11196 = vmatprep.subr.mxu0 %v15147_v50 }
 0x329   : > { %11263 = vmatprep.subr.mxu1 %v15147_v50  ;;  %11197 = vmatpush3.msra.mxu0 %v4309_v12  ;;  %v4942_v12 = vsub.f32 %v13972_v8, %v4941_v22  ;;  %v4936_v30 = vand.u32 4294901760, %v4935_v45 }
 0x32a   : > { %11198 = vmatprep.mubr.msk.f32.mxu0 %vm12161_vm0, %v15147_v50  ;;  %11229 = vmatprep.mubr.msk.f32.mxu1 %vm12161_vm0, %v15147_v50 }
 0x32b   : > { %11264 = vmatpush3.msra.mxu1 %v4915_v29  ;;  %11199 = vmatmul.mubr.f32.vlgmr.msra.gmra.mxu0 %v13499_v60  ;;  %v4943_v62 = vand.u32 4294901760, %v4942_v12 }
 0x32c   : > { %11230 = vmatmul.mubr.f32.gmra.mxu1 %v13533_v49  ;;  %11232 = vmatprep.subr.mxu0 %v15147_v50 }
 0x32d   : > { %11265 = vmatprep.subr.mxu1 %v15147_v50  ;;  %11233 = vmatpush3.msra.mxu0 %v13844_v20 }
 0x32e   : > { %11266 = vmatpush3.msra.mxu1 %v4922_v6  ;;  %11234 = vmatprep.subr.mxu0 %v15147_v50 }
 0x32f   : > { %11267 = vmatprep.subr.mxu1 %v15147_v50  ;;  %11201 = vmatprep.mubr.msk.f32.mxu0 %vm12161_vm0, %v15147_v50 }
 0x330   : > { %11235 = vmatpush3.msra.mxu0 %v13850_v27  ;;  %11268 = vmatpush3.msra.mxu1 %v4929_v16 }
 0x331   : > { %11202 = vmatmul.mubr.f32.gmra.mxu0 %v13517_v47  ;;  %11236 = vmatprep.subr.mxu0 %v15147_v50 }
 0x332   : > { %11269 = vmatprep.subr.mxu1 %v15147_v50  ;;  %11237 = vmatpush3.msra.mxu0 %v13866_v26 }
 0x333   : > { %11270 = vmatpush3.msra.mxu1 %v4936_v30  ;;  %11238 = vmatprep.subr.mxu0 %v15147_v50 }
 0x334   : > { %11271 = vmatprep.subr.mxu1 %v15147_v50  ;;  %11204 = vmatprep.mubr.msk.f32.mxu0 %vm12161_vm0, %v15147_v50 }
 0x335   : > { %11239 = vmatpush3.msra.mxu0 %v13882_v0  ;;  %11272 = vmatpush3.msra.mxu1 %v4943_v62 }
 0x336   : > { %11273 = vmatprep.mubr.msk.f32.mxu1 %vm12161_vm0, %v15147_v50  ;;  %11205 = vmatmul.mubr.f32.gmra.mxu0 %v13533_v49 }
 0x337   : > { %11240 = vmatprep.subr.mxu0 %v15147_v50  ;;  %11274 = vmatmul.mubr.f32.vlgmr.msra.gmra.mxu1 %v13499_v60 }
 0x338   : > { %11307 = vmatprep.subr.mxu1 %v15147_v50  ;;  %11241 = vmatpush3.msra.mxu0 %v13902_v43 }
 0x339   : > { %11308 = vmatpush3.msra.mxu1 %v13844_v20  ;;  %11242 = vmatprep.subr.mxu0 %v15147_v50 }
 0x33a   : > { %11309 = vmatprep.subr.mxu1 %v15147_v50  ;;  %11243 = vmatpush3.msra.mxu0 %v13916_v9 }
 0x33b   : > { %11276 = vmatprep.mubr.msk.f32.mxu1 %vm12161_vm0, %v15147_v50  ;;  %11310 = vmatpush3.msra.mxu1 %v13850_v27 }
 0x33c   : > { %11244 = vmatprep.subr.mxu0 %v15147_v50  ;;  %11277 = vmatmul.mubr.f32.gmra.mxu1 %v13517_v47 }
 0x33d   : > { %11311 = vmatprep.subr.mxu1 %v15147_v50  ;;  %11245 = vmatpush3.msra.mxu0 %v13939_v61 }
 0x33e   : > { %11312 = vmatpush3.msra.mxu1 %v13866_v26  ;;  %11246 = vmatprep.subr.mxu0 %v15147_v50 }
 0x33f   : > { %11313 = vmatprep.subr.mxu1 %v15147_v50  ;;  %11247 = vmatpush3.msra.mxu0 %v13952_v58 }
 0x340   : > { %11248 = vmatprep.mubr.msk.f32.mxu0 %vm12161_vm0, %v15147_v50  ;;  %11279 = vmatprep.mubr.msk.f32.mxu1 %vm12161_vm0, %v15147_v50 }
 0x341   : > { %11314 = vmatpush3.msra.mxu1 %v13882_v0  ;;  %11249 = vmatmul.mubr.f32.vlgmr.msra.gmra.mxu0 %v13536_v10 }
 0x342   : > { %11280 = vmatmul.mubr.f32.gmra.mxu1 %v13533_v49  ;;  %11282 = vmatprep.subr.mxu0 %v15147_v50 }
 0x343   : > { %11315 = vmatprep.subr.mxu1 %v15147_v50  ;;  %11283 = vmatpush3.msra.mxu0 %v13860_v33 }
 0x344   : > { %11316 = vmatpush3.msra.mxu1 %v13902_v43  ;;  %11284 = vmatprep.subr.mxu0 %v15147_v50 }
 0x345   : > { %11317 = vmatprep.subr.mxu1 %v15147_v50  ;;  %11251 = vmatprep.mubr.msk.f32.mxu0 %vm12161_vm0, %v15147_v50 }
 0x346   : > { %11285 = vmatpush3.msra.mxu0 %v13874_v48  ;;  %11318 = vmatpush3.msra.mxu1 %v13916_v9 }
 0x347   : > { %11252 = vmatmul.mubr.f32.gmra.mxu0 %v13553_v34  ;;  %11286 = vmatprep.subr.mxu0 %v15147_v50 }
 0x348   : > { %11319 = vmatprep.subr.mxu1 %v15147_v50  ;;  %11287 = vmatpush3.msra.mxu0 %v13890_v14 }
 0x349   : > { %11320 = vmatpush3.msra.mxu1 %v13939_v61  ;;  %11288 = vmatprep.subr.mxu0 %v15147_v50 }
 0x34a   : > { %11321 = vmatprep.subr.mxu1 %v15147_v50  ;;  %11254 = vmatprep.mubr.msk.f32.mxu0 %vm12161_vm0, %v15147_v50 }
 0x34b   : > { %11289 = vmatpush3.msra.mxu0 %v13910_v38  ;;  %11322 = vmatpush3.msra.mxu1 %v13952_v58 }
 0x34c   : > { %11323 = vmatprep.mubr.msk.f32.mxu1 %vm12161_vm0, %v15147_v50  ;;  %11255 = vmatmul.mubr.f32.gmra.mxu0 %v13573_v39 }
 0x34d   : > { %11290 = vmatprep.subr.mxu0 %v15147_v50  ;;  %11324 = vmatmul.mubr.f32.vlgmr.msra.gmra.mxu1 %v13515_v17  ;;  %v15156_v17 = vand.u32 4294901760, %v13860_v33 }
 0x34e   : > { %11357 = vmatprep.subr.mxu1 %v15147_v50  ;;  %11291 = vmatpush3.msra.mxu0 %v13930_v19 }
 0x34f   : > { %11358 = vmatpush3.msra.mxu1 %v13844_v20  ;;  %11292 = vmatprep.subr.mxu0 %v15147_v50 }
 0x350   : > { %11359 = vmatprep.subr.mxu1 %v15147_v50  ;;  %11293 = vmatpush3.msra.mxu0 %v13948_v15 }
 0x351   : > { %11326 = vmatprep.mubr.msk.f32.mxu1 %vm12161_vm0, %v15147_v50  ;;  %11360 = vmatpush3.msra.mxu1 %v13850_v27 }
 0x352   : > { %11294 = vmatprep.subr.mxu0 %v15147_v50  ;;  %11327 = vmatmul.mubr.f32.gmra.mxu1 %v13539_v23 }
 0x353   : > { %11361 = vmatprep.subr.mxu1 %v15147_v50  ;;  %11295 = vmatpush3.msra.mxu0 %v13963_v37 }
 0x354   : > { %11362 = vmatpush3.msra.mxu1 %v13866_v26  ;;  %11296 = vmatprep.subr.mxu0 %v15147_v50 }
 0x355   : > { %11363 = vmatprep.subr.mxu1 %v15147_v50  ;;  %11297 = vmatpush3.msra.mxu0 %v13972_v8 }
 0x356   : > { %11298 = vmatprep.mubr.msk.f32.mxu0 %vm12161_vm0, %v15147_v50  ;;  %11329 = vmatprep.mubr.msk.f32.mxu1 %vm12161_vm0, %v15147_v50 }
 0x357   : > { %11364 = vmatpush3.msra.mxu1 %v13882_v0  ;;  %11299 = vmatmul.mubr.f32.vlgmr.msra.gmra.mxu0 %v13505_v11  ;;  %v15157_v11 = vand.u32 4294901760, %v13874_v48 }
 0x358   : > { %11330 = vmatmul.mubr.f32.gmra.mxu1 %v13556_v18  ;;  %11332 = vmatprep.subr.mxu0 %v15147_v50 }
 0x359   : > { %11365 = vmatprep.subr.mxu1 %v15147_v50  ;;  %11333 = vmatpush3.msra.mxu0 %v15156_v17 }
 0x35a   : > { %11366 = vmatpush3.msra.mxu1 %v13902_v43  ;;  %11334 = vmatprep.subr.mxu0 %v15147_v50 }
 0x35b   : > { %11367 = vmatprep.subr.mxu1 %v15147_v50  ;;  %11301 = vmatprep.mubr.msk.f32.mxu0 %vm12161_vm0, %v15147_v50 }
 0x35c   : > { %11335 = vmatpush3.msra.mxu0 %v15157_v11  ;;  %11368 = vmatpush3.msra.mxu1 %v13916_v9 }
 0x35d   : > { %11302 = vmatmul.mubr.f32.gmra.mxu0 %v13523_v44  ;;  %11336 = vmatprep.subr.mxu0 %v15147_v50 }
 0x35e   : > { %11369 = vmatprep.subr.mxu1 %v15147_v50  ;;  %11337 = vmatpush3.msra.mxu0 %v4906_v1 }
 0x35f   : > { %11370 = vmatpush3.msra.mxu1 %v13939_v61  ;;  %11338 = vmatprep.subr.mxu0 %v15147_v50 }
 0x360   : > { %11371 = vmatprep.subr.mxu1 %v15147_v50  ;;  %11304 = vmatprep.mubr.msk.f32.mxu0 %vm12161_vm0, %v15147_v50 }
 0x361   : > { %11339 = vmatpush3.msra.mxu0 %v4913_v46  ;;  %11372 = vmatpush3.msra.mxu1 %v13952_v58 }
 0x362   : > { %11373 = vmatprep.mubr.msk.f32.mxu1 %vm12161_vm0, %v15147_v50  ;;  %11305 = vmatmul.mubr.f32.gmra.mxu0 %v13543_v35 }
 0x363   : > { %11340 = vmatprep.subr.mxu0 %v15147_v50  ;;  %11374 = vmatmul.mubr.f32.vlgmr.msra.gmra.mxu1 %v13499_v60 }
 0x364   : > { %11341 = vmatpush3.msra.mxu0 %v4920_v36  ;;  %11376 = vmatprep.mubr.msk.f32.mxu1 %vm12161_vm0, %v15147_v50 }
 0x365   : > { %11342 = vmatprep.subr.mxu0 %v15147_v50  ;;  %11348 = vmatprep.mubr.msk.f32.mxu0 %vm12161_vm0, %v15147_v50 }
 0x366   : > { %11343 = vmatpush3.msra.mxu0 %v4927_v28  ;;  %11397 = vmatprep.subr.mxu1 %v15147_v50 }
 0x367   : > { %11344 = vmatprep.subr.mxu0 %v15147_v50  ;;  %11377 = vmatmul.mubr.f32.gmra.mxu1 %v13517_v47 }
 0x368   : > { %11345 = vmatpush3.msra.mxu0 %v4934_v55  ;;  %11379 = vmatprep.mubr.msk.f32.mxu1 %vm12161_vm0, %v15147_v50 }
 0x369   : > { %11346 = vmatprep.subr.mxu0 %v15147_v50 }
 0x36a   : > { %11347 = vmatpush3.msra.mxu0 %v4941_v22 }
 0x36b   : > { %11349 = vmatmul.mubr.f32.vlgmr.msra.gmra.mxu0 %v13499_v60  ;;  %11380 = vmatmul.mubr.f32.gmra.mxu1 %v13533_v49 }
 0x36c   : > { %11351 = vmatprep.mubr.msk.f32.mxu0 %vm12161_vm0, %v15147_v50  ;;  %11382 = vmatprep.subr.mxu0 %v15147_v50 }
 0x36d   : > { %11403 = vmatprep.mubr.msk.f32.mxu1 %vm12161_vm0, %v15147_v50 }
 0x36f   : > { %11352 = vmatmul.mubr.f32.gmra.mxu0 %v13517_v47 }
 0x370   : > { %11354 = vmatprep.mubr.msk.f32.mxu0 %vm12161_vm0, %v15147_v50 }
 0x373   : > { %11355 = vmatmul.mubr.f32.gmra.mxu0 %v13533_v49 }
 0x374   : > { %11388 = vmatprep.mubr.msk.f32.mxu0 %vm12161_vm0, %v15147_v50 }
 0x376   : > { %v3716_v60 = vpop.f32.mrf.mxu1 }
 0x378   : > { %v10975_v44 = vpop.f32.mrf.mxu1 }
 0x37a   : > { %v3722_v10 = vpop.f32.mrf.mxu1 }
 0x37c   : > { %v10978_v23 = vpop.f32.mrf.mxu1 }
 0x37e   : > { %v3585_v35 = vpop.f32.mrf.mxu0 }
 0x37f   : > { %v3728_v34 = vpop.f32.mrf.mxu1  ;;  %v3717_v56 = vadd.f32 %v3716_v60, %v3585_v35 }
 0x380   : > { %v10950_v18 = vpop.f32.mrf.mxu0 }
 0x381   : > { %v10981_v39 = vpop.f32.mrf.mxu1 }
 0x384   : > { %v3595_v20 = vpop.f32.mrf.mxu0 }
 0x385   : > { %v3723_v32 = vadd.f32 %v3722_v10, %v3595_v20 }
 0x386   : > { %v10953_v27 = vpop.f32.mrf.mxu0 }
 0x389   : > { %v3911_v33 = vpop.f32.mrf.mxu1 }
 0x38a   : > { %v3605_v47 = vpop.f32.mrf.mxu0 }
 0x38b   : > { %v11025_v26 = vpop.f32.mrf.mxu1  ;;  %v3729_v6 = vadd.f32 %v3728_v34, %v3605_v47 }
 0x38c   : > { %v10956_v48 = vpop.f32.mrf.mxu0 }
 0x38e   : > { %v3919_v15 = vpop.f32.mrf.mxu1 }
 0x390   : > { %v11028_v0 = vpop.f32.mrf.mxu1 }
 0x393   : > { %v3816_v49 = vpop.f32.mrf.mxu0 }
 0x394   : > { %v3927_v14 = vpop.f32.mrf.mxu1  ;;  %v3817_v28 = vadd.f32 %v3816_v49, %v3717_v56 }
 0x395   : > { %v11000_v61 = vpop.f32.mrf.mxu0 }
 0x396   : > { %v11031_v43 = vpop.f32.mrf.mxu1  ;;  %v3912_v4 = vadd.f32 %v3911_v33, %v3817_v28 }
 0x399   : > { %v3823_v38 = vpop.f32.mrf.mxu0 }
 0x39a   : > { %v3824_v13 = vadd.f32 %v3823_v38, %v3723_v32 }
 0x39b   : > { %v11003_v1 = vpop.f32.mrf.mxu0 }
 0x39c   : > { %v3920_v16 = vadd.f32 %v3919_v15, %v3824_v13 }
 0x39e   : > { %v3830_v9 = vpop.f32.mrf.mxu0 }
 0x39f   : > { %v4113_v19 = vpop.f32.mrf.mxu1  ;;  %v3831_v12 = vadd.f32 %v3830_v9, %v3729_v6 }
 0x3a0   : > { %v11006_v46 = vpop.f32.mrf.mxu0 }
 0x3a1   : > { %v11075_v58 = vpop.f32.mrf.mxu1  ;;  %v3928_v23 = vadd.f32 %v3927_v14, %v3831_v12 }
 0x3a4   : > { %v4119_v36 = vpop.f32.mrf.mxu1 }
 0x3a6   : > { %v11078_v37 = vpop.f32.mrf.mxu1 }
 0x3a9   : > { %v4022_v8 = vpop.f32.mrf.mxu0 }
 0x3aa   : > { %v4125_v29 = vpop.f32.mrf.mxu1  ;;  %v4023_v45 = vadd.f32 %v4022_v8, %v3912_v4 }
 0x3ab   : > { %v11050_v55 = vpop.f32.mrf.mxu0 }
 0x3ac   : > { %v11081_v22 = vpop.f32.mrf.mxu1  ;;  %v4114_v11 = vadd.f32 %v4113_v19, %v4023_v45 }
 0x3ae   : > { %v14163_v39 = vand.u32 4294901760, %v4114_v11 }
 0x3af   : > { %v4028_v30 = vpop.f32.mrf.mxu0 }
 0x3b0   : > { %v4029_v62 = vadd.f32 %v4028_v30, %v3920_v16  ;;  %v14170_v26 = vsub.f32 %v4114_v11, %v14163_v39 }
 0x3b1   : > { %v11053_v17 = vpop.f32.mrf.mxu0 }
 0x3b2   : > { %v4120_v44 = vadd.f32 %v4119_v36, %v4029_v62  ;;  %v5537_v61 = vand.u32 4294901760, %v14170_v26 }
 0x3b4   : > { %v14161_v60 = vand.u32 4294901760, %v4120_v44  ;;  %v4034_v10 = vpop.f32.mrf.mxu0  ;;  %v5538_v37 = vsub.f32 %v14170_v26, %v5537_v61 }
 0x3b5   : > { %v4035_v35 = vadd.f32 %v4034_v10, %v3928_v23  ;;  %v4348_v18 = vpop.f32.mrf.mxu1 }
 0x3b6   : > { %v11056_v20 = vpop.f32.mrf.mxu0  ;;  %v14166_v34 = vsub.f32 %v4120_v44, %v14161_v60  ;;  %v5539_v13 = vand.u32 4294901760, %v5538_v37 }
 0x3b7   : > { %v4126_v27 = vadd.f32 %v4125_v29, %v4035_v35  ;;  %v11125_v33 = vpop.f32.mrf.mxu1 }
 0x3b8   : > { %v5530_v0 = vand.u32 4294901760, %v14166_v34 }
 0x3b9   : > { %v5394_v47 = vsel %vm2317_vm3, %v4126_v27, 0 }
 0x3ba   : > { %v14172_v48 = vand.u32 4294901760, %v5394_v47  ;;  %v4354_v15 = vpop.f32.mrf.mxu1  ;;  %v5531_v46 = vsub.f32 %v14166_v34, %v5530_v0 }
 0x3bc   : > { %v5522_v49 = vsub.f32 %v5394_v47, %v14172_v48  ;;  %v11128_v14 = vpop.f32.mrf.mxu1  ;;  %11383 = vmatpush3.msra.mxu0 %v14172_v48  ;;  %v5532_v32 = vand.u32 4294901760, %v5531_v46 }
 0x3bd   : > { %11384 = vmatprep.subr.mxu0 %v15147_v50 }
 0x3be   : > { %11385 = vmatpush3.msra.mxu0 %v14161_v60  ;;  %v5523_v43 = vand.u32 4294901760, %v5522_v49 }
 0x3bf   : > { %v4217_v38 = vpop.f32.mrf.mxu0  ;;  %11386 = vmatprep.subr.mxu0 %v15147_v50 }
 0x3c0   : > { %v14181_v1 = vadd.f32 %v4348_v18, %v4217_v38  ;;  %v4360_v9 = vpop.f32.mrf.mxu1  ;;  %11387 = vmatpush3.msra.mxu0 %v14163_v39  ;;  %v5524_v19 = vsub.f32 %v5522_v49, %v5523_v43 }
 0x3c1   : > { %v11100_v58 = vpop.f32.mrf.mxu0  ;;  %11389 = vmatmul.mubr.f32.vlgmr.msra.gmra.mxu0 %v13110_v63  ;;  %11412 = vmatprep.subr.mxu0 %v15147_v50 }
 0x3c2   : > { %v11131_v36 = vpop.f32.mrf.mxu1  ;;  %11413 = vmatpush3.msra.mxu0 %v5522_v49  ;;  %11391 = vmatprep.mubr.msk.f32.mxu0 %vm12161_vm0, %v15147_v50  ;;  %v5525_v56 = vand.u32 4294901760, %v5524_v19 }
 0x3c3   : > { %11414 = vmatprep.subr.mxu0 %v15147_v50 }
 0x3c4   : > { %11398 = vmatpush3.msra.mxu1 %v5525_v56  ;;  %11415 = vmatpush3.msra.mxu0 %v14166_v34 }
 0x3c5   : > { %v4227_v28 = vpop.f32.mrf.mxu0  ;;  %11392 = vmatmul.mubr.f32.gmra.mxu0 %v13126_v5  ;;  %11399 = vmatprep.subr.mxu1 %v15147_v50 }
 0x3c6   : > { %v4355_v8 = vadd.f32 %v4354_v15, %v4227_v28  ;;  %11416 = vmatprep.subr.mxu0 %v15147_v50  ;;  %11400 = vmatpush3.msra.mxu1 %v5532_v32 }
 0x3c7   : > { %v11103_v29 = vpop.f32.mrf.mxu0  ;;  %11417 = vmatpush3.msra.mxu0 %v14170_v26  ;;  %11401 = vmatprep.subr.mxu1 %v15147_v50 }
 0x3c8   : > { %11394 = vmatprep.mubr.msk.f32.mxu0 %vm12161_vm0, %v15147_v50  ;;  %11402 = vmatpush3.msra.mxu1 %v5539_v13 }
 0x3c9   : > { %11395 = vmatmul.mubr.f32.gmra.mxu0 %v13139_v24  ;;  %11404 = vmatmul.mubr.f32.vlgmr.msra.gmra.mxu1 %v13068_v31 }
 0x3ca   : > { %v4237_v55 = vpop.f32.mrf.mxu0  ;;  %11427 = vmatprep.subr.mxu1 %v15147_v50  ;;  %11406 = vmatprep.mubr.msk.f32.mxu1 %vm12161_vm0, %v15147_v50 }
 0x3cb   : > { %v4361_v4 = vadd.f32 %v4360_v9, %v4237_v55  ;;  %v4543_v22 = vpop.f32.mrf.mxu1  ;;  %11428 = vmatpush3.msra.mxu1 %v14172_v48  ;;  %11418 = vmatprep.mubr.msk.f32.mxu0 %vm12161_vm0, %v15147_v50 }
 0x3cc   : > { %v11106_v6 = vpop.f32.mrf.mxu0  ;;  %11429 = vmatprep.subr.mxu1 %v15147_v50  ;;  %11442 = vmatprep.subr.mxu0 %v15147_v50 }
 0x3cd   : > { %v11175_v45 = vpop.f32.mrf.mxu1  ;;  %11430 = vmatpush3.msra.mxu1 %v14161_v60  ;;  %11419 = vmatmul.mubr.f32.vlgmr.msra.gmra.mxu0 %v13072_v40 }
 0x3ce   : > { %11407 = vmatmul.mubr.f32.gmra.mxu1 %v13074_v42  ;;  %11431 = vmatprep.subr.mxu1 %v15147_v50 }
 0x3cf   : > { %11443 = vmatpush3.msra.mxu0 %v5523_v43  ;;  %11432 = vmatpush3.msra.mxu1 %v14163_v39 }
 0x3d0   : > { %v4551_v16 = vpop.f32.mrf.mxu1  ;;  %11444 = vmatprep.subr.mxu0 %v15147_v50  ;;  %11409 = vmatprep.mubr.msk.f32.mxu1 %vm12161_vm0, %v15147_v50 }
 0x3d1   : > { %11445 = vmatpush3.msra.mxu0 %v5530_v0  ;;  %11421 = vmatprep.mubr.msk.f32.mxu0 %vm12161_vm0, %v15147_v50 }
 0x3d2   : > { %v11178_v12 = vpop.f32.mrf.mxu1  ;;  %11446 = vmatprep.subr.mxu0 %v15147_v50  ;;  %11410 = vmatmul.mubr.f32.gmra.mxu1 %v13085_v54 }
 0x3d3   : > { %11422 = vmatmul.mubr.f32.gmra.mxu0 %v13083_v53  ;;  %11433 = vmatprep.mubr.msk.f32.mxu1 %vm12161_vm0, %v15147_v50 }
 0x3d4   : > { %11447 = vmatpush3.msra.mxu0 %v5537_v61  ;;  %11424 = vmatprep.mubr.msk.f32.mxu0 %vm12161_vm0, %v15147_v50 }
 0x3d5   : > { %v4448_v30 = vpop.f32.mrf.mxu0  ;;  %11457 = vmatprep.subr.mxu1 %v15147_v50  ;;  %11472 = vmatprep.subr.mxu0 %v15147_v50 }
 0x3d6   : > { %v4449_v62 = vadd.f32 %v4448_v30, %v14181_v1  ;;  %v4559_v17 = vpop.f32.mrf.mxu1  ;;  %11434 = vmatmul.mubr.f32.vlgmr.msra.gmra.mxu1 %v13080_v52 }
 0x3d7   : > { %v11150_v11 = vpop.f32.mrf.mxu0  ;;  %11425 = vmatmul.mubr.f32.gmra.mxu0 %v13099_v7  ;;  %11458 = vmatpush3.msra.mxu1 %v14172_v48 }
 0x3d8   : > { %v11181_v44 = vpop.f32.mrf.mxu1  ;;  %11459 = vmatprep.subr.mxu1 %v15147_v50  ;;  %11436 = vmatprep.mubr.msk.f32.mxu1 %vm12161_vm0, %v15147_v50  ;;  %v4544_v23 = vadd.f32 %v4543_v22, %v4449_v62 }
 0x3d9   : > { %11460 = vmatpush3.msra.mxu1 %v14161_v60  ;;  %11448 = vmatprep.mubr.msk.f32.mxu0 %vm12161_vm0, %v15147_v50 }
 0x3da   : > { %11461 = vmatprep.subr.mxu1 %v15147_v50  ;;  %11437 = vmatmul.mubr.f32.gmra.mxu1 %v13096_v2 }
 0x3db   : > { %v4455_v10 = vpop.f32.mrf.mxu0  ;;  %11449 = vmatmul.mubr.f32.vlgmr.msra.gmra.mxu0 %v13068_v31  ;;  %11462 = vmatpush3.msra.mxu1 %v14163_v39 }
 0x3dc   : > { %v4456_v35 = vadd.f32 %v4455_v10, %v4355_v8  ;;  %11439 = vmatprep.mubr.msk.f32.mxu1 %vm12161_vm0, %v15147_v50  ;;  %11451 = vmatprep.mubr.msk.f32.mxu0 %vm12161_vm0, %v15147_v50 }
 0x3dd   : > { %v11153_v60 = vpop.f32.mrf.mxu0  ;;  %11487 = vmatprep.subr.mxu1 %v15147_v50 }
 0x3de   : > { %11440 = vmatmul.mubr.f32.gmra.mxu1 %v13115_v3  ;;  %v4552_v18 = vadd.f32 %v4551_v16, %v4456_v35 }
 0x3df   : > { %11452 = vmatmul.mubr.f32.gmra.mxu0 %v13074_v42  ;;  %11463 = vmatprep.mubr.msk.f32.mxu1 %vm12161_vm0, %v15147_v50 }
 0x3e0   : > { %v4462_v20 = vpop.f32.mrf.mxu0  ;;  %11454 = vmatprep.mubr.msk.f32.mxu0 %vm12161_vm0, %v15147_v50 }
 0x3e1   : > { %v4463_v39 = vadd.f32 %v4462_v20, %v4361_v4  ;;  %v4745_v27 = vpop.f32.mrf.mxu1 }
 0x3e2   : > { %v11156_v33 = vpop.f32.mrf.mxu0  ;;  %11464 = vmatmul.mubr.f32.vlgmr.msra.gmra.mxu1 %v13068_v31 }
 0x3e3   : > { %v11225_v34 = vpop.f32.mrf.mxu1  ;;  %11455 = vmatmul.mubr.f32.gmra.mxu0 %v13085_v54  ;;  %v4560_v47 = vadd.f32 %v4559_v17, %v4463_v39  ;;  %11466 = vmatprep.mubr.msk.f32.mxu1 %vm12161_vm0, %v15147_v50 }
 0x3e4   : > { %11478 = vmatprep.mubr.msk.f32.mxu0 %vm12161_vm0, %v15147_v50 }
 0x3e6   : > { %v4751_v26 = vpop.f32.mrf.mxu1  ;;  %11467 = vmatmul.mubr.f32.gmra.mxu1 %v13074_v42 }
 0x3e7   : > { %11469 = vmatprep.mubr.msk.f32.mxu1 %vm12161_vm0, %v15147_v50 }
 0x3e8   : > { %v11228_v48 = vpop.f32.mrf.mxu1 }
 0x3ea   : > { %11470 = vmatmul.mubr.f32.gmra.mxu1 %v13085_v54 }
 0x3eb   : > { %v4654_v15 = vpop.f32.mrf.mxu0  ;;  %11493 = vmatprep.mubr.msk.f32.mxu1 %vm12161_vm0, %v15147_v50 }
 0x3ec   : > { %v4655_v0 = vadd.f32 %v4654_v15, %v4544_v23  ;;  %v4757_v49 = vpop.f32.mrf.mxu1 }
 0x3ed   : > { %v11200_v14 = vpop.f32.mrf.mxu0 }
 0x3ee   : > { %v11231_v61 = vpop.f32.mrf.mxu1  ;;  %v14269_v43 = vadd.f32 %v4745_v27, %v4655_v0 }
 0x3f1   : > { %v4660_v38 = vpop.f32.mrf.mxu0 }
 0x3f2   : > { %v4661_v1 = vadd.f32 %v4660_v38, %v4552_v18 }
 0x3f3   : > { %v11203_v9 = vpop.f32.mrf.mxu0 }
 0x3f4   : > { %v14271_v19 = vadd.f32 %v4751_v26, %v4661_v1 }
 0x3f6   : > { %v4666_v46 = vpop.f32.mrf.mxu0 }
 0x3f7   : > { %v4667_v58 = vadd.f32 %v4666_v46, %v4560_v47  ;;  %v4980_v36 = vpop.f32.mrf.mxu1 }
 0x3f8   : > { %v11206_v56 = vpop.f32.mrf.mxu0 }
 0x3f9   : > { %v11275_v37 = vpop.f32.mrf.mxu1  ;;  %v14273_v32 = vadd.f32 %v4757_v49, %v4667_v58 }
 0x3fc   : > { %v4986_v28 = vpop.f32.mrf.mxu1 }
 0x3fe   : > { %v11278_v8 = vpop.f32.mrf.mxu1 }
 0x401   : > { %v4849_v13 = vpop.f32.mrf.mxu0 }
 0x402   : > { %v4992_v29 = vpop.f32.mrf.mxu1  ;;  %v4981_v27 = vadd.f32 %v4980_v36, %v4849_v13 }
 0x403   : > { %v11250_v55 = vpop.f32.mrf.mxu0 }
 0x404   : > { %v11281_v4 = vpop.f32.mrf.mxu1 }
 0x407   : > { %v4859_v22 = vpop.f32.mrf.mxu0 }
 0x408   : > { %v4987_v26 = vadd.f32 %v4986_v28, %v4859_v22 }
 0x409   : > { %v11253_v6 = vpop.f32.mrf.mxu0 }
 0x40c   : > { %v4869_v45 = vpop.f32.mrf.mxu0 }
 0x40d   : > { %v5175_v16 = vpop.f32.mrf.mxu1  ;;  %v4993_v61 = vadd.f32 %v4992_v29, %v4869_v45 }
 0x40e   : > { %v11256_v12 = vpop.f32.mrf.mxu0 }
 0x40f   : > { %v11325_v30 = vpop.f32.mrf.mxu1 }
 0x412   : > { %v5183_v62 = vpop.f32.mrf.mxu1 }
 0x414   : > { %v11328_v17 = vpop.f32.mrf.mxu1 }
 0x417   : > { %v5080_v11 = vpop.f32.mrf.mxu0 }
 0x418   : > { %v5191_v44 = vpop.f32.mrf.mxu1  ;;  %v5081_v34 = vadd.f32 %v5080_v11, %v4981_v27  ;;  %v15158_v27 = vld [vmem:[#allocation8_spill] sm:$0xff] }
 0x419   : > { %v11300_v23 = vpop.f32.mrf.mxu0 }
 0x41a   : > { %v11331_v10 = vpop.f32.mrf.mxu1  ;;  %v5176_v0 = vadd.f32 %v5175_v16, %v5081_v34  ;;  %v15160_v34 = vld [vmem:[#allocation10_spill] sm:$0xff] }
 0x41d   : > { %v5087_v35 = vpop.f32.mrf.mxu0 }
 0x41e   : > { %v5088_v15 = vadd.f32 %v5087_v35, %v4987_v26  ;;  %v15162_v26 = vld [vmem:[#allocation12_spill] sm:$0xff] }
 0x41f   : > { %v11303_v60 = vpop.f32.mrf.mxu0 }
 0x420   : > { %v5184_v58 = vadd.f32 %v5183_v62, %v5088_v15  ;;  %v15164_v15 = vld [vmem:[#allocation15_spill] sm:$0xff] }
 0x422   : > { %v5094_v18 = vpop.f32.mrf.mxu0 }
 0x423   : > { %v5377_v20 = vpop.f32.mrf.mxu1  ;;  %v5095_v46 = vadd.f32 %v5094_v18, %v4993_v61 }
 0x424   : > { %v11306_v39 = vpop.f32.mrf.mxu0 }
 0x425   : > { %v11375_v33 = vpop.f32.mrf.mxu1  ;;  %v5192_v13 = vadd.f32 %v5191_v44, %v5095_v46 }
 0x426   : > { %v15159_v33 = vld [vmem:[#allocation9_spill] sm:$0xff] }
 0x427   : > { %v5383_v47 = vpop.f32.mrf.mxu1 }
 0x429   : > { %v11378_v48 = vpop.f32.mrf.mxu1 }
 0x42a   : > { %v15163_v48 = vld [vmem:[#allocation11_spill] sm:$0xff] }
 0x42b   : > { %v5286_v49 = vpop.f32.mrf.mxu0  ;;  %v5389_v14 = vpop.f32.mrf.mxu1 }
 0x42c   : > { %v5287_v38 = vadd.f32 %v5286_v49, %v5176_v0  ;;  %v15165_v0 = vld [vmem:[#allocation14_spill] sm:$0xff]  ;;  %v15166_v49 = vld [vmem:[#allocation16_spill] sm:$0xff] }
 0x42d   : > { %v11350_v1 = vpop.f32.mrf.mxu0  ;;  %v11381_v9 = vpop.f32.mrf.mxu1 }
 0x42e   : > { %v5378_v8 = vadd.f32 %v5377_v20, %v5287_v38 }
 0x42f   : > { %v5292_v56 = vpop.f32.mrf.mxu0 }
 0x430   : > { %v5293_v37 = vadd.f32 %v5292_v56, %v5184_v58  ;;  %v14277_v22 = vand.u32 4294901760, %v5378_v8 }
 0x431   : > { %v11353_v55 = vpop.f32.mrf.mxu0 }
 0x432   : > { %v5384_v36 = vadd.f32 %v5383_v47, %v5293_v37  ;;  %v6097_v30 = vsub.f32 %v5378_v8, %v14277_v22  ;;  %v15161_v47 = vld [vmem:[#allocation13_spill] sm:$0xff] }
 0x433   : > { %v5298_v4 = vpop.f32.mrf.mxu0 }
 0x434   : > { %v14275_v6 = vand.u32 4294901760, %v5384_v36  ;;  %v5299_v28 = vadd.f32 %v5298_v4, %v5192_v13  ;;  %v6098_v44 = vand.u32 4294901760, %v6097_v30 }
 0x435   : > { %v11356_v16 = vpop.f32.mrf.mxu0 }
 0x436   : > { %v5390_v12 = vadd.f32 %v5389_v14, %v5299_v28  ;;  %v6090_v29 = vsub.f32 %v5384_v36, %v14275_v6  ;;  %v6099_v18 = vsub.f32 %v6097_v30, %v6098_v44 }
 0x438   : > { %v5955_v45 = vsel %vm2317_vm3, %v5390_v12, 0  ;;  %v6091_v17 = vand.u32 4294901760, %v6090_v29  ;;  %v6100_v39 = vand.u32 4294901760, %v6099_v18 }
 0x439   : > { %v5984_v62 = vand.u32 4294901760, %v5955_v45 }
 0x43a   : > { %v6092_v35 = vsub.f32 %v6090_v29, %v6091_v17 }
 0x43b   : > { %v6083_v11 = vsub.f32 %v5955_v45, %v5984_v62  ;;  %11473 = vmatpush3.msra.mxu0 %v5984_v62 }
 0x43c   : > { %11474 = vmatprep.subr.mxu0 %v15147_v50  ;;  %v6093_v20 = vand.u32 4294901760, %v6092_v35 }
 0x43d   : > { %11475 = vmatpush3.msra.mxu0 %v14275_v6  ;;  %v6084_v23 = vand.u32 4294901760, %v6083_v11 }
 0x43e   : > { %11476 = vmatprep.subr.mxu0 %v15147_v50 }
 0x43f   : > { %11477 = vmatpush3.msra.mxu0 %v14277_v22  ;;  %v6085_v10 = vsub.f32 %v6083_v11, %v6084_v23 }
 0x440   : > { %11479 = vmatmul.mubr.f32.vlgmr.msra.gmra.mxu0 %v13268_v57  ;;  %11502 = vmatprep.subr.mxu0 %v15147_v50 }
 0x441   : > { %11503 = vmatpush3.msra.mxu0 %v6083_v11  ;;  %11481 = vmatprep.mubr.msk.f32.mxu0 %vm12161_vm0, %v15147_v50  ;;  %v6086_v60 = vand.u32 4294901760, %v6085_v10 }
 0x442   : > { %11504 = vmatprep.subr.mxu0 %v15147_v50 }
 0x443   : > { %11488 = vmatpush3.msra.mxu1 %v6086_v60  ;;  %11505 = vmatpush3.msra.mxu0 %v6090_v29 }
 0x444   : > { %11482 = vmatmul.mubr.f32.gmra.mxu0 %v13280_v59  ;;  %11489 = vmatprep.subr.mxu1 %v15147_v50 }
 0x445   : > { %11506 = vmatprep.subr.mxu0 %v15147_v50  ;;  %11490 = vmatpush3.msra.mxu1 %v6093_v20 }
 0x446   : > { %11507 = vmatpush3.msra.mxu0 %v6097_v30  ;;  %11491 = vmatprep.subr.mxu1 %v15147_v50 }
 0x447   : > { %11484 = vmatprep.mubr.msk.f32.mxu0 %vm12161_vm0, %v15147_v50  ;;  %11492 = vmatpush3.msra.mxu1 %v6100_v39 }
 0x448   : > { %11485 = vmatmul.mubr.f32.gmra.mxu0 %v13289_v51  ;;  %11494 = vmatmul.mubr.f32.vlgmr.msra.gmra.mxu1 %v15158_v27 }
 0x449   : > { %11517 = vmatprep.subr.mxu1 %v15147_v50  ;;  %11496 = vmatprep.mubr.msk.f32.mxu1 %vm12161_vm0, %v15147_v50 }
 0x44a   : > { %11518 = vmatpush3.msra.mxu1 %v5984_v62  ;;  %11508 = vmatprep.mubr.msk.f32.mxu0 %vm12161_vm0, %v15147_v50 }
 0x44b   : > { %11519 = vmatprep.subr.mxu1 %v15147_v50  ;;  %11532 = vmatprep.subr.mxu0 %v15147_v50 }
 0x44c   : > { %11520 = vmatpush3.msra.mxu1 %v14275_v6  ;;  %11509 = vmatmul.mubr.f32.vlgmr.msra.gmra.mxu0 %v15159_v33 }
 0x44d   : > { %11497 = vmatmul.mubr.f32.gmra.mxu1 %v15160_v34  ;;  %11521 = vmatprep.subr.mxu1 %v15147_v50 }
 0x44e   : > { %11533 = vmatpush3.msra.mxu0 %v6084_v23  ;;  %11522 = vmatpush3.msra.mxu1 %v14277_v22 }
 0x44f   : > { %11534 = vmatprep.subr.mxu0 %v15147_v50  ;;  %11499 = vmatprep.mubr.msk.f32.mxu1 %vm12161_vm0, %v15147_v50 }
 0x450   : > { %11535 = vmatpush3.msra.mxu0 %v6091_v17  ;;  %11511 = vmatprep.mubr.msk.f32.mxu0 %vm12161_vm0, %v15147_v50 }
 0x451   : > { %11536 = vmatprep.subr.mxu0 %v15147_v50  ;;  %11500 = vmatmul.mubr.f32.gmra.mxu1 %v15161_v47 }
 0x452   : > { %11512 = vmatmul.mubr.f32.gmra.mxu0 %v15162_v26  ;;  %11523 = vmatprep.mubr.msk.f32.mxu1 %vm12161_vm0, %v15147_v50 }
 0x453   : > { %11537 = vmatpush3.msra.mxu0 %v6098_v44  ;;  %11514 = vmatprep.mubr.msk.f32.mxu0 %vm12161_vm0, %v15147_v50 }
 0x454   : > { %11547 = vmatprep.subr.mxu1 %v15147_v50  ;;  %11562 = vmatprep.subr.mxu0 %v15147_v50 }
 0x455   : > { %11524 = vmatmul.mubr.f32.vlgmr.msra.gmra.mxu1 %v15163_v48 }
 0x456   : > { %11515 = vmatmul.mubr.f32.gmra.mxu0 %v15164_v15  ;;  %11548 = vmatpush3.msra.mxu1 %v5984_v62 }
 0x457   : > { %11549 = vmatprep.subr.mxu1 %v15147_v50  ;;  %11526 = vmatprep.mubr.msk.f32.mxu1 %vm12161_vm0, %v15147_v50 }
 0x458   : > { %11550 = vmatpush3.msra.mxu1 %v14275_v6  ;;  %11538 = vmatprep.mubr.msk.f32.mxu0 %vm12161_vm0, %v15147_v50 }
 0x459   : > { %11551 = vmatprep.subr.mxu1 %v15147_v50  ;;  %11527 = vmatmul.mubr.f32.gmra.mxu1 %v15165_v0 }
 0x45a   : > { %11539 = vmatmul.mubr.f32.vlgmr.msra.gmra.mxu0 %v15158_v27  ;;  %11552 = vmatpush3.msra.mxu1 %v14277_v22 }
 0x45b   : > { %11529 = vmatprep.mubr.msk.f32.mxu1 %vm12161_vm0, %v15147_v50  ;;  %11541 = vmatprep.mubr.msk.f32.mxu0 %vm12161_vm0, %v15147_v50 }
 0x45c   : > { %11579 = vmatprep.subr.mxu1 %v15147_v50 }
 0x45d   : > { %11530 = vmatmul.mubr.f32.gmra.mxu1 %v15166_v49 }
 0x45e   : > { %11542 = vmatmul.mubr.f32.gmra.mxu0 %v15160_v34  ;;  %11553 = vmatprep.mubr.msk.f32.mxu1 %vm12161_vm0, %v15147_v50 }
 0x45f   : > { %11544 = vmatprep.mubr.msk.f32.mxu0 %vm12161_vm0, %v15147_v50 }
 0x461   : > { %11554 = vmatmul.mubr.f32.vlgmr.msra.gmra.mxu1 %v15158_v27 }
 0x462   : > { %11545 = vmatmul.mubr.f32.gmra.mxu0 %v15161_v47  ;;  %11556 = vmatprep.mubr.msk.f32.mxu1 %vm12161_vm0, %v15147_v50 }
 0x463   : > { %11570 = vmatprep.mubr.msk.f32.mxu0 %vm12161_vm0, %v15147_v50 }
 0x465   : > { %11557 = vmatmul.mubr.f32.gmra.mxu1 %v15160_v34 }
 0x466   : > { %11559 = vmatprep.mubr.msk.f32.mxu1 %vm12161_vm0, %v15147_v50 }
 0x469   : > { %11560 = vmatmul.mubr.f32.gmra.mxu1 %v15161_v47 }
 0x46a   : > { %11587 = vmatprep.mubr.msk.f32.mxu1 %vm12161_vm0, %v15147_v50 }
 0x481   : > { %v5470_v14 = vpop.f32.mrf.mxu0 }
 0x482   : > { %v5471_v61 = vadd.f32 %v5470_v14, %v14269_v43 }
 0x483   : > { %v11390_v38 = vpop.f32.mrf.mxu0 }
 0x485   : > { %v5480_v1 = vpop.f32.mrf.mxu0 }
 0x486   : > { %v5481_v9 = vadd.f32 %v5480_v1, %v14271_v19 }
 0x487   : > { %v11393_v46 = vpop.f32.mrf.mxu0 }
 0x488   : > { %v6543_v46 = vld [vmem:[%s15097_s6 + $0x18] sm:$0xff] }
 0x489   : > { %v5490_v58 = vpop.f32.mrf.mxu0  ;;  %v5576_v56 = vpop.f32.mrf.mxu1 }
 0x48a   : > { %v5491_v37 = vadd.f32 %v5490_v58, %v14273_v32  ;;  %v5577_v8 = vadd.f32 %v5576_v56, %v5471_v61  ;;  %v14366_v56 = vand.u32 4294901760, %v6543_v46 }
 0x48b   : > { %v11396_v55 = vpop.f32.mrf.mxu0  ;;  %v11405_v36 = vpop.f32.mrf.mxu1 }
 0x48c   : > { %11563 = vmatpush3.msra.mxu0 %v14366_v56 }
 0x48d   : > { %v5666_v13 = vpop.f32.mrf.mxu0  ;;  %11564 = vmatprep.subr.mxu0 %v15147_v50 }
 0x48e   : > { %v5582_v4 = vpop.f32.mrf.mxu1  ;;  %v5667_v6 = vadd.f32 %v5666_v13, %v5577_v8  ;;  %v6542_v8 = vld [vmem:[%s15097_s6 + $0x10] sm:$0xff]  ;;  %v14374_v13 = vsub.f32 %v6543_v46, %v14366_v56 }
 0x48f   : > { %v5583_v28 = vadd.f32 %v5582_v4, %v5481_v9  ;;  %v11420_v22 = vpop.f32.mrf.mxu0  ;;  %v14376_v4 = vand.u32 4294901760, %v6542_v8 }
 0x490   : > { %v11408_v16 = vpop.f32.mrf.mxu1  ;;  %v6541_v22 = vld [vmem:[%s15097_s6 + $0x8] sm:$0xff] }
 0x491   : > { %11565 = vmatpush3.msra.mxu0 %v14376_v4 }
 0x492   : > { %v5588_v12 = vpop.f32.mrf.mxu1  ;;  %11566 = vmatprep.subr.mxu0 %v15147_v50 }
 0x493   : > { %v5589_v43 = vadd.f32 %v5588_v12, %v5491_v37  ;;  %v5673_v29 = vpop.f32.mrf.mxu0  ;;  %v15135_v12 = vand.u32 4294901760, %v14374_v13 }
 0x494   : > { %v5674_v45 = vadd.f32 %v5673_v29, %v5583_v28  ;;  %v11411_v30 = vpop.f32.mrf.mxu1  ;;  %v14387_v29 = vand.u32 4294901760, %v6541_v22 }
 0x495   : > { %v11423_v19 = vpop.f32.mrf.mxu0  ;;  %v6540_v30 = vld [vmem:[%s15097_s6] sm:$0xff] }
 0x496   : > { %v5756_v62 = vpop.f32.mrf.mxu1  ;;  %11567 = vmatpush3.msra.mxu0 %v14387_v29 }
 0x497   : > { %v5680_v17 = vpop.f32.mrf.mxu0  ;;  %v5757_v11 = vadd.f32 %v5756_v62, %v5667_v6  ;;  %v6681_v62 = vsub.f32 %v14374_v13, %v15135_v12  ;;  %11568 = vmatprep.subr.mxu0 %v15147_v50 }
 0x498   : > { %v5681_v44 = vadd.f32 %v5680_v17, %v5589_v43  ;;  %v11435_v32 = vpop.f32.mrf.mxu1  ;;  %v14385_v43 = vsub.f32 %v6542_v8, %v14376_v4 }
 0x499   : > { %v11426_v23 = vpop.f32.mrf.mxu0  ;;  %v14404_v32 = vand.u32 4294901760, %v6540_v30 }
 0x49a   : > { %v5764_v10 = vpop.f32.mrf.mxu1  ;;  %v15134_v17 = vand.u32 4294901760, %v14385_v43  ;;  %v6682_v23 = vand.u32 4294901760, %v6681_v62 }
 0x49b   : > { %v5765_v35 = vadd.f32 %v5764_v10, %v5674_v45  ;;  %v5852_v60 = vpop.f32.mrf.mxu0  ;;  %11569 = vmatpush3.msra.mxu0 %v14404_v32 }
 0x49c   : > { %v5853_v18 = vadd.f32 %v5852_v60, %v5757_v11  ;;  %v11438_v20 = vpop.f32.mrf.mxu1  ;;  %v14401_v11 = vsub.f32 %v6541_v22, %v14387_v29  ;;  %v6688_v10 = vsub.f32 %v14385_v43, %v15134_v17  ;;  %11580 = vmatpush3.msra.mxu1 %v6682_v23  ;;  %11596 = vmatprep.subr.mxu0 %v15147_v50 }
 0x49d   : > { %v11450_v39 = vpop.f32.mrf.mxu0  ;;  %11581 = vmatprep.subr.mxu1 %v15147_v50 }
 0x49e   : > { %v5772_v14 = vpop.f32.mrf.mxu1  ;;  %v6689_v39 = vand.u32 4294901760, %v6688_v10 }
 0x49f   : > { %v5773_v61 = vadd.f32 %v5772_v14, %v5681_v44  ;;  %v5858_v38 = vpop.f32.mrf.mxu0 }
 0x4a0   : > { %v5859_v1 = vadd.f32 %v5858_v38, %v5765_v35  ;;  %v11441_v9 = vpop.f32.mrf.mxu1  ;;  %v15133_v35 = vand.u32 4294901760, %v14401_v11  ;;  %11582 = vmatpush3.msra.mxu1 %v6689_v39 }
 0x4a1   : > { %v11453_v58 = vpop.f32.mrf.mxu0  ;;  %11583 = vmatprep.subr.mxu1 %v15147_v50 }
 0x4a2   : > { %v5938_v37 = vpop.f32.mrf.mxu1  ;;  %v6695_v14 = vsub.f32 %v14401_v11, %v15133_v35 }
 0x4a3   : > { %v5864_v55 = vpop.f32.mrf.mxu0  ;;  %v14371_v36 = vadd.f32 %v5938_v37, %v5853_v18  ;;  %v14412_v18 = vsub.f32 %v6540_v30, %v14404_v32 }
 0x4a4   : > { %v5865_v6 = vadd.f32 %v5864_v55, %v5773_v61  ;;  %v11465_v28 = vpop.f32.mrf.mxu1 }
 0x4a5   : > { %v11456_v16 = vpop.f32.mrf.mxu0  ;;  %v15132_v38 = vand.u32 4294901760, %v14412_v18 }
 0x4a6   : > { %v5944_v45 = vpop.f32.mrf.mxu1 }
 0x4a7   : > { %v14394_v19 = vadd.f32 %v5944_v45, %v5859_v1  ;;  %v6696_v1 = vand.u32 4294901760, %v6695_v14  ;;  %v6702_v9 = vsub.f32 %v14412_v18, %v15132_v38 }
 0x4a8   : > { %v11468_v44 = vpop.f32.mrf.mxu1 }
 0x4a9   : > { %11584 = vmatpush3.msra.mxu1 %v6696_v1  ;;  %v6703_v46 = vand.u32 4294901760, %v6702_v9 }
 0x4aa   : > { %v5950_v60 = vpop.f32.mrf.mxu1  ;;  %11585 = vmatprep.subr.mxu1 %v15147_v50 }
 0x4ab   : > { %v14415_v20 = vadd.f32 %v5950_v60, %v5865_v6  ;;  %11586 = vmatpush3.msra.mxu1 %v6703_v46 }
 0x4ac   : > { %v11471_v61 = vpop.f32.mrf.mxu1  ;;  %11613 = vmatprep.subr.mxu1 %v15147_v50 }
 0x500   : > { %v6031_v58 = vpop.f32.mrf.mxu0 }
 0x502   : > { %v11480_v37 = vpop.f32.mrf.mxu0 }
 0x504   : > { %v6041_v8 = vpop.f32.mrf.mxu0 }
 0x506   : > { %v11483_v55 = vpop.f32.mrf.mxu0 }
 0x508   : > { %v6051_v6 = vpop.f32.mrf.mxu0  ;;  %v6137_v28 = vpop.f32.mrf.mxu1 }
 0x509   : > { %v6138_v37 = vadd.f32 %v6137_v28, %v6031_v58  ;;  %v9552_v58 = vld [vmem:[%s15099_s8] ss:$0 sm:$0xff] }
 0x50a   : > { %v11486_v22 = vpop.f32.mrf.mxu0  ;;  %v11495_v16 = vpop.f32.mrf.mxu1 }
 0x50c   : > { %v6227_v45 = vpop.f32.mrf.mxu0 }
 0x50d   : > { %v6143_v30 = vpop.f32.mrf.mxu1  ;;  %v6228_v35 = vadd.f32 %v6227_v45, %v6138_v37 }
 0x50e   : > { %v11510_v62 = vpop.f32.mrf.mxu0  ;;  %v6144_v16 = vadd.f32 %v6143_v30, %v6041_v8 }
 0x50f   : > { %v11498_v44 = vpop.f32.mrf.mxu1 }
 0x511   : > { %v6149_v23 = vpop.f32.mrf.mxu1 }
 0x512   : > { %v6234_v10 = vpop.f32.mrf.mxu0 }
 0x513   : > { %v11501_v60 = vpop.f32.mrf.mxu1  ;;  %v6235_v44 = vadd.f32 %v6234_v10, %v6144_v16 }
 0x514   : > { %v11513_v39 = vpop.f32.mrf.mxu0 }
 0x515   : > { %v6317_v14 = vpop.f32.mrf.mxu1  ;;  %v6150_v39 = vadd.f32 %v6149_v23, %v6051_v6 }
 0x516   : > { %v6241_v61 = vpop.f32.mrf.mxu0  ;;  %v6318_v12 = vadd.f32 %v6317_v14, %v6228_v35 }
 0x517   : > { %v11525_v1 = vpop.f32.mrf.mxu1  ;;  %v6242_v45 = vadd.f32 %v6241_v61, %v6150_v39 }
 0x518   : > { %v11516_v9 = vpop.f32.mrf.mxu0 }
 0x519   : > { %v6325_v46 = vpop.f32.mrf.mxu1 }
 0x51a   : > { %v6413_v38 = vpop.f32.mrf.mxu0  ;;  %v6326_v48 = vadd.f32 %v6325_v46, %v6235_v44 }
 0x51b   : > { %v11528_v55 = vpop.f32.mrf.mxu1  ;;  %v6414_v0 = vadd.f32 %v6413_v38, %v6318_v12 }
 0x51c   : > { %v11540_v17 = vpop.f32.mrf.mxu0 }
 0x51d   : > { %v6333_v22 = vpop.f32.mrf.mxu1 }
 0x51e   : > { %v6419_v49 = vpop.f32.mrf.mxu0  ;;  %v6334_v14 = vadd.f32 %v6333_v22, %v6242_v45 }
 0x51f   : > { %v11531_v62 = vpop.f32.mrf.mxu1  ;;  %v6420_v17 = vadd.f32 %v6419_v49, %v6326_v48 }
 0x520   : > { %v11543_v15 = vpop.f32.mrf.mxu0 }
 0x521   : > { %v6499_v60 = vpop.f32.mrf.mxu1 }
 0x522   : > { %v6425_v26 = vpop.f32.mrf.mxu0  ;;  %v6500_v1 = vadd.f32 %v6499_v60, %v6414_v0 }
 0x523   : > { %v11555_v28 = vpop.f32.mrf.mxu1  ;;  %v6426_v38 = vadd.f32 %v6425_v26, %v6334_v14  ;;  %v9556_v14 = vld [vmem:[%s15097_s6 + $0x38] sm:$0xff] }
 0x524   : > { %v6515_v8 = vadd.f32 %v6500_v1, %v14371_v36  ;;  %v11546_v35 = vpop.f32.mrf.mxu0 }
 0x525   : > { %v6505_v30 = vpop.f32.mrf.mxu1 }
 0x526   : > { %v6525_v10 = vadd.f32 %v9552_v58, %v6515_v8  ;;  %v6506_v12 = vadd.f32 %v6505_v30, %v6420_v17 }
 0x527   : > { %v11558_v15 = vpop.f32.mrf.mxu1 }
 0x528   : > { %vm6528_vm7 = vcmp.gt.f32.partialorder %v6525_v10, 0.0  ;;  %v6531_v6 = vmul.f32 0.2, %v6525_v10  ;;  %v6516_v0 = vadd.f32 %v6506_v12, %v14394_v19 }
 0x529   : > { %v6511_v23 = vpop.f32.mrf.mxu1 }
 0x52a   : > { %v6534_v9 = vsel %vm6528_vm7, %v6525_v10, %v6531_v6  ;;  %v6526_v46 = vadd.f32 %v9552_v58, %v6516_v0  ;;  %v6512_v37 = vadd.f32 %v6511_v23, %v6426_v38  ;;  %v14497_v6 = vand.u32 4294901760, %v9556_v14  ;;  %v9555_v0 = vld [vmem:[%s15097_s6 + $0x30] sm:$0xff] }
 0x52b   : > { %v6537_v48 = vmul.f32 %v6534_v9, %v13494_v25  ;;  %v11561_v49 = vpop.f32.mrf.mxu1  ;;  %v14510_v9 = vand.u32 4294901760, %v9555_v0 }
 0x52c   : > { %vm6529_vm9 = vcmp.gt.f32.partialorder %v6526_v46, 0.0  ;;  %v6532_v36 = vmul.f32 0.2, %v6526_v46  ;;  %v6517_v61 = vadd.f32 %v6512_v37, %v14415_v20  ;;  %v9553_v49 = vld [vmem:[%s15097_s6 + $0x20] sm:$0xff] }
 0x52d   : > { %v6546_v55 = vsel %vm6544_vm8, %v6537_v48, 0  ;;  %v14521_v48 = vsub.f32 %v9556_v14, %v14497_v6  ;;  %v15170_v14 = vand.u32 4294901760, %v14412_v18 }
 0x52e   : > { %v14437_v22 = vand.u32 4294901760, %v6546_v55  ;;  %v6535_v26 = vsel %vm6529_vm9, %v6526_v46, %v6532_v36  ;;  %v6527_v16 = vadd.f32 %v9552_v58, %v6517_v61  ;;  %v9554_v46 = vld [vmem:[%s15097_s6 + $0x28] sm:$0xff]  ;;  %v14535_v61 = vsub.f32 %v9555_v0, %v14510_v9 }
 0x52f   : > { %v6538_v19 = vmul.f32 %v6535_v26, %v13501_v21  ;;  %v14530_v36 = vand.u32 4294901760, %v9554_v46 }
 0x530   : > { %v14441_v62 = vsub.f32 %v6546_v55, %v14437_v22  ;;  %vm6530_vm10 = vcmp.gt.f32.partialorder %v6527_v16, 0.0  ;;  %v6533_v44 = vmul.f32 0.2, %v6527_v16  ;;  %11588 = vmatmul.mubr.f32.vlgmr.msra.gmra.mxu1 %v14437_v22  ;;  %v14541_v55 = vand.u32 4294901760, %v9553_v49 }
 0x531   : > { %v6549_v60 = vsel %vm6544_vm8, %v6538_v19, 0  ;;  %11590 = vmatprep.mubr.msk.f32.mxu1 %vm12161_vm0, %v15147_v50  ;;  %11614 = vmatpush3.msra.mxu1 %v14366_v56  ;;  %v14549_v26 = vsub.f32 %v9554_v46, %v14530_v36 }
 0x532   : > { %v14449_v20 = vand.u32 4294901760, %v14441_v62  ;;  %v14451_v39 = vand.u32 4294901760, %v6549_v60  ;;  %v6536_v1 = vsel %vm6530_vm10, %v6527_v16, %v6533_v44  ;;  %11615 = vmatprep.subr.mxu1 %v15147_v50  ;;  %v7263_v16 = vand.u32 4294901760, %v14535_v61 }
 0x533   : > { %v6539_v58 = vmul.f32 %v6536_v1, %v13508_v41  ;;  %11616 = vmatpush3.msra.mxu1 %v14376_v4  ;;  %v14562_v19 = vsub.f32 %v9553_v49, %v14541_v55  ;;  %v15167_v44 = vand.u32 4294901760, %v14374_v13  ;;  %v9558_v49 = vld [vmem:[%s15097_s6 + $0x48] sm:$0xff] }
 0x534   : > { %v14457_v28 = vsub.f32 %v6549_v60, %v14451_v39  ;;  %11591 = vmatmul.mubr.f32.gmra.mxu1 %v14451_v39  ;;  %v6626_v45 = vsub.f32 %v14441_v62, %v14449_v20  ;;  %11617 = vmatprep.subr.mxu1 %v15147_v50  ;;  %v7264_v60 = vsub.f32 %v14535_v61, %v7263_v16 }
 0x535   : > { %v6552_v17 = vsel %vm6544_vm8, %v6539_v58, 0  ;;  %11593 = vmatprep.mubr.msk.f32.mxu1 %vm12161_vm0, %v15147_v50  ;;  %11618 = vmatpush3.msra.mxu1 %v14387_v29  ;;  %v15168_v58 = vand.u32 4294901760, %v14385_v43 }
 0x536   : > { %v14467_v8 = vand.u32 4294901760, %v6552_v17  ;;  %v14469_v35 = vand.u32 4294901760, %v6626_v45  ;;  %11619 = vmatprep.subr.mxu1 %v15147_v50  ;;  %v14473_v30 = vand.u32 4294901760, %v14457_v28  ;;  %v7265_v45 = vand.u32 4294901760, %v7264_v60 }
 0x537   : > { %11620 = vmatpush3.msra.mxu1 %v14404_v32  ;;  %v14680_v60 = vand.u32 4294901760, %v9558_v49 }
 0x538   : > { %v14480_v10 = vsub.f32 %v6552_v17, %v14467_v8  ;;  %11571 = vmatmul.mubr.f32.vlgmr.msra.gmra.mxu0 %v14469_v35  ;;  %11594 = vmatmul.mubr.f32.gmra.mxu1 %v14467_v8  ;;  %v6636_v12 = vsub.f32 %v14457_v28, %v14473_v30  ;;  %v15169_v17 = vand.u32 4294901760, %v14401_v11 }
 0x539   : > { %11573 = vmatprep.mubr.msk.f32.mxu0 %vm12161_vm0, %v15147_v50  ;;  %11621 = vmatprep.mubr.msk.f32.mxu1 %vm12161_vm0, %v15147_v50 }
 0x53a   : > { %v14490_v15 = vand.u32 4294901760, %v6636_v12  ;;  %11597 = vmatpush3.msra.mxu0 %v14374_v13  ;;  %v14494_v38 = vand.u32 4294901760, %v14480_v10  ;;  %11647 = vmatprep.subr.mxu1 %v15147_v50 }
 0x53b   : > { %11598 = vmatprep.subr.mxu0 %v15147_v50 }
 0x53c   : > { %11574 = vmatmul.mubr.f32.gmra.mxu0 %v14490_v15  ;;  %11622 = vmatmul.mubr.f32.vlgmr.msra.gmra.mxu1 %v14449_v20  ;;  %v6646_v23 = vsub.f32 %v14480_v10, %v14494_v38 }
 0x53d   : > { %11576 = vmatprep.mubr.msk.f32.mxu0 %vm12161_vm0, %v15147_v50  ;;  %11599 = vmatpush3.msra.mxu0 %v14385_v43 }
 0x53e   : > { %11624 = vmatprep.mubr.msk.f32.mxu1 %vm12161_vm0, %v15147_v50  ;;  %v14517_v37 = vand.u32 4294901760, %v6646_v23  ;;  %11600 = vmatprep.subr.mxu0 %v15147_v50  ;;  %v9559_v23 = vld [vmem:[%s15097_s6 + $0x50] sm:$0xff] }
 0x53f   : > { %11601 = vmatpush3.msra.mxu0 %v14401_v11  ;;  %11648 = vmatpush3.msra.mxu1 %v14366_v56  ;;  %v7256_v56 = vand.u32 4294901760, %v14521_v48  ;;  %v14663_v46 = vand.u32 4294901760, %v9559_v23 }
 0x540   : > { %11577 = vmatmul.mubr.f32.gmra.mxu0 %v14517_v37  ;;  %11625 = vmatmul.mubr.f32.gmra.mxu1 %v14473_v30 }
 0x541   : > { %11602 = vmatprep.subr.mxu0 %v15147_v50  ;;  %11649 = vmatprep.subr.mxu1 %v15147_v50 }
 0x542   : > { %11603 = vmatpush3.msra.mxu0 %v14412_v18  ;;  %11604 = vmatprep.mubr.msk.f32.mxu0 %vm12161_vm0, %v15147_v50  ;;  %v9560_v18 = vld [vmem:[%s15097_s6 + $0x58] sm:$0xff] }
 0x543   : > { %11627 = vmatprep.mubr.msk.f32.mxu1 %vm12161_vm0, %v15147_v50  ;;  %11650 = vmatpush3.msra.mxu1 %v14376_v4  ;;  %v7257_v4 = vsub.f32 %v14521_v48, %v7256_v56  ;;  %v14650_v0 = vand.u32 4294901760, %v9560_v18 }
 0x544   : > { %11605 = vmatmul.mubr.f32.vlgmr.msra.gmra.mxu0 %v14441_v62  ;;  %11628 = vmatmul.mubr.f32.gmra.mxu1 %v14494_v38 }
 0x545   : > { %11651 = vmatprep.subr.mxu1 %v15147_v50  ;;  %11607 = vmatprep.mubr.msk.f32.mxu0 %vm12161_vm0, %v15147_v50  ;;  %v7258_v1 = vand.u32 4294901760, %v7257_v4  ;;  %v14671_v4 = vsub.f32 %v9560_v18, %v14650_v0 }
 0x546   : > { %11652 = vmatpush3.msra.mxu1 %v14387_v29  ;;  %11655 = vmatprep.mubr.msk.f32.mxu1 %vm12161_vm0, %v15147_v50  ;;  %v7270_v29 = vand.u32 4294901760, %v14549_v26 }
 0x547   : > { %11653 = vmatprep.subr.mxu1 %v15147_v50  ;;  %11630 = vmatprep.subr.mxu0 %v15147_v50 }
 0x548   : > { %11654 = vmatpush3.msra.mxu1 %v14404_v32  ;;  %11608 = vmatmul.mubr.f32.gmra.mxu0 %v14457_v28  ;;  %v7277_v32 = vand.u32 4294901760, %v14562_v19  ;;  %v7271_v13 = vsub.f32 %v14549_v26, %v7270_v29 }
 0x549   : > { %11656 = vmatmul.mubr.f32.vlgmr.msra.gmra.mxu1 %v14437_v22  ;;  %11631 = vmatpush3.msra.mxu0 %v15167_v44  ;;  %v9557_v44 = vld [vmem:[%s15097_s6 + $0x40] sm:$0xff] }
 0x54a   : > { %11632 = vmatprep.subr.mxu0 %v15147_v50  ;;  %11610 = vmatprep.mubr.msk.f32.mxu0 %vm12161_vm0, %v15147_v50  ;;  %v7278_v43 = vsub.f32 %v14562_v19, %v7277_v32  ;;  %v7272_v12 = vand.u32 4294901760, %v7271_v13  ;;  %v14691_v13 = vand.u32 4294901760, %v9557_v44 }
 0x54b   : > { %11633 = vmatpush3.msra.mxu0 %v15168_v58  ;;  %11658 = vmatprep.mubr.msk.f32.mxu1 %vm12161_vm0, %v15147_v50  ;;  %v7832_v58 = vand.u32 4294901760, %v14671_v4 }
 0x54c   : > { %11611 = vmatmul.mubr.f32.gmra.mxu0 %v14480_v10  ;;  %11634 = vmatprep.subr.mxu0 %v15147_v50  ;;  %v7279_v11 = vand.u32 4294901760, %v7278_v43 }
 0x54d   : > { %11659 = vmatmul.mubr.f32.gmra.mxu1 %v14451_v39  ;;  %11681 = vmatprep.subr.mxu1 %v15147_v50 }
 0x54e   : > { %11635 = vmatpush3.msra.mxu0 %v15169_v17  ;;  %11682 = vmatpush3.msra.mxu1 %v7258_v1  ;;  %v14685_v1 = vsub.f32 %v9559_v23, %v14663_v46  ;;  %v14712_v17 = vsub.f32 %v9557_v44, %v14691_v13 }
 0x54f   : > { %11636 = vmatprep.subr.mxu0 %v15147_v50  ;;  %11683 = vmatprep.subr.mxu1 %v15147_v50 }
 0x550   : > { %11637 = vmatpush3.msra.mxu0 %v15170_v14  ;;  %11638 = vmatprep.mubr.msk.f32.mxu0 %vm12161_vm0, %v15147_v50 }
 0x551   : > { %11661 = vmatprep.mubr.msk.f32.mxu1 %vm12161_vm0, %v15147_v50  ;;  %11684 = vmatpush3.msra.mxu1 %v7265_v45  ;;  %v7839_v45 = vand.u32 4294901760, %v14685_v1 }
 0x552   : > { %11639 = vmatmul.mubr.f32.vlgmr.msra.gmra.mxu0 %v14437_v22  ;;  %11662 = vmatmul.mubr.f32.gmra.mxu1 %v14467_v8 }
 0x553   : > { %11685 = vmatprep.subr.mxu1 %v15147_v50  ;;  %11641 = vmatprep.mubr.msk.f32.mxu0 %vm12161_vm0, %v15147_v50  ;;  %v7840_v43 = vsub.f32 %v14685_v1, %v7839_v45 }
 0x554   : > { %11686 = vmatpush3.msra.mxu1 %v7272_v12  ;;  %11689 = vmatprep.mubr.msk.f32.mxu1 %vm12161_vm0, %v15147_v50 }
 0x555   : > { %11687 = vmatprep.subr.mxu1 %v15147_v50  ;;  %11664 = vmatprep.subr.mxu0 %v15147_v50 }
 0x556   : > { %11688 = vmatpush3.msra.mxu1 %v7279_v11  ;;  %11642 = vmatmul.mubr.f32.gmra.mxu0 %v14451_v39 }
 0x557   : > { %11690 = vmatmul.mubr.f32.vlgmr.msra.gmra.mxu1 %v14437_v22  ;;  %11665 = vmatpush3.msra.mxu0 %v14497_v6 }
 0x558   : > { %11666 = vmatprep.subr.mxu0 %v15147_v50  ;;  %11644 = vmatprep.mubr.msk.f32.mxu0 %vm12161_vm0, %v15147_v50 }
 0x559   : > { %11667 = vmatpush3.msra.mxu0 %v14510_v9  ;;  %11692 = vmatprep.mubr.msk.f32.mxu1 %vm12161_vm0, %v15147_v50 }
 0x55a   : > { %11645 = vmatmul.mubr.f32.gmra.mxu0 %v14467_v8  ;;  %11668 = vmatprep.subr.mxu0 %v15147_v50 }
 0x55b   : > { %11693 = vmatmul.mubr.f32.gmra.mxu1 %v14451_v39  ;;  %11715 = vmatprep.subr.mxu1 %v15147_v50 }
 0x55c   : > { %11669 = vmatpush3.msra.mxu0 %v14530_v36  ;;  %11716 = vmatpush3.msra.mxu1 %v14497_v6 }
 0x55d   : > { %11670 = vmatprep.subr.mxu0 %v15147_v50  ;;  %11717 = vmatprep.subr.mxu1 %v15147_v50 }
 0x55e   : > { %11671 = vmatpush3.msra.mxu0 %v14541_v55  ;;  %11672 = vmatprep.mubr.msk.f32.mxu0 %vm12161_vm0, %v15147_v50 }
 0x55f   : > { %11695 = vmatprep.mubr.msk.f32.mxu1 %vm12161_vm0, %v15147_v50  ;;  %11718 = vmatpush3.msra.mxu1 %v14510_v9 }
 0x560   : > { %11673 = vmatmul.mubr.f32.vlgmr.msra.gmra.mxu0 %v14469_v35  ;;  %11696 = vmatmul.mubr.f32.gmra.mxu1 %v14467_v8 }
 0x561   : > { %11719 = vmatprep.subr.mxu1 %v15147_v50  ;;  %11675 = vmatprep.mubr.msk.f32.mxu0 %vm12161_vm0, %v15147_v50 }
 0x562   : > { %11720 = vmatpush3.msra.mxu1 %v14530_v36  ;;  %11723 = vmatprep.mubr.msk.f32.mxu1 %vm12161_vm0, %v15147_v50 }
 0x563   : > { %11721 = vmatprep.subr.mxu1 %v15147_v50  ;;  %11698 = vmatprep.subr.mxu0 %v15147_v50 }
 0x564   : > { %11722 = vmatpush3.msra.mxu1 %v14541_v55  ;;  %11676 = vmatmul.mubr.f32.gmra.mxu0 %v14490_v15 }
 0x565   : > { %11724 = vmatmul.mubr.f32.vlgmr.msra.gmra.mxu1 %v14449_v20  ;;  %11699 = vmatpush3.msra.mxu0 %v14521_v48 }
 0x566   : > { %11700 = vmatprep.subr.mxu0 %v15147_v50  ;;  %11678 = vmatprep.mubr.msk.f32.mxu0 %vm12161_vm0, %v15147_v50 }
 0x567   : > { %11701 = vmatpush3.msra.mxu0 %v14535_v61  ;;  %11726 = vmatprep.mubr.msk.f32.mxu1 %vm12161_vm0, %v15147_v50 }
 0x568   : > { %11679 = vmatmul.mubr.f32.gmra.mxu0 %v14517_v37  ;;  %11702 = vmatprep.subr.mxu0 %v15147_v50 }
 0x569   : > { %11727 = vmatmul.mubr.f32.gmra.mxu1 %v14473_v30  ;;  %11749 = vmatprep.subr.mxu1 %v15147_v50 }
 0x56a   : > { %11703 = vmatpush3.msra.mxu0 %v14549_v26  ;;  %11750 = vmatpush3.msra.mxu1 %v14497_v6  ;;  %v14699_v6 = vsub.f32 %v9558_v49, %v14680_v60 }
 0x56b   : > { %11704 = vmatprep.subr.mxu0 %v15147_v50  ;;  %11751 = vmatprep.subr.mxu1 %v15147_v50 }
 0x56c   : > { %11705 = vmatpush3.msra.mxu0 %v14562_v19  ;;  %11706 = vmatprep.mubr.msk.f32.mxu0 %vm12161_vm0, %v15147_v50 }
 0x56d   : > { %11729 = vmatprep.mubr.msk.f32.mxu1 %vm12161_vm0, %v15147_v50  ;;  %11752 = vmatpush3.msra.mxu1 %v14510_v9  ;;  %v7833_v9 = vsub.f32 %v14671_v4, %v7832_v58 }
 0x56e   : > { %11707 = vmatmul.mubr.f32.vlgmr.msra.gmra.mxu0 %v14441_v62  ;;  %11730 = vmatmul.mubr.f32.gmra.mxu1 %v14494_v38 }
 0x56f   : > { %11753 = vmatprep.subr.mxu1 %v15147_v50  ;;  %11709 = vmatprep.mubr.msk.f32.mxu0 %vm12161_vm0, %v15147_v50  ;;  %v7834_v14 = vand.u32 4294901760, %v7833_v9 }
 0x570   : > { %11754 = vmatpush3.msra.mxu1 %v14530_v36  ;;  %11757 = vmatprep.mubr.msk.f32.mxu1 %vm12161_vm0, %v15147_v50  ;;  %v7846_v36 = vand.u32 4294901760, %v14699_v6 }
 0x571   : > { %11755 = vmatprep.subr.mxu1 %v15147_v50  ;;  %11732 = vmatprep.subr.mxu0 %v15147_v50 }
 0x572   : > { %11756 = vmatpush3.msra.mxu1 %v14541_v55  ;;  %11710 = vmatmul.mubr.f32.gmra.mxu0 %v14457_v28  ;;  %v7853_v55 = vand.u32 4294901760, %v14712_v17  ;;  %v7847_v48 = vsub.f32 %v14699_v6, %v7846_v36 }
 0x573   : > { %11758 = vmatmul.mubr.f32.vlgmr.msra.gmra.mxu1 %v14437_v22  ;;  %11733 = vmatpush3.msra.mxu0 %v7256_v56  ;;  %v7841_v56 = vand.u32 4294901760, %v7840_v43 }
 0x574   : > { %11734 = vmatprep.subr.mxu0 %v15147_v50  ;;  %11712 = vmatprep.mubr.msk.f32.mxu0 %vm12161_vm0, %v15147_v50  ;;  %v7854_v61 = vsub.f32 %v14712_v17, %v7853_v55 }
 0x575   : > { %11735 = vmatpush3.msra.mxu0 %v7263_v16  ;;  %11760 = vmatprep.mubr.msk.f32.mxu1 %vm12161_vm0, %v15147_v50  ;;  %v7848_v16 = vand.u32 4294901760, %v7847_v48 }
 0x576   : > { %11713 = vmatmul.mubr.f32.gmra.mxu0 %v14480_v10  ;;  %11736 = vmatprep.subr.mxu0 %v15147_v50  ;;  %v7855_v26 = vand.u32 4294901760, %v7854_v61 }
 0x577   : > { %11761 = vmatmul.mubr.f32.gmra.mxu1 %v14451_v39  ;;  %11783 = vmatprep.subr.mxu1 %v15147_v50 }
 0x578   : > { %11737 = vmatpush3.msra.mxu0 %v7270_v29  ;;  %11784 = vmatpush3.msra.mxu1 %v7834_v14 }
 0x579   : > { %11738 = vmatprep.subr.mxu0 %v15147_v50  ;;  %11785 = vmatprep.subr.mxu1 %v15147_v50 }
 0x57a   : > { %11739 = vmatpush3.msra.mxu0 %v7277_v32  ;;  %11740 = vmatprep.mubr.msk.f32.mxu0 %vm12161_vm0, %v15147_v50 }
 0x57b   : > { %11763 = vmatprep.mubr.msk.f32.mxu1 %vm12161_vm0, %v15147_v50  ;;  %11786 = vmatpush3.msra.mxu1 %v7841_v56 }
 0x57c   : > { %11741 = vmatmul.mubr.f32.vlgmr.msra.gmra.mxu0 %v14437_v22  ;;  %11764 = vmatmul.mubr.f32.gmra.mxu1 %v14467_v8 }
 0x57d   : > { %11787 = vmatprep.subr.mxu1 %v15147_v50  ;;  %11743 = vmatprep.mubr.msk.f32.mxu0 %vm12161_vm0, %v15147_v50 }
 0x57e   : > { %11788 = vmatpush3.msra.mxu1 %v7848_v16  ;;  %11791 = vmatprep.mubr.msk.f32.mxu1 %vm12161_vm0, %v15147_v50 }
 0x57f   : > { %11789 = vmatprep.subr.mxu1 %v15147_v50  ;;  %11766 = vmatprep.subr.mxu0 %v15147_v50 }
 0x580   : > { %11790 = vmatpush3.msra.mxu1 %v7855_v26  ;;  %11744 = vmatmul.mubr.f32.gmra.mxu0 %v14451_v39 }
 0x581   : > { %11792 = vmatmul.mubr.f32.vlgmr.msra.gmra.mxu1 %v14437_v22  ;;  %11767 = vmatpush3.msra.mxu0 %v14650_v0 }
 0x582   : > { %11768 = vmatprep.subr.mxu0 %v15147_v50  ;;  %11746 = vmatprep.mubr.msk.f32.mxu0 %vm12161_vm0, %v15147_v50 }
 0x583   : > { %11769 = vmatpush3.msra.mxu0 %v14663_v46  ;;  %11794 = vmatprep.mubr.msk.f32.mxu1 %vm12161_vm0, %v15147_v50 }
 0x584   : > { %11747 = vmatmul.mubr.f32.gmra.mxu0 %v14467_v8  ;;  %11770 = vmatprep.subr.mxu0 %v15147_v50 }
 0x585   : > { %11795 = vmatmul.mubr.f32.gmra.mxu1 %v14451_v39  ;;  %11817 = vmatprep.subr.mxu1 %v15147_v50 }
 0x586   : > { %11771 = vmatpush3.msra.mxu0 %v14680_v60  ;;  %11818 = vmatpush3.msra.mxu1 %v14650_v0 }
 0x587   : > { %11772 = vmatprep.subr.mxu0 %v15147_v50  ;;  %11819 = vmatprep.subr.mxu1 %v15147_v50 }
 0x588   : > { %11773 = vmatpush3.msra.mxu0 %v14691_v13  ;;  %11774 = vmatprep.mubr.msk.f32.mxu0 %vm12161_vm0, %v15147_v50 }
 0x589   : > { %11797 = vmatprep.mubr.msk.f32.mxu1 %vm12161_vm0, %v15147_v50  ;;  %11820 = vmatpush3.msra.mxu1 %v14663_v46 }
 0x58a   : > { %11775 = vmatmul.mubr.f32.vlgmr.msra.gmra.mxu0 %v14469_v35  ;;  %11798 = vmatmul.mubr.f32.gmra.mxu1 %v14467_v8 }
 0x58b   : > { %11821 = vmatprep.subr.mxu1 %v15147_v50  ;;  %11777 = vmatprep.mubr.msk.f32.mxu0 %vm12161_vm0, %v15147_v50 }
 0x58c   : > { %11822 = vmatpush3.msra.mxu1 %v14680_v60  ;;  %11825 = vmatprep.mubr.msk.f32.mxu1 %vm12161_vm0, %v15147_v50 }
 0x58d   : > { %11823 = vmatprep.subr.mxu1 %v15147_v50  ;;  %11800 = vmatprep.subr.mxu0 %v15147_v50 }
 0x58e   : > { %11824 = vmatpush3.msra.mxu1 %v14691_v13  ;;  %11778 = vmatmul.mubr.f32.gmra.mxu0 %v14490_v15 }
 0x58f   : > { %11826 = vmatmul.mubr.f32.vlgmr.msra.gmra.mxu1 %v14449_v20  ;;  %11801 = vmatpush3.msra.mxu0 %v14671_v4 }
 0x590   : > { %11802 = vmatprep.subr.mxu0 %v15147_v50  ;;  %11780 = vmatprep.mubr.msk.f32.mxu0 %vm12161_vm0, %v15147_v50 }
 0x591   : > { %11803 = vmatpush3.msra.mxu0 %v14685_v1  ;;  %11828 = vmatprep.mubr.msk.f32.mxu1 %vm12161_vm0, %v15147_v50 }
 0x592   : > { %11781 = vmatmul.mubr.f32.gmra.mxu0 %v14517_v37  ;;  %11804 = vmatprep.subr.mxu0 %v15147_v50 }
 0x593   : > { %11829 = vmatmul.mubr.f32.gmra.mxu1 %v14473_v30  ;;  %11851 = vmatprep.subr.mxu1 %v15147_v50 }
 0x594   : > { %11805 = vmatpush3.msra.mxu0 %v14699_v6  ;;  %11852 = vmatpush3.msra.mxu1 %v14650_v0 }
 0x595   : > { %11806 = vmatprep.subr.mxu0 %v15147_v50  ;;  %11853 = vmatprep.subr.mxu1 %v15147_v50 }
 0x596   : > { %11807 = vmatpush3.msra.mxu0 %v14712_v17  ;;  %11808 = vmatprep.mubr.msk.f32.mxu0 %vm12161_vm0, %v15147_v50 }
 0x597   : > { %11831 = vmatprep.mubr.msk.f32.mxu1 %vm12161_vm0, %v15147_v50  ;;  %11854 = vmatpush3.msra.mxu1 %v14663_v46 }
 0x598   : > { %11809 = vmatmul.mubr.f32.vlgmr.msra.gmra.mxu0 %v14441_v62  ;;  %11832 = vmatmul.mubr.f32.gmra.mxu1 %v14494_v38 }
 0x599   : > { %11855 = vmatprep.subr.mxu1 %v15147_v50  ;;  %11811 = vmatprep.mubr.msk.f32.mxu0 %vm12161_vm0, %v15147_v50 }
 0x59a   : > { %11856 = vmatpush3.msra.mxu1 %v14680_v60  ;;  %11859 = vmatprep.mubr.msk.f32.mxu1 %vm12161_vm0, %v15147_v50 }
 0x59b   : > { %11857 = vmatprep.subr.mxu1 %v15147_v50  ;;  %11834 = vmatprep.subr.mxu0 %v15147_v50 }
 0x59c   : > { %11858 = vmatpush3.msra.mxu1 %v14691_v13  ;;  %11812 = vmatmul.mubr.f32.gmra.mxu0 %v14457_v28 }
 0x59d   : > { %11860 = vmatmul.mubr.f32.vlgmr.msra.gmra.mxu1 %v14437_v22  ;;  %11835 = vmatpush3.msra.mxu0 %v7832_v58 }
 0x59e   : > { %11836 = vmatprep.subr.mxu0 %v15147_v50  ;;  %11814 = vmatprep.mubr.msk.f32.mxu0 %vm12161_vm0, %v15147_v50 }
 0x59f   : > { %11837 = vmatpush3.msra.mxu0 %v7839_v45  ;;  %11862 = vmatprep.mubr.msk.f32.mxu1 %vm12161_vm0, %v15147_v50 }
 0x5a0   : > { %11815 = vmatmul.mubr.f32.gmra.mxu0 %v14480_v10  ;;  %11838 = vmatprep.subr.mxu0 %v15147_v50 }
 0x5a1   : > { %11863 = vmatmul.mubr.f32.gmra.mxu1 %v14451_v39  ;;  %11839 = vmatpush3.msra.mxu0 %v7846_v36 }
 0x5a2   : > { %11840 = vmatprep.subr.mxu0 %v15147_v50  ;;  %11842 = vmatprep.mubr.msk.f32.mxu0 %vm12161_vm0, %v15147_v50 }
 0x5a3   : > { %11841 = vmatpush3.msra.mxu0 %v7853_v55  ;;  %11865 = vmatprep.mubr.msk.f32.mxu1 %vm12161_vm0, %v15147_v50 }
 0x5a4   : > { %11843 = vmatmul.mubr.f32.vlgmr.msra.gmra.mxu0 %v14437_v22  ;;  %11868 = vmatprep.subr.mxu0 %v15147_v50 }
 0x5a5   : > { %11866 = vmatmul.mubr.f32.gmra.mxu1 %v14467_v8  ;;  %11845 = vmatprep.mubr.msk.f32.mxu0 %vm12161_vm0, %v15147_v50 }
 0x5a6   : > { %11883 = vmatprep.subr.mxu1 %v15147_v50  ;;  %11889 = vmatprep.mubr.msk.f32.mxu1 %vm12161_vm0, %v15147_v50 }
 0x5a8   : > { %11846 = vmatmul.mubr.f32.gmra.mxu0 %v14451_v39 }
 0x5a9   : > { %11848 = vmatprep.mubr.msk.f32.mxu0 %vm12161_vm0, %v15147_v50 }
 0x5ac   : > { %11849 = vmatmul.mubr.f32.gmra.mxu0 %v14467_v8 }
 0x5ad   : > { %11874 = vmatprep.mubr.msk.f32.mxu0 %vm12161_vm0, %v15147_v50 }
 0x5f0   : > { %v6740_v22 = vpop.f32.mrf.mxu1 }
 0x5f2   : > { %v11589_v62 = vpop.f32.mrf.mxu1 }
 0x5f4   : > { %v6746_v20 = vpop.f32.mrf.mxu1 }
 0x5f6   : > { %v11592_v28 = vpop.f32.mrf.mxu1 }
 0x5f8   : > { %v6629_v35 = vpop.f32.mrf.mxu0  ;;  %v6752_v30 = vpop.f32.mrf.mxu1 }
 0x5f9   : > { %v6741_v60 = vadd.f32 %v6740_v22, %v6629_v35 }
 0x5fa   : > { %v11572_v10 = vpop.f32.mrf.mxu0  ;;  %v11595_v15 = vpop.f32.mrf.mxu1 }
 0x5fc   : > { %v6639_v38 = vpop.f32.mrf.mxu0  ;;  %v6923_v37 = vpop.f32.mrf.mxu1 }
 0x5fd   : > { %v6747_v45 = vadd.f32 %v6746_v20, %v6639_v38 }
 0x5fe   : > { %v11575_v19 = vpop.f32.mrf.mxu0  ;;  %v11623_v39 = vpop.f32.mrf.mxu1 }
 0x600   : > { %v6649_v29 = vpop.f32.mrf.mxu0  ;;  %v6931_v32 = vpop.f32.mrf.mxu1 }
 0x601   : > { %v6753_v55 = vadd.f32 %v6752_v30, %v6649_v29 }
 0x602   : > { %v11578_v12 = vpop.f32.mrf.mxu0  ;;  %v11626_v11 = vpop.f32.mrf.mxu1 }
 0x604   : > { %v6832_v8 = vpop.f32.mrf.mxu0  ;;  %v6939_v18 = vpop.f32.mrf.mxu1 }
 0x605   : > { %v6833_v13 = vadd.f32 %v6832_v8, %v6741_v60 }
 0x606   : > { %v11606_v0 = vpop.f32.mrf.mxu0  ;;  %v11629_v23 = vpop.f32.mrf.mxu1 }
 0x607   : > { %v6924_v36 = vadd.f32 %v6923_v37, %v6833_v13 }
 0x608   : > { %v6839_v46 = vpop.f32.mrf.mxu0 }
 0x609   : > { %v7109_v49 = vpop.f32.mrf.mxu1  ;;  %v6840_v17 = vadd.f32 %v6839_v46, %v6747_v45 }
 0x60a   : > { %v11609_v4 = vpop.f32.mrf.mxu0 }
 0x60b   : > { %v11657_v44 = vpop.f32.mrf.mxu1  ;;  %v6932_v26 = vadd.f32 %v6931_v32, %v6840_v17 }
 0x60c   : > { %v6846_v1 = vpop.f32.mrf.mxu0 }
 0x60d   : > { %v7115_v58 = vpop.f32.mrf.mxu1  ;;  %v6847_v16 = vadd.f32 %v6846_v1, %v6753_v55 }
 0x60e   : > { %v11612_v6 = vpop.f32.mrf.mxu0 }
 0x60f   : > { %v11660_v9 = vpop.f32.mrf.mxu1  ;;  %v6940_v39 = vadd.f32 %v6939_v18, %v6847_v16 }
 0x612   : > { %v7022_v43 = vpop.f32.mrf.mxu0  ;;  %v7121_v14 = vpop.f32.mrf.mxu1 }
 0x613   : > { %v7023_v48 = vadd.f32 %v7022_v43, %v6924_v36 }
 0x614   : > { %v11640_v56 = vpop.f32.mrf.mxu0  ;;  %v11663_v61 = vpop.f32.mrf.mxu1 }
 0x615   : > { %v7110_v22 = vadd.f32 %v7109_v49, %v7023_v48 }
 0x616   : > { %v7028_v62 = vpop.f32.mrf.mxu0 }
 0x617   : > { %v7029_v28 = vadd.f32 %v7028_v62, %v6932_v26  ;;  %v7316_v10 = vpop.f32.mrf.mxu1  ;;  %v14869_v11 = vand.u32 4294901760, %v7110_v22 }
 0x618   : > { %v11643_v35 = vpop.f32.mrf.mxu0 }
 0x619   : > { %v7116_v15 = vadd.f32 %v7115_v58, %v7029_v28  ;;  %v11691_v19 = vpop.f32.mrf.mxu1  ;;  %v14876_v23 = vsub.f32 %v7110_v22, %v14869_v11 }
 0x61a   : > { %v7034_v20 = vpop.f32.mrf.mxu0 }
 0x61b   : > { %v14867_v38 = vand.u32 4294901760, %v7116_v15  ;;  %v7035_v37 = vadd.f32 %v7034_v20, %v6940_v39  ;;  %v7322_v12 = vpop.f32.mrf.mxu1  ;;  %v8421_v13 = vand.u32 4294901760, %v14876_v23 }
 0x61c   : > { %v11646_v30 = vpop.f32.mrf.mxu0 }
 0x61d   : > { %v7122_v29 = vadd.f32 %v7121_v14, %v7035_v37  ;;  %v11694_v8 = vpop.f32.mrf.mxu1  ;;  %v14872_v32 = vsub.f32 %v7116_v15, %v14867_v38  ;;  %v8422_v61 = vsub.f32 %v14876_v23, %v8421_v13 }
 0x61f   : > { %v8278_v0 = vsel %vm2317_vm3, %v7122_v29, 0  ;;  %v8414_v44 = vand.u32 4294901760, %v14872_v32 }
 0x620   : > { %v14878_v46 = vand.u32 4294901760, %v8278_v0  ;;  %v7205_v18 = vpop.f32.mrf.mxu0  ;;  %v7328_v49 = vpop.f32.mrf.mxu1 }
 0x621   : > { %v7317_v4 = vadd.f32 %v7316_v10, %v7205_v18  ;;  %v8415_v14 = vsub.f32 %v14872_v32, %v8414_v44  ;;  %v8423_v10 = vand.u32 4294901760, %v8422_v61 }
 0x622   : > { %v14882_v60 = vsub.f32 %v8278_v0, %v14878_v46  ;;  %v11674_v1 = vpop.f32.mrf.mxu0  ;;  %v11697_v58 = vpop.f32.mrf.mxu1  ;;  %11869 = vmatpush3.msra.mxu0 %v14878_v46 }
 0x623   : > { %11870 = vmatprep.subr.mxu0 %v15147_v50 }
 0x624   : > { %v7215_v6 = vpop.f32.mrf.mxu0  ;;  %11871 = vmatpush3.msra.mxu0 %v14867_v38  ;;  %v8407_v45 = vand.u32 4294901760, %v14882_v60 }
 0x625   : > { %v7323_v9 = vadd.f32 %v7322_v12, %v7215_v6  ;;  %v7499_v17 = vpop.f32.mrf.mxu1  ;;  %11872 = vmatprep.subr.mxu0 %v15147_v50 }
 0x626   : > { %v11677_v36 = vpop.f32.mrf.mxu0  ;;  %11873 = vmatpush3.msra.mxu0 %v14869_v11  ;;  %v8408_v43 = vsub.f32 %v14882_v60, %v8407_v45 }
 0x627   : > { %v11725_v55 = vpop.f32.mrf.mxu1  ;;  %11875 = vmatmul.mubr.f32.vlgmr.msra.gmra.mxu0 %v13110_v63  ;;  %11898 = vmatprep.subr.mxu0 %v15147_v50  ;;  %v8416_v63 = vand.u32 4294901760, %v8415_v14 }
 0x628   : > { %v7225_v48 = vpop.f32.mrf.mxu0  ;;  %11899 = vmatpush3.msra.mxu0 %v14882_v60  ;;  %11877 = vmatprep.mubr.msk.f32.mxu0 %vm12161_vm0, %v15147_v50  ;;  %v8409_v56 = vand.u32 4294901760, %v8408_v43 }
 0x629   : > { %v7329_v16 = vadd.f32 %v7328_v49, %v7225_v48  ;;  %v7507_v26 = vpop.f32.mrf.mxu1  ;;  %11900 = vmatprep.subr.mxu0 %v15147_v50 }
 0x62a   : > { %v11680_v62 = vpop.f32.mrf.mxu0  ;;  %11884 = vmatpush3.msra.mxu1 %v8409_v56  ;;  %11901 = vmatpush3.msra.mxu0 %v14872_v32 }
 0x62b   : > { %v11728_v28 = vpop.f32.mrf.mxu1  ;;  %11878 = vmatmul.mubr.f32.gmra.mxu0 %v13126_v5  ;;  %11885 = vmatprep.subr.mxu1 %v15147_v50 }
 0x62c   : > { %11902 = vmatprep.subr.mxu0 %v15147_v50  ;;  %11886 = vmatpush3.msra.mxu1 %v8416_v63 }
 0x62d   : > { %11903 = vmatpush3.msra.mxu0 %v14876_v23  ;;  %11887 = vmatprep.subr.mxu1 %v15147_v50 }
 0x62e   : > { %v7408_v22 = vpop.f32.mrf.mxu0  ;;  %v7515_v35 = vpop.f32.mrf.mxu1  ;;  %11880 = vmatprep.mubr.msk.f32.mxu0 %vm12161_vm0, %v15147_v50  ;;  %11888 = vmatpush3.msra.mxu1 %v8423_v10 }
 0x62f   : > { %v7409_v15 = vadd.f32 %v7408_v22, %v7317_v4  ;;  %11881 = vmatmul.mubr.f32.gmra.mxu0 %v13139_v24  ;;  %11890 = vmatmul.mubr.f32.vlgmr.msra.gmra.mxu1 %v13068_v31 }
 0x630   : > { %v11708_v5 = vpop.f32.mrf.mxu0  ;;  %v11731_v19 = vpop.f32.mrf.mxu1  ;;  %11913 = vmatprep.subr.mxu1 %v15147_v50  ;;  %11892 = vmatprep.mubr.msk.f32.mxu1 %vm12161_vm0, %v15147_v50 }
 0x631   : > { %11914 = vmatpush3.msra.mxu1 %v14878_v46  ;;  %11904 = vmatprep.mubr.msk.f32.mxu0 %vm12161_vm0, %v15147_v50  ;;  %v7500_v39 = vadd.f32 %v7499_v17, %v7409_v15 }
 0x632   : > { %v7415_v20 = vpop.f32.mrf.mxu0  ;;  %11915 = vmatprep.subr.mxu1 %v15147_v50  ;;  %11928 = vmatprep.subr.mxu0 %v15147_v50 }
 0x633   : > { %v7416_v24 = vadd.f32 %v7415_v20, %v7323_v9  ;;  %v7685_v37 = vpop.f32.mrf.mxu1  ;;  %11916 = vmatpush3.msra.mxu1 %v14867_v38  ;;  %11905 = vmatmul.mubr.f32.vlgmr.msra.gmra.mxu0 %v13072_v40 }
 0x634   : > { %v11711_v12 = vpop.f32.mrf.mxu0  ;;  %11893 = vmatmul.mubr.f32.gmra.mxu1 %v13074_v42  ;;  %11917 = vmatprep.subr.mxu1 %v15147_v50 }
 0x635   : > { %v11759_v30 = vpop.f32.mrf.mxu1  ;;  %11929 = vmatpush3.msra.mxu0 %v8407_v45  ;;  %11918 = vmatpush3.msra.mxu1 %v14869_v11  ;;  %v7508_v29 = vadd.f32 %v7507_v26, %v7416_v24 }
 0x636   : > { %v7422_v8 = vpop.f32.mrf.mxu0  ;;  %11930 = vmatprep.subr.mxu0 %v15147_v50  ;;  %11895 = vmatprep.mubr.msk.f32.mxu1 %vm12161_vm0, %v15147_v50 }
 0x637   : > { %v7423_v0 = vadd.f32 %v7422_v8, %v7329_v16  ;;  %v7691_v18 = vpop.f32.mrf.mxu1  ;;  %11931 = vmatpush3.msra.mxu0 %v8414_v44  ;;  %11907 = vmatprep.mubr.msk.f32.mxu0 %vm12161_vm0, %v15147_v50 }
 0x638   : > { %v11714_v40 = vpop.f32.mrf.mxu0  ;;  %11932 = vmatprep.subr.mxu0 %v15147_v50  ;;  %11896 = vmatmul.mubr.f32.gmra.mxu1 %v13085_v54 }
 0x639   : > { %v11762_v49 = vpop.f32.mrf.mxu1  ;;  %11908 = vmatmul.mubr.f32.gmra.mxu0 %v13083_v53  ;;  %11919 = vmatprep.mubr.msk.f32.mxu1 %vm12161_vm0, %v15147_v50  ;;  %v7516_v4 = vadd.f32 %v7515_v35, %v7423_v0 }
 0x63a   : > { %11933 = vmatpush3.msra.mxu0 %v8421_v13  ;;  %11910 = vmatprep.mubr.msk.f32.mxu0 %vm12161_vm0, %v15147_v50 }
 0x63b   : > { %11943 = vmatprep.subr.mxu1 %v15147_v50  ;;  %11958 = vmatprep.subr.mxu0 %v15147_v50 }
 0x63c   : > { %v7598_v32 = vpop.f32.mrf.mxu0  ;;  %v7697_v44 = vpop.f32.mrf.mxu1  ;;  %11920 = vmatmul.mubr.f32.vlgmr.msra.gmra.mxu1 %v13080_v52 }
 0x63d   : > { %v7599_v60 = vadd.f32 %v7598_v32, %v7500_v39  ;;  %11911 = vmatmul.mubr.f32.gmra.mxu0 %v13099_v7  ;;  %11944 = vmatpush3.msra.mxu1 %v14878_v46 }
 0x63e   : > { %v11742_v53 = vpop.f32.mrf.mxu0  ;;  %v11765_v1 = vpop.f32.mrf.mxu1  ;;  %11945 = vmatprep.subr.mxu1 %v15147_v50  ;;  %11922 = vmatprep.mubr.msk.f32.mxu1 %vm12161_vm0, %v15147_v50 }
 0x63f   : > { %11946 = vmatpush3.msra.mxu1 %v14867_v38  ;;  %11934 = vmatprep.mubr.msk.f32.mxu0 %vm12161_vm0, %v15147_v50  ;;  %v14954_v23 = vadd.f32 %v7685_v37, %v7599_v60 }
 0x640   : > { %v7604_v52 = vpop.f32.mrf.mxu0  ;;  %11947 = vmatprep.subr.mxu1 %v15147_v50  ;;  %11923 = vmatmul.mubr.f32.gmra.mxu1 %v13096_v2 }
 0x641   : > { %v7605_v7 = vadd.f32 %v7604_v52, %v7508_v29  ;;  %v7892_v46 = vpop.f32.mrf.mxu1  ;;  %11935 = vmatmul.mubr.f32.vlgmr.msra.gmra.mxu0 %v13068_v31  ;;  %11948 = vmatpush3.msra.mxu1 %v14869_v11 }
 0x642   : > { %v11745_v58 = vpop.f32.mrf.mxu0  ;;  %11925 = vmatprep.mubr.msk.f32.mxu1 %vm12161_vm0, %v15147_v50  ;;  %11937 = vmatprep.mubr.msk.f32.mxu0 %vm12161_vm0, %v15147_v50 }
 0x643   : > { %v11793_v38 = vpop.f32.mrf.mxu1  ;;  %11973 = vmatprep.subr.mxu1 %v15147_v50  ;;  %v14965_v13 = vadd.f32 %v7691_v18, %v7605_v7 }
 0x644   : > { %v7610_v6 = vpop.f32.mrf.mxu0  ;;  %11926 = vmatmul.mubr.f32.gmra.mxu1 %v13115_v3 }
 0x645   : > { %v7611_v2 = vadd.f32 %v7610_v6, %v7516_v4  ;;  %v7898_v45 = vpop.f32.mrf.mxu1  ;;  %11938 = vmatmul.mubr.f32.gmra.mxu0 %v13074_v42  ;;  %11949 = vmatprep.mubr.msk.f32.mxu1 %vm12161_vm0, %v15147_v50 }
 0x646   : > { %v11748_v11 = vpop.f32.mrf.mxu0  ;;  %11940 = vmatprep.mubr.msk.f32.mxu0 %vm12161_vm0, %v15147_v50 }
 0x647   : > { %v11796_v9 = vpop.f32.mrf.mxu1  ;;  %v14973_v17 = vadd.f32 %v7697_v44, %v7611_v2 }
 0x648   : > { %11950 = vmatmul.mubr.f32.vlgmr.msra.gmra.mxu1 %v13068_v31 }
 0x649   : > { %11941 = vmatmul.mubr.f32.gmra.mxu0 %v13085_v54  ;;  %11952 = vmatprep.mubr.msk.f32.mxu1 %vm12161_vm0, %v15147_v50 }
 0x64a   : > { %v7781_v3 = vpop.f32.mrf.mxu0  ;;  %v7904_v36 = vpop.f32.mrf.mxu1  ;;  %11964 = vmatprep.mubr.msk.f32.mxu0 %vm12161_vm0, %v15147_v50 }
 0x64b   : > { %v7893_v15 = vadd.f32 %v7892_v46, %v7781_v3 }
 0x64c   : > { %v11776_v43 = vpop.f32.mrf.mxu0  ;;  %v11799_v14 = vpop.f32.mrf.mxu1  ;;  %11953 = vmatmul.mubr.f32.gmra.mxu1 %v13074_v42 }
 0x64d   : > { %11955 = vmatprep.mubr.msk.f32.mxu1 %vm12161_vm0, %v15147_v50 }
 0x64e   : > { %v7791_v55 = vpop.f32.mrf.mxu0 }
 0x64f   : > { %v8075_v48 = vpop.f32.mrf.mxu1 }
 0x650   : > { %v11779_v31 = vpop.f32.mrf.mxu0  ;;  %11956 = vmatmul.mubr.f32.gmra.mxu1 %v13085_v54  ;;  %v7899_v54 = vadd.f32 %v7898_v45, %v7791_v55 }
 0x651   : > { %v11827_v56 = vpop.f32.mrf.mxu1  ;;  %11979 = vmatprep.mubr.msk.f32.mxu1 %vm12161_vm0, %v15147_v50 }
 0x652   : > { %v7801_v61 = vpop.f32.mrf.mxu0 }
 0x653   : > { %v8083_v16 = vpop.f32.mrf.mxu1  ;;  %v7905_v0 = vadd.f32 %v7904_v36, %v7801_v61 }
 0x654   : > { %v11782_v26 = vpop.f32.mrf.mxu0 }
 0x655   : > { %v11830_v62 = vpop.f32.mrf.mxu1 }
 0x658   : > { %v7984_v63 = vpop.f32.mrf.mxu0  ;;  %v8091_v28 = vpop.f32.mrf.mxu1 }
 0x659   : > { %v7985_v39 = vadd.f32 %v7984_v63, %v7893_v15  ;;  %v15174_v63 = vld [vmem:[#allocation14_spill] sm:$0xff] }
 0x65a   : > { %v11810_v10 = vpop.f32.mrf.mxu0  ;;  %v11833_v42 = vpop.f32.mrf.mxu1 }
 0x65b   : > { %v8076_v29 = vadd.f32 %v8075_v48, %v7985_v39 }
 0x65c   : > { %v7991_v22 = vpop.f32.mrf.mxu0 }
 0x65d   : > { %v8261_v35 = vpop.f32.mrf.mxu1  ;;  %v7992_v12 = vadd.f32 %v7991_v22, %v7899_v54 }
 0x65e   : > { %v11813_v5 = vpop.f32.mrf.mxu0 }
 0x65f   : > { %v11861_v19 = vpop.f32.mrf.mxu1  ;;  %v8084_v44 = vadd.f32 %v8083_v16, %v7992_v12 }
 0x660   : > { %v7998_v20 = vpop.f32.mrf.mxu0 }
 0x661   : > { %v8267_v24 = vpop.f32.mrf.mxu1  ;;  %v7999_v4 = vadd.f32 %v7998_v20, %v7905_v0 }
 0x662   : > { %v11816_v37 = vpop.f32.mrf.mxu0 }
 0x663   : > { %v11864_v30 = vpop.f32.mrf.mxu1  ;;  %v8092_v46 = vadd.f32 %v8091_v28, %v7999_v4  ;;  %v15175_v28 = vld [vmem:[#allocation16_spill] sm:$0xff] }
 0x664   : > { %v8174_v8 = vpop.f32.mrf.mxu0 }
 0x665   : > { %v8273_v18 = vpop.f32.mrf.mxu1  ;;  %v8175_v40 = vadd.f32 %v8174_v8, %v8076_v29 }
 0x666   : > { %v11844_v49 = vpop.f32.mrf.mxu0 }
 0x667   : > { %v11867_v32 = vpop.f32.mrf.mxu1  ;;  %v8262_v1 = vadd.f32 %v8261_v35, %v8175_v40 }
 0x668   : > { %v8180_v60 = vpop.f32.mrf.mxu0 }
 0x669   : > { %v8181_v53 = vadd.f32 %v8180_v60, %v8084_v44  ;;  %v14989_v2 = vand.u32 4294901760, %v8262_v1 }
 0x66a   : > { %v11847_v52 = vpop.f32.mrf.mxu0 }
 0x66b   : > { %v8268_v7 = vadd.f32 %v8267_v24, %v8181_v53  ;;  %v8981_v36 = vsub.f32 %v8262_v1, %v14989_v2 }
 0x66c   : > { %v8186_v58 = vpop.f32.mrf.mxu0 }
 0x66d   : > { %v14987_v38 = vand.u32 4294901760, %v8268_v7  ;;  %v8187_v6 = vadd.f32 %v8186_v58, %v8092_v46  ;;  %v8982_v48 = vand.u32 4294901760, %v8981_v36 }
 0x66e   : > { %v11850_v45 = vpop.f32.mrf.mxu0 }
 0x66f   : > { %v8274_v11 = vadd.f32 %v8273_v18, %v8187_v6  ;;  %v8974_v9 = vsub.f32 %v8268_v7, %v14987_v38  ;;  %v8983_v26 = vsub.f32 %v8981_v36, %v8982_v48 }
 0x671   : > { %v8839_v3 = vsel %vm2317_vm3, %v8274_v11, 0  ;;  %v8975_v14 = vand.u32 4294901760, %v8974_v9 }
 0x672   : > { %v8868_v43 = vand.u32 4294901760, %v8839_v3 }
 0x673   : > { %v8976_v61 = vsub.f32 %v8974_v9, %v8975_v14 }
 0x674   : > { %v8967_v55 = vsub.f32 %v8839_v3, %v8868_v43  ;;  %11959 = vmatpush3.msra.mxu0 %v8868_v43 }
 0x675   : > { %11960 = vmatprep.subr.mxu0 %v15147_v50  ;;  %v8977_v62 = vand.u32 4294901760, %v8976_v61 }
 0x676   : > { %11961 = vmatpush3.msra.mxu0 %v14987_v38  ;;  %v8968_v31 = vand.u32 4294901760, %v8967_v55 }
 0x677   : > { %11962 = vmatprep.subr.mxu0 %v15147_v50 }
 0x678   : > { %11963 = vmatpush3.msra.mxu0 %v14989_v2  ;;  %v8969_v56 = vsub.f32 %v8967_v55, %v8968_v31 }
 0x679   : > { %11965 = vmatmul.mubr.f32.vlgmr.msra.gmra.mxu0 %v13268_v57  ;;  %11988 = vmatprep.subr.mxu0 %v15147_v50  ;;  %v8984_v57 = vand.u32 4294901760, %v8983_v26 }
 0x67a   : > { %11989 = vmatpush3.msra.mxu0 %v8967_v55  ;;  %11967 = vmatprep.mubr.msk.f32.mxu0 %vm12161_vm0, %v15147_v50  ;;  %v8970_v16 = vand.u32 4294901760, %v8969_v56 }
 0x67b   : > { %11990 = vmatprep.subr.mxu0 %v15147_v50 }
 0x67c   : > { %11974 = vmatpush3.msra.mxu1 %v8970_v16  ;;  %11991 = vmatpush3.msra.mxu0 %v8974_v9 }
 0x67d   : > { %11968 = vmatmul.mubr.f32.gmra.mxu0 %v13280_v59  ;;  %11975 = vmatprep.subr.mxu1 %v15147_v50  ;;  %v15171_v59 = vld [vmem:[#allocation12_spill] sm:$0xff] }
 0x67e   : > { %11992 = vmatprep.subr.mxu0 %v15147_v50  ;;  %11976 = vmatpush3.msra.mxu1 %v8977_v62 }
 0x67f   : > { %11993 = vmatpush3.msra.mxu0 %v8981_v36  ;;  %11977 = vmatprep.subr.mxu1 %v15147_v50 }
 0x680   : > { %11970 = vmatprep.mubr.msk.f32.mxu0 %vm12161_vm0, %v15147_v50  ;;  %11978 = vmatpush3.msra.mxu1 %v8984_v57 }
 0x681   : > { %11971 = vmatmul.mubr.f32.gmra.mxu0 %v13289_v51  ;;  %11980 = vmatmul.mubr.f32.vlgmr.msra.gmra.mxu1 %v15158_v27  ;;  %v15172_v51 = vld [vmem:[#allocation11_spill] sm:$0xff] }
 0x682   : > { %12003 = vmatprep.subr.mxu1 %v15147_v50  ;;  %11982 = vmatprep.mubr.msk.f32.mxu1 %vm12161_vm0, %v15147_v50 }
 0x683   : > { %12004 = vmatpush3.msra.mxu1 %v8868_v43  ;;  %11994 = vmatprep.mubr.msk.f32.mxu0 %vm12161_vm0, %v15147_v50 }
 0x684   : > { %12005 = vmatprep.subr.mxu1 %v15147_v50  ;;  %12018 = vmatprep.subr.mxu0 %v15147_v50 }
 0x685   : > { %12006 = vmatpush3.msra.mxu1 %v14987_v38  ;;  %11995 = vmatmul.mubr.f32.vlgmr.msra.gmra.mxu0 %v15159_v33  ;;  %v15173_v33 = vld [vmem:[#allocation15_spill] sm:$0xff] }
 0x686   : > { %11983 = vmatmul.mubr.f32.gmra.mxu1 %v15160_v34  ;;  %12007 = vmatprep.subr.mxu1 %v15147_v50 }
 0x687   : > { %12019 = vmatpush3.msra.mxu0 %v8968_v31  ;;  %12008 = vmatpush3.msra.mxu1 %v14989_v2 }
 0x688   : > { %12020 = vmatprep.subr.mxu0 %v15147_v50  ;;  %11985 = vmatprep.mubr.msk.f32.mxu1 %vm12161_vm0, %v15147_v50 }
 0x689   : > { %12021 = vmatpush3.msra.mxu0 %v8975_v14  ;;  %11997 = vmatprep.mubr.msk.f32.mxu0 %vm12161_vm0, %v15147_v50 }
 0x68a   : > { %12022 = vmatprep.subr.mxu0 %v15147_v50  ;;  %11986 = vmatmul.mubr.f32.gmra.mxu1 %v15161_v47 }
 0x68b   : > { %11998 = vmatmul.mubr.f32.gmra.mxu0 %v15171_v59  ;;  %12009 = vmatprep.mubr.msk.f32.mxu1 %vm12161_vm0, %v15147_v50 }
 0x68c   : > { %12023 = vmatpush3.msra.mxu0 %v8982_v48  ;;  %12000 = vmatprep.mubr.msk.f32.mxu0 %vm12161_vm0, %v15147_v50 }
 0x68d   : > { %12033 = vmatprep.subr.mxu1 %v15147_v50 }
 0x68e   : > { %12010 = vmatmul.mubr.f32.vlgmr.msra.gmra.mxu1 %v15172_v51 }
 0x68f   : > { %12001 = vmatmul.mubr.f32.gmra.mxu0 %v15173_v33  ;;  %12034 = vmatpush3.msra.mxu1 %v8868_v43 }
 0x690   : > { %12035 = vmatprep.subr.mxu1 %v15147_v50  ;;  %12012 = vmatprep.mubr.msk.f32.mxu1 %vm12161_vm0, %v15147_v50 }
 0x691   : > { %12036 = vmatpush3.msra.mxu1 %v14987_v38  ;;  %12024 = vmatprep.mubr.msk.f32.mxu0 %vm12161_vm0, %v15147_v50 }
 0x692   : > { %12037 = vmatprep.subr.mxu1 %v15147_v50  ;;  %12013 = vmatmul.mubr.f32.gmra.mxu1 %v15174_v63 }
 0x693   : > { %12025 = vmatmul.mubr.f32.vlgmr.msra.gmra.mxu0 %v15158_v27  ;;  %12038 = vmatpush3.msra.mxu1 %v14989_v2 }
 0x694   : > { %12015 = vmatprep.mubr.msk.f32.mxu1 %vm12161_vm0, %v15147_v50  ;;  %12027 = vmatprep.mubr.msk.f32.mxu0 %vm12161_vm0, %v15147_v50 }
 0x696   : > { %12016 = vmatmul.mubr.f32.gmra.mxu1 %v15175_v28 }
 0x697   : > { %12028 = vmatmul.mubr.f32.gmra.mxu0 %v15160_v34  ;;  %12039 = vmatprep.mubr.msk.f32.mxu1 %vm12161_vm0, %v15147_v50 }
 0x698   : > { %12030 = vmatprep.mubr.msk.f32.mxu0 %vm12161_vm0, %v15147_v50 }
 0x69a   : > { %12040 = vmatmul.mubr.f32.vlgmr.msra.gmra.mxu1 %v15158_v27 }
 0x69b   : > { %12031 = vmatmul.mubr.f32.gmra.mxu0 %v15161_v47  ;;  %12042 = vmatprep.mubr.msk.f32.mxu1 %vm12161_vm0, %v15147_v50 }
 0x69e   : > { %12043 = vmatmul.mubr.f32.gmra.mxu1 %v15160_v34 }
 0x69f   : > { %12045 = vmatprep.mubr.msk.f32.mxu1 %vm12161_vm0, %v15147_v50 }
 0x6a2   : > { %12046 = vmatmul.mubr.f32.gmra.mxu1 %v15161_v47 }
 0x6e7   : > { %v8354_v10 = vpop.f32.mrf.mxu0 }
 0x6e8   : > { %v8355_v42 = vadd.f32 %v8354_v10, %v14954_v23 }
 0x6e9   : > { %v11876_v22 = vpop.f32.mrf.mxu0 }
 0x6eb   : > { %v8364_v35 = vpop.f32.mrf.mxu0 }
 0x6ec   : > { %v8365_v15 = vadd.f32 %v8364_v35, %v14965_v13 }
 0x6ed   : > { %v11879_v27 = vpop.f32.mrf.mxu0 }
 0x6ef   : > { %v8374_v5 = vpop.f32.mrf.mxu0  ;;  %v8460_v19 = vpop.f32.mrf.mxu1 }
 0x6f0   : > { %v8375_v39 = vadd.f32 %v8374_v5, %v14973_v17  ;;  %v8461_v20 = vadd.f32 %v8460_v19, %v8355_v42 }
 0x6f1   : > { %v11882_v54 = vpop.f32.mrf.mxu0  ;;  %v11891_v34 = vpop.f32.mrf.mxu1 }
 0x6f3   : > { %v8550_v24 = vpop.f32.mrf.mxu0 }
 0x6f4   : > { %v8466_v37 = vpop.f32.mrf.mxu1  ;;  %v8551_v50 = vadd.f32 %v8550_v24, %v8461_v20 }
 0x6f5   : > { %v8467_v12 = vadd.f32 %v8466_v37, %v8365_v15  ;;  %v11906_v47 = vpop.f32.mrf.mxu0 }
 0x6f6   : > { %v11894_v30 = vpop.f32.mrf.mxu1 }
 0x6f8   : > { %v8472_v29 = vpop.f32.mrf.mxu1 }
 0x6f9   : > { %v8473_v23 = vadd.f32 %v8472_v29, %v8375_v39  ;;  %v8557_v8 = vpop.f32.mrf.mxu0 }
 0x6fa   : > { %v8558_v0 = vadd.f32 %v8557_v8, %v8467_v12  ;;  %v11897_v18 = vpop.f32.mrf.mxu1 }
 0x6fb   : > { %v11909_v13 = vpop.f32.mrf.mxu0 }
 0x6fc   : > { %v8640_v40 = vpop.f32.mrf.mxu1 }
 0x6fd   : > { %v8564_v49 = vpop.f32.mrf.mxu0  ;;  %v8641_v4 = vadd.f32 %v8640_v40, %v8551_v50 }
 0x6fe   : > { %v8565_v32 = vadd.f32 %v8564_v49, %v8473_v23  ;;  %v11921_v17 = vpop.f32.mrf.mxu1 }
 0x6ff   : > { %v11912_v44 = vpop.f32.mrf.mxu0 }
 0x700   : > { %v8648_v60 = vpop.f32.mrf.mxu1 }
 0x701   : > { %v8649_v53 = vadd.f32 %v8648_v60, %v8558_v0  ;;  %v8736_v1 = vpop.f32.mrf.mxu0 }
 0x702   : > { %v8737_v52 = vadd.f32 %v8736_v1, %v8641_v4  ;;  %v11924_v7 = vpop.f32.mrf.mxu1  ;;  %v9561_v1 = vld [vmem:[%s15100_s9] ss:$0 sm:$0xff] }
 0x703   : > { %v11936_v46 = vpop.f32.mrf.mxu0 }
 0x704   : > { %v8656_v58 = vpop.f32.mrf.mxu1 }
 0x705   : > { %v8657_v38 = vadd.f32 %v8656_v58, %v8565_v32  ;;  %v8742_v6 = vpop.f32.mrf.mxu0 }
 0x706   : > { %v8743_v2 = vadd.f32 %v8742_v6, %v8649_v53  ;;  %v11927_v45 = vpop.f32.mrf.mxu1 }
 0x707   : > { %v11939_v11 = vpop.f32.mrf.mxu0 }
 0x708   : > { %v8822_v9 = vpop.f32.mrf.mxu1 }
 0x709   : > { %v8748_v3 = vpop.f32.mrf.mxu0  ;;  %v8823_v36 = vadd.f32 %v8822_v9, %v8737_v52 }
 0x70a   : > { %v8749_v43 = vadd.f32 %v8748_v3, %v8657_v38  ;;  %v11951_v14 = vpop.f32.mrf.mxu1 }
 0x70b   : > { %v11942_v55 = vpop.f32.mrf.mxu0 }
 0x70c   : > { %v8828_v48 = vpop.f32.mrf.mxu1 }
 0x70d   : > { %v8829_v31 = vadd.f32 %v8828_v48, %v8743_v2 }
 0x70e   : > { %v11954_v56 = vpop.f32.mrf.mxu1 }
 0x710   : > { %v8834_v61 = vpop.f32.mrf.mxu1 }
 0x711   : > { %v15069_v16 = vadd.f32 %v8834_v61, %v8749_v43 }
 0x712   : > { %v11957_v26 = vpop.f32.mrf.mxu1 }
 0x739   : > { %v8915_v62 = vpop.f32.mrf.mxu0 }
 0x73b   : > { %v11966_v57 = vpop.f32.mrf.mxu0 }
 0x73d   : > { %v8925_v59 = vpop.f32.mrf.mxu0 }
 0x73f   : > { %v11969_v51 = vpop.f32.mrf.mxu0 }
 0x741   : > { %v8935_v33 = vpop.f32.mrf.mxu0  ;;  %v9021_v63 = vpop.f32.mrf.mxu1 }
 0x742   : > { %v9022_v50 = vadd.f32 %v9021_v63, %v8915_v62 }
 0x743   : > { %v11972_v28 = vpop.f32.mrf.mxu0  ;;  %v11981_v10 = vpop.f32.mrf.mxu1 }
 0x744   : > { %v12086_v28 = vld [vmem:[%s12285_s12 + $0x8] sm:$0xff] }
 0x745   : > { %v9111_v42 = vpop.f32.mrf.mxu0 }
 0x746   : > { %v9027_v22 = vpop.f32.mrf.mxu1  ;;  %v9112_v30 = vadd.f32 %v9111_v42, %v9022_v50 }
 0x747   : > { %v11996_v35 = vpop.f32.mrf.mxu0  ;;  %v9028_v8 = vadd.f32 %v9027_v22, %v8925_v59  ;;  %v12085_v59 = vld [vmem:[%s12285_s12] sm:$0xff] }
 0x748   : > { %v11984_v15 = vpop.f32.mrf.mxu1  ;;  %v12087_v35 = vld [vmem:[%s12285_s12 + $0x10] sm:$0x3] }
 0x74a   : > { %v9033_v27 = vpop.f32.mrf.mxu1 }
 0x74b   : > { %v9118_v5 = vpop.f32.mrf.mxu0  ;;  %v9034_v17 = vadd.f32 %v9033_v27, %v8935_v33 }
 0x74c   : > { %v11987_v19 = vpop.f32.mrf.mxu1  ;;  %v9119_v40 = vadd.f32 %v9118_v5, %v9028_v8 }
 0x74d   : > { %v11999_v39 = vpop.f32.mrf.mxu0 }
 0x74e   : > { %v9201_v20 = vpop.f32.mrf.mxu1 }
 0x74f   : > { %v9125_v54 = vpop.f32.mrf.mxu0  ;;  %v9202_v0 = vadd.f32 %v9201_v20, %v9112_v30 }
 0x750   : > { %v12011_v34 = vpop.f32.mrf.mxu1  ;;  %v9126_v7 = vadd.f32 %v9125_v54, %v9034_v17 }
 0x751   : > { %v12002_v24 = vpop.f32.mrf.mxu0 }
 0x752   : > { %v9209_v37 = vpop.f32.mrf.mxu1 }
 0x753   : > { %v9297_v12 = vpop.f32.mrf.mxu0  ;;  %v9210_v44 = vadd.f32 %v9209_v37, %v9119_v40 }
 0x754   : > { %v12014_v47 = vpop.f32.mrf.mxu1  ;;  %v9298_v49 = vadd.f32 %v9297_v12, %v9202_v0 }
 0x755   : > { %v12026_v29 = vpop.f32.mrf.mxu0 }
 0x756   : > { %v9217_v23 = vpop.f32.mrf.mxu1 }
 0x757   : > { %v9303_v18 = vpop.f32.mrf.mxu0  ;;  %v9218_v2 = vadd.f32 %v9217_v23, %v9126_v7 }
 0x758   : > { %v12017_v13 = vpop.f32.mrf.mxu1  ;;  %v9304_v46 = vadd.f32 %v9303_v18, %v9210_v44 }
 0x759   : > { %v12029_v4 = vpop.f32.mrf.mxu0 }
 0x75a   : > { %v9383_v32 = vpop.f32.mrf.mxu1 }
 0x75b   : > { %v9309_v60 = vpop.f32.mrf.mxu0  ;;  %v9384_v53 = vadd.f32 %v9383_v32, %v9298_v49 }
 0x75c   : > { %v12041_v52 = vpop.f32.mrf.mxu1  ;;  %v9310_v3 = vadd.f32 %v9309_v60, %v9218_v2 }
 0x75d   : > { %v9399_v58 = vadd.f32 %v9384_v53, %v8823_v36  ;;  %v12032_v38 = vpop.f32.mrf.mxu0 }
 0x75e   : > { %v9389_v6 = vpop.f32.mrf.mxu1 }
 0x75f   : > { %v9409_v45 = vadd.f32 %v9561_v1, %v9399_v58  ;;  %v9390_v11 = vadd.f32 %v9389_v6, %v9304_v46 }
 0x760   : > { %v12044_v9 = vpop.f32.mrf.mxu1 }
 0x761   : > { %vm9412_vm11 = vcmp.gt.f32.partialorder %v9409_v45, 0.0  ;;  %v9415_v43 = vmul.f32 0.2, %v9409_v45  ;;  %v9400_v14 = vadd.f32 %v9390_v11, %v8829_v31 }
 0x762   : > { %v9395_v55 = vpop.f32.mrf.mxu1 }
 0x763   : > { %v9418_v48 = vsel %vm9412_vm11, %v9409_v45, %v9415_v43  ;;  %v9410_v56 = vadd.f32 %v9561_v1, %v9400_v14  ;;  %v9396_v61 = vadd.f32 %v9395_v55, %v9310_v3 }
 0x764   : > { %v9421_v26 = vmul.f32 %v9418_v48, %v13494_v25  ;;  %v12047_v36 = vpop.f32.mrf.mxu1 }
 0x765   : > { %vm9413_vm12 = vcmp.gt.f32.partialorder %v9410_v56, 0.0  ;;  %v9416_v62 = vmul.f32 0.2, %v9410_v56  ;;  %v9401_v57 = vadd.f32 %v9396_v61, %v15069_v16 }
 0x766   : > { %v9424_v31 = vadd.f32 %v12085_v59, %v9421_v26 }
 0x767   : > { %v9419_v51 = vsel %vm9413_vm12, %v9410_v56, %v9416_v62  ;;  %v9411_v33 = vadd.f32 %v9561_v1, %v9401_v57 }
 0x768   : > { %9427 = vst.msk [vmem:[%s389_s21] sm:$0xff] %vm410_vm1, %v9424_v31  ;;  %v9422_v63 = vmul.f32 %v9419_v51, %v13501_v21 }
 0x769   : > { %vm9414_vm13 = vcmp.gt.f32.partialorder %v9411_v33, 0.0  ;;  %v9417_v25 = vmul.f32 0.2, %v9411_v33 }
 0x76a   : > { %v9425_v10 = vadd.f32 %v12086_v28, %v9422_v63 }
 0x76b   : > { %v9420_v42 = vsel %vm9414_vm13, %v9411_v33, %v9417_v25 }
 0x76c   : > { %9428 = vst.msk [vmem:[%s389_s21 + $0x8] sm:$0xff] %vm410_vm1, %v9425_v10  ;;  %v9423_v22 = vmul.f32 %v9420_v42, %v13508_v41 }
 0x76e   : > { %v9426_v16 = vadd.f32 %v12087_v35, %v9423_v22 }
 0x770   : > { %9430 = vst.msk [vmem:[%s389_s21 + $0x10] sm:$0x3] %vm9429_vm14, %v9426_v16 }
 0x771 PF: > { %s22_s13 = sadd.s32 1, %s12154_s13  }
 0x772   : > { %p19_p2 = scmp.ge.s32.totalorder %s22_s13, 4  }
 0x774   :  { %21 = sbr.rel (!%p19_p2) target bundleno = 2 (0x2), region = 105 }
 0x779   :  { %9452 = vsyncpa [#allocation3], 1 }
 0x77a   :  { %9454 = vsyncpa [#allocation3 + $0x1], 1 }
 0x77b   :  { %9455 = vsyncpa [#allocation5], 1 }

</bundles_post_ra>
